<compile_context>
chip_gen: v5e
topology: v5e:2x2
jax: 0.10.0
libtpu: 0.0.40
codegen_flags: <defaults>
</compile_context>

<pallas_src>
import jax
import jax.numpy as jnp
from jax.experimental import pallas as pl
from jax.experimental.pallas import tpu as pltpu


# ----------------------------------------------------------------------------
# Fused Pallas kernel: 4 stacked LSTM layers + temporal attention
# ----------------------------------------------------------------------------
def fused_lstm_attn_kernel(x_ref, w_ref, b_ref, aw_ref, ab_ref, out_ref):
    """All layers + attention in one kernel; activations never leave registers.

    x_ref  : (T*B, D)  f32    time-major flattened input (row = t*B + b)
    w_ref  : (L, D+H, 4H) bf16 per-layer packed [Wih^T ; Whh^T]  (gate order i,f,g,o)
    b_ref  : (L, 1, 4H) f32   per-layer b_ih + b_hh
    aw_ref : (1, H) f32       attention weight (nn.Linear(H, 1).weight)
    ab_ref : (1, 1) f32 SMEM  attention bias
    out_ref: (B, H) f32       attention-pooled output
    """
    TB, _ = x_ref.shape
    H = aw_ref.shape[1]
    B = out_ref.shape[0]
    T = TB // B
    L = w_ref.shape[0]

    def run_layer(x2d, l):
        """x2d: (T*B, Din) f32 value.  Returns (list of T (B,H) states, (T*B,H))."""
        din = x2d.shape[1]
        wfull = w_ref[l]                       # (Din+H, 4H) bf16
        wih_t = wfull[:din, :]                 # (Din, 4H)
        whh_t = wfull[din:din + H, :]          # (H,   4H)
        bias = b_ref[l]                        # (1, 4H) f32

        # Hoisted input projection: ONE bf16 MXU matmul per layer (f32 accumulate).
        pregates = jnp.dot(x2d.astype(jnp.bfloat16), wih_t,
                           preferred_element_type=jnp.float32) + bias   # (T*B, 4H)

        h = jnp.zeros((B, H), jnp.float32)
        c = jnp.zeros((B, H), jnp.float32)
        hs = []
        for t in range(T):  # fully unrolled (T static & tiny)
            # Only this (B,H)x(H,4H) bf16 matmul sits on the serial critical path.
            g = pregates[t * B:(t + 1) * B, :] + jnp.dot(
                h.astype(jnp.bfloat16), whh_t, preferred_element_type=jnp.float32)
            sg = jax.nn.sigmoid(g)                       # one full-width EUP pass
            i_g = sg[:, 0 * H:1 * H]
            f_g = sg[:, 1 * H:2 * H]
            o_g = sg[:, 3 * H:4 * H]
            g_g = jnp.tanh(g[:, 2 * H:3 * H])            # tanh only on the g slice
            c = f_g * c + i_g * g_g                      # cell/gate math stays f32 (VPU)
            h = o_g * jnp.tanh(c)
            hs.append(h)
        return hs, jnp.concatenate(hs, axis=0)           # (T*B, H), register-resident

    # ---- stacked LSTM layers (bottom stack followed by top stack) ----
    x2d = x_ref[...]
    hs, y2d = None, None
    for l in range(L):                                   # static layer loop (4 layers)
        hs, y2d = run_layer(x2d, l)
        x2d = y2d                                        # next layer input, no VMEM trip

    # ---- temporal attention (softmax over time, per batch element) ----
    aw_b = jnp.broadcast_to(aw_ref[...], y2d.shape)      # hoisted: ONE broadcast
    ab = ab_ref[0, 0]                                    # scalar (SMEM)
    logits = jnp.sum(y2d * aw_b, axis=1, keepdims=True) + ab    # (T*B,1): 1 mult + 1 reduce
    m = jnp.max(logits, axis=0, keepdims=True)           # global max = valid stabilizer
    e = jnp.exp(logits - m)                              # single EUP exp pass

    acc = jnp.zeros((B, H), jnp.float32)
    denom = jnp.zeros((B, 1), jnp.float32)
    for t in range(T):
        e_t = e[t * B:(t + 1) * B, :]                    # (B,1) static sublane slice
        denom = denom + e_t
        acc = acc + e_t * hs[t]
    out_ref[...] = acc * pl.reciprocal(denom, approx=True)   # EUP approx reciprocal


# ----------------------------------------------------------------------------
# Wrapper
# ----------------------------------------------------------------------------
_VMEM = pl.BlockSpec(memory_space=pltpu.MemorySpace.VMEM)
_SMEM = pl.BlockSpec(memory_space=pltpu.MemorySpace.SMEM)


def pack_params(params):
    """One-time weight packing (outside the per-call hot path)."""
    layers = list(params["bottom"]) + list(params["top"])
    w_list, b_list = [], []
    for layer in layers:
        wih_t = jnp.transpose(layer["wih"])   # (Din, 4H)
        whh_t = jnp.transpose(layer["whh"])   # (H,   4H)
        w_list.append(jnp.concatenate([wih_t, whh_t], axis=0))       # (Din+H, 4H)
        b_list.append((layer["b_ih"] + layer["b_hh"])[None, :])      # (1, 4H)
    shapes = {w.shape for w in w_list}
    assert len(shapes) == 1, "requires input_dim == lstm_hidden_dim (see module note)"
    return dict(
        w=jnp.stack(w_list, axis=0).astype(jnp.bfloat16),     # (L, Din+H, 4H) bf16 MXU operands
        b=jnp.stack(b_list, axis=0).astype(jnp.float32),      # (L, 1, 4H) f32
        att_w=params["att_w"].reshape(1, -1).astype(jnp.float32),   # (1, H)
        att_b=params["att_b"].reshape(1, 1).astype(jnp.float32),    # (1, 1)
    )


@jax.jit
def hierarchical_lstm_attention_forward(x_btd, packed):
    """x_btd: (B, T, input_dim) batch-first.  Returns (B, input_dim)."""
    B, T, D = x_btd.shape
    H = packed["att_w"].shape[1]
    # one-time layout change: (B,T,D) -> time-major flattened (T*B, D)
    x2d = jnp.transpose(x_btd, (1, 0, 2)).reshape(T * B, D)
    return pl.pallas_call(
        fused_lstm_attn_kernel,
        out_shape=jax.ShapeDtypeStruct((B, H), jnp.float32),
        in_specs=[_VMEM, _VMEM, _VMEM, _VMEM, _SMEM],
        out_specs=_VMEM,
    )(x2d, packed["w"], packed["b"], packed["att_w"], packed["att_b"])


# ----------------------------------------------------------------------------
# Deterministic parameter init (matches PyTorch LSTM/Linear shapes)
# ----------------------------------------------------------------------------
def init_lstm_stack(key, input_size, hidden_size, num_layers):
    layers = []
    k = 1.0 / jnp.sqrt(hidden_size)
    for l in range(num_layers):
        d_in = input_size if l == 0 else hidden_size
        key, k1, k2, k3, k4 = jax.random.split(key, 5)
        layers.append(dict(
            wih=jax.random.uniform(k1, (4 * hidden_size, d_in), jnp.float32, -k, k),
            whh=jax.random.uniform(k2, (4 * hidden_size, hidden_size), jnp.float32, -k, k),
            b_ih=jax.random.uniform(k3, (4 * hidden_size,), jnp.float32, -k, k),
            b_hh=jax.random.uniform(k4, (4 * hidden_size,), jnp.float32, -k, k),
        ))
    return key, layers


def init_params(key, input_dim, lstm_hidden_dim, num_layers):
    key, bottom = init_lstm_stack(key, input_dim, lstm_hidden_dim, num_layers)
    key, top = init_lstm_stack(key, lstm_hidden_dim, input_dim, num_layers)
    k_att = 1.0 / jnp.sqrt(lstm_hidden_dim)
    key, kw, kb = jax.random.split(key, 3)
    att_w = jax.random.uniform(kw, (1, lstm_hidden_dim), jnp.float32, -k_att, k_att)
    att_b = jax.random.uniform(kb, (1,), jnp.float32, -k_att, k_att)
    return dict(bottom=bottom, top=top, att_w=att_w, att_b=att_b)


# ----------------------------------------------------------------------------
# Pure-JAX references (mirror the forward; optionally with bf16 MXU operands)
# ----------------------------------------------------------------------------
def _lstm_ref(x_btd, layers, mxu_dtype=jnp.float32):
    y = x_btd
    for layer in layers:
        wih, whh = layer["wih"], layer["whh"]
        b = layer["b_ih"] + layer["b_hh"]
        H = whh.shape[1]
        B, T, _ = y.shape
        wih_t = wih.T.astype(mxu_dtype)
        whh_t = whh.T.astype(mxu_dtype)
        h = jnp.zeros((B, H), jnp.float32)
        c = jnp.zeros((B, H), jnp.float32)
        outs = []
        for t in range(T):
            gates = (jnp.dot(y[:, t, :].astype(mxu_dtype), wih_t,
                             preferred_element_type=jnp.float32)
                     + jnp.dot(h.astype(mxu_dtype), whh_t,
                               preferred_element_type=jnp.float32) + b)
            i_g = jax.nn.sigmoid(gates[:, 0 * H:1 * H])
            f_g = jax.nn.sigmoid(gates[:, 1 * H:2 * H])
            g_g = jnp.tanh(gates[:, 2 * H:3 * H])
            o_g = jax.nn.sigmoid(gates[:, 3 * H:4 * H])
            c = f_g * c + i_g * g_g
            h = o_g * jnp.tanh(c)
            outs.append(h)
        y = jnp.stack(outs, axis=1)
    return y


def reference_forward(x_btd, params, mxu_dtype=jnp.float32):
    y = _lstm_ref(x_btd, params["bottom"], mxu_dtype)
    y = _lstm_ref(y, params["top"], mxu_dtype)
    logits = y @ params["att_w"].T + params["att_b"]       # (B, T, 1)
    att = jax.nn.softmax(logits, axis=1)
    return jnp.sum(y * att, axis=1)                        # (B, input_dim)


# ----------------------------------------------------------------------------
if __name__ == "__main__":
    B, T = 2, 8
    input_dim = 32          # must equal lstm_hidden_dim (see note above)
    lstm_hidden_dim = 32
    num_layers = 2

    key = jax.random.PRNGKey(0)
    key, kx, kp = jax.random.split(key, 3)
    x = jax.random.normal(kx, (B, T, input_dim), jnp.float32)
    params = init_params(kp, input_dim, lstm_hidden_dim, num_layers)
    packed = pack_params(params)       # one-time weight packing (bf16)

    out = hierarchical_lstm_attention_forward(x, packed)
    out = jax.block_until_ready(out)
    assert out.shape == (B, input_dim), out.shape

    # Tight check vs a reference that models the kernel's bf16 MXU operands,
    # loose check vs the pure-f32 reference (bf16 rounding noise).
    ref_bf16 = reference_forward(x, params, mxu_dtype=jnp.bfloat16)
    ref_f32 = reference_forward(x, params, mxu_dtype=jnp.float32)
    err_bf16 = float(jnp.max(jnp.abs(out - ref_bf16)))
    err_f32 = float(jnp.max(jnp.abs(out - ref_f32)))
    assert err_bf16 < 2e-3, f"mismatch vs bf16-matched reference: {err_bf16}"
    assert err_f32 < 1e-2, f"mismatch vs f32 reference: {err_f32}"

    print("KERNEL_OK")
</pallas_src>

<mosaic_0001>
module attributes {stable_mosaic.version = 11 : i64} {
  func.func @fused_lstm_attn_kernel(%arg0: memref<16x32xf32, #tpu.memory_space<vmem>>, %arg1: memref<4x64x128xbf16, #tpu.memory_space<vmem>>, %arg2: memref<4x1x128xf32, #tpu.memory_space<vmem>>, %arg3: memref<1x32xf32, #tpu.memory_space<vmem>>, %arg4: memref<1x1xf32, #tpu.memory_space<smem>>, %arg5: memref<2x32xf32, #tpu.memory_space<vmem>>) attributes {dimension_semantics = [], scalar_prefetch = 0 : i64, scratch_operands = 0 : i64, tpu.core_type = #tpu.core_type<tc>} {
    %c0 = arith.constant 0 : index
    %c0_0 = arith.constant 0 : index
    %0 = vector.load %arg0[%c0, %c0_0] : memref<16x32xf32, #tpu.memory_space<vmem>>, vector<16x32xf32>
    %c0_1 = arith.constant 0 : index
    %c0_2 = arith.constant 0 : index
    %c0_3 = arith.constant 0 : index
    %1 = vector.load %arg1[%c0_1, %c0_2, %c0_3] : memref<4x64x128xbf16, #tpu.memory_space<vmem>>, vector<1x64x128xbf16>
    %2 = vector.shape_cast %1 : vector<1x64x128xbf16> to vector<64x128xbf16>
    %3 = vector.extract_strided_slice %2 {offsets = [0, 0], sizes = [32, 128], strides = [1, 1]} : vector<64x128xbf16> to vector<32x128xbf16>
    %4 = vector.extract_strided_slice %2 {offsets = [32, 0], sizes = [32, 128], strides = [1, 1]} : vector<64x128xbf16> to vector<32x128xbf16>
    %c0_4 = arith.constant 0 : index
    %c0_5 = arith.constant 0 : index
    %c0_6 = arith.constant 0 : index
    %5 = vector.load %arg2[%c0_4, %c0_5, %c0_6] : memref<4x1x128xf32, #tpu.memory_space<vmem>>, vector<1x1x128xf32>
    %6 = vector.shape_cast %5 : vector<1x1x128xf32> to vector<1x128xf32>
    %7 = arith.truncf %0 : vector<16x32xf32> to vector<16x32xbf16>
    %cst = arith.constant dense<0.000000e+00> : vector<16x128xf32>
    %8 = tpu.matmul %7, %3, %cst {dimension_numbers = #tpu.dot_dimension_numbers<[1], [0], [0], [1], [0, 0, 1, 1], [], []>} : vector<16x32xbf16>, vector<32x128xbf16>, vector<16x128xf32> -> vector<16x128xf32>
    %9 = vector.broadcast %6 : vector<1x128xf32> to vector<16x128xf32>
    %10 = arith.addf %8, %9 : vector<16x128xf32>
    %cst_7 = arith.constant 0.000000e+00 : f32
    %11 = vector.broadcast %cst_7 : f32 to vector<2x32xf32>
    %cst_8 = arith.constant 0.000000e+00 : f32
    %12 = vector.broadcast %cst_8 : f32 to vector<2x32xf32>
    %13 = vector.extract_strided_slice %10 {offsets = [0, 0], sizes = [2, 128], strides = [1, 1]} : vector<16x128xf32> to vector<2x128xf32>
    %14 = arith.truncf %11 : vector<2x32xf32> to vector<2x32xbf16>
    %cst_9 = arith.constant dense<0.000000e+00> : vector<2x128xf32>
    %15 = tpu.matmul %14, %4, %cst_9 {dimension_numbers = #tpu.dot_dimension_numbers<[1], [0], [0], [1], [0, 0, 1, 1], [], []>} : vector<2x32xbf16>, vector<32x128xbf16>, vector<2x128xf32> -> vector<2x128xf32>
    %16 = arith.addf %13, %15 : vector<2x128xf32>
    %17 = arith.negf %16 : vector<2x128xf32>
    %18 = math.exp %17 : vector<2x128xf32>
    %cst_10 = arith.constant 1.000000e+00 : f32
    %19 = vector.broadcast %cst_10 : f32 to vector<2x128xf32>
    %20 = arith.addf %19, %18 : vector<2x128xf32>
    %21 = arith.divf %19, %20 : vector<2x128xf32>
    %22 = vector.extract_strided_slice %21 {offsets = [0, 0], sizes = [2, 32], strides = [1, 1]} : vector<2x128xf32> to vector<2x32xf32>
    %23 = vector.extract_strided_slice %21 {offsets = [0, 32], sizes = [2, 32], strides = [1, 1]} : vector<2x128xf32> to vector<2x32xf32>
    %24 = vector.extract_strided_slice %21 {offsets = [0, 96], sizes = [2, 32], strides = [1, 1]} : vector<2x128xf32> to vector<2x32xf32>
    %25 = vector.extract_strided_slice %16 {offsets = [0, 64], sizes = [2, 32], strides = [1, 1]} : vector<2x128xf32> to vector<2x32xf32>
    %26 = math.tanh %25 : vector<2x32xf32>
    %27 = arith.mulf %23, %12 : vector<2x32xf32>
    %28 = arith.mulf %22, %26 : vector<2x32xf32>
    %29 = arith.addf %27, %28 : vector<2x32xf32>
    %30 = math.tanh %29 : vector<2x32xf32>
    %31 = arith.mulf %24, %30 : vector<2x32xf32>
    %32 = vector.extract_strided_slice %10 {offsets = [2, 0], sizes = [2, 128], strides = [1, 1]} : vector<16x128xf32> to vector<2x128xf32>
    %33 = arith.truncf %31 : vector<2x32xf32> to vector<2x32xbf16>
    %cst_11 = arith.constant dense<0.000000e+00> : vector<2x128xf32>
    %34 = tpu.matmul %33, %4, %cst_11 {dimension_numbers = #tpu.dot_dimension_numbers<[1], [0], [0], [1], [0, 0, 1, 1], [], []>} : vector<2x32xbf16>, vector<32x128xbf16>, vector<2x128xf32> -> vector<2x128xf32>
    %35 = arith.addf %32, %34 : vector<2x128xf32>
    %36 = arith.negf %35 : vector<2x128xf32>
    %37 = math.exp %36 : vector<2x128xf32>
    %cst_12 = arith.constant 1.000000e+00 : f32
    %38 = vector.broadcast %cst_12 : f32 to vector<2x128xf32>
    %39 = arith.addf %38, %37 : vector<2x128xf32>
    %40 = arith.divf %38, %39 : vector<2x128xf32>
    %41 = vector.extract_strided_slice %40 {offsets = [0, 0], sizes = [2, 32], strides = [1, 1]} : vector<2x128xf32> to vector<2x32xf32>
    %42 = vector.extract_strided_slice %40 {offsets = [0, 32], sizes = [2, 32], strides = [1, 1]} : vector<2x128xf32> to vector<2x32xf32>
    %43 = vector.extract_strided_slice %40 {offsets = [0, 96], sizes = [2, 32], strides = [1, 1]} : vector<2x128xf32> to vector<2x32xf32>
    %44 = vector.extract_strided_slice %35 {offsets = [0, 64], sizes = [2, 32], strides = [1, 1]} : vector<2x128xf32> to vector<2x32xf32>
    %45 = math.tanh %44 : vector<2x32xf32>
    %46 = arith.mulf %42, %29 : vector<2x32xf32>
    %47 = arith.mulf %41, %45 : vector<2x32xf32>
    %48 = arith.addf %46, %47 : vector<2x32xf32>
    %49 = math.tanh %48 : vector<2x32xf32>
    %50 = arith.mulf %43, %49 : vector<2x32xf32>
    %51 = vector.extract_strided_slice %10 {offsets = [4, 0], sizes = [2, 128], strides = [1, 1]} : vector<16x128xf32> to vector<2x128xf32>
    %52 = arith.truncf %50 : vector<2x32xf32> to vector<2x32xbf16>
    %cst_13 = arith.constant dense<0.000000e+00> : vector<2x128xf32>
    %53 = tpu.matmul %52, %4, %cst_13 {dimension_numbers = #tpu.dot_dimension_numbers<[1], [0], [0], [1], [0, 0, 1, 1], [], []>} : vector<2x32xbf16>, vector<32x128xbf16>, vector<2x128xf32> -> vector<2x128xf32>
    %54 = arith.addf %51, %53 : vector<2x128xf32>
    %55 = arith.negf %54 : vector<2x128xf32>
    %56 = math.exp %55 : vector<2x128xf32>
    %cst_14 = arith.constant 1.000000e+00 : f32
    %57 = vector.broadcast %cst_14 : f32 to vector<2x128xf32>
    %58 = arith.addf %57, %56 : vector<2x128xf32>
    %59 = arith.divf %57, %58 : vector<2x128xf32>
    %60 = vector.extract_strided_slice %59 {offsets = [0, 0], sizes = [2, 32], strides = [1, 1]} : vector<2x128xf32> to vector<2x32xf32>
    %61 = vector.extract_strided_slice %59 {offsets = [0, 32], sizes = [2, 32], strides = [1, 1]} : vector<2x128xf32> to vector<2x32xf32>
    %62 = vector.extract_strided_slice %59 {offsets = [0, 96], sizes = [2, 32], strides = [1, 1]} : vector<2x128xf32> to vector<2x32xf32>
    %63 = vector.extract_strided_slice %54 {offsets = [0, 64], sizes = [2, 32], strides = [1, 1]} : vector<2x128xf32> to vector<2x32xf32>
    %64 = math.tanh %63 : vector<2x32xf32>
    %65 = arith.mulf %61, %48 : vector<2x32xf32>
    %66 = arith.mulf %60, %64 : vector<2x32xf32>
    %67 = arith.addf %65, %66 : vector<2x32xf32>
    %68 = math.tanh %67 : vector<2x32xf32>
    %69 = arith.mulf %62, %68 : vector<2x32xf32>
    %70 = vector.extract_strided_slice %10 {offsets = [6, 0], sizes = [2, 128], strides = [1, 1]} : vector<16x128xf32> to vector<2x128xf32>
    %71 = arith.truncf %69 : vector<2x32xf32> to vector<2x32xbf16>
    %cst_15 = arith.constant dense<0.000000e+00> : vector<2x128xf32>
    %72 = tpu.matmul %71, %4, %cst_15 {dimension_numbers = #tpu.dot_dimension_numbers<[1], [0], [0], [1], [0, 0, 1, 1], [], []>} : vector<2x32xbf16>, vector<32x128xbf16>, vector<2x128xf32> -> vector<2x128xf32>
    %73 = arith.addf %70, %72 : vector<2x128xf32>
    %74 = arith.negf %73 : vector<2x128xf32>
    %75 = math.exp %74 : vector<2x128xf32>
    %cst_16 = arith.constant 1.000000e+00 : f32
    %76 = vector.broadcast %cst_16 : f32 to vector<2x128xf32>
    %77 = arith.addf %76, %75 : vector<2x128xf32>
    %78 = arith.divf %76, %77 : vector<2x128xf32>
    %79 = vector.extract_strided_slice %78 {offsets = [0, 0], sizes = [2, 32], strides = [1, 1]} : vector<2x128xf32> to vector<2x32xf32>
    %80 = vector.extract_strided_slice %78 {offsets = [0, 32], sizes = [2, 32], strides = [1, 1]} : vector<2x128xf32> to vector<2x32xf32>
    %81 = vector.extract_strided_slice %78 {offsets = [0, 96], sizes = [2, 32], strides = [1, 1]} : vector<2x128xf32> to vector<2x32xf32>
    %82 = vector.extract_strided_slice %73 {offsets = [0, 64], sizes = [2, 32], strides = [1, 1]} : vector<2x128xf32> to vector<2x32xf32>
    %83 = math.tanh %82 : vector<2x32xf32>
    %84 = arith.mulf %80, %67 : vector<2x32xf32>
    %85 = arith.mulf %79, %83 : vector<2x32xf32>
    %86 = arith.addf %84, %85 : vector<2x32xf32>
    %87 = math.tanh %86 : vector<2x32xf32>
    %88 = arith.mulf %81, %87 : vector<2x32xf32>
    %89 = vector.extract_strided_slice %10 {offsets = [8, 0], sizes = [2, 128], strides = [1, 1]} : vector<16x128xf32> to vector<2x128xf32>
    %90 = arith.truncf %88 : vector<2x32xf32> to vector<2x32xbf16>
    %cst_17 = arith.constant dense<0.000000e+00> : vector<2x128xf32>
    %91 = tpu.matmul %90, %4, %cst_17 {dimension_numbers = #tpu.dot_dimension_numbers<[1], [0], [0], [1], [0, 0, 1, 1], [], []>} : vector<2x32xbf16>, vector<32x128xbf16>, vector<2x128xf32> -> vector<2x128xf32>
    %92 = arith.addf %89, %91 : vector<2x128xf32>
    %93 = arith.negf %92 : vector<2x128xf32>
    %94 = math.exp %93 : vector<2x128xf32>
    %cst_18 = arith.constant 1.000000e+00 : f32
    %95 = vector.broadcast %cst_18 : f32 to vector<2x128xf32>
    %96 = arith.addf %95, %94 : vector<2x128xf32>
    %97 = arith.divf %95, %96 : vector<2x128xf32>
    %98 = vector.extract_strided_slice %97 {offsets = [0, 0], sizes = [2, 32], strides = [1, 1]} : vector<2x128xf32> to vector<2x32xf32>
    %99 = vector.extract_strided_slice %97 {offsets = [0, 32], sizes = [2, 32], strides = [1, 1]} : vector<2x128xf32> to vector<2x32xf32>
    %100 = vector.extract_strided_slice %97 {offsets = [0, 96], sizes = [2, 32], strides = [1, 1]} : vector<2x128xf32> to vector<2x32xf32>
    %101 = vector.extract_strided_slice %92 {offsets = [0, 64], sizes = [2, 32], strides = [1, 1]} : vector<2x128xf32> to vector<2x32xf32>
    %102 = math.tanh %101 : vector<2x32xf32>
    %103 = arith.mulf %99, %86 : vector<2x32xf32>
    %104 = arith.mulf %98, %102 : vector<2x32xf32>
    %105 = arith.addf %103, %104 : vector<2x32xf32>
    %106 = math.tanh %105 : vector<2x32xf32>
    %107 = arith.mulf %100, %106 : vector<2x32xf32>
    %108 = vector.extract_strided_slice %10 {offsets = [10, 0], sizes = [2, 128], strides = [1, 1]} : vector<16x128xf32> to vector<2x128xf32>
    %109 = arith.truncf %107 : vector<2x32xf32> to vector<2x32xbf16>
    %cst_19 = arith.constant dense<0.000000e+00> : vector<2x128xf32>
    %110 = tpu.matmul %109, %4, %cst_19 {dimension_numbers = #tpu.dot_dimension_numbers<[1], [0], [0], [1], [0, 0, 1, 1], [], []>} : vector<2x32xbf16>, vector<32x128xbf16>, vector<2x128xf32> -> vector<2x128xf32>
    %111 = arith.addf %108, %110 : vector<2x128xf32>
    %112 = arith.negf %111 : vector<2x128xf32>
    %113 = math.exp %112 : vector<2x128xf32>
    %cst_20 = arith.constant 1.000000e+00 : f32
    %114 = vector.broadcast %cst_20 : f32 to vector<2x128xf32>
    %115 = arith.addf %114, %113 : vector<2x128xf32>
    %116 = arith.divf %114, %115 : vector<2x128xf32>
    %117 = vector.extract_strided_slice %116 {offsets = [0, 0], sizes = [2, 32], strides = [1, 1]} : vector<2x128xf32> to vector<2x32xf32>
    %118 = vector.extract_strided_slice %116 {offsets = [0, 32], sizes = [2, 32], strides = [1, 1]} : vector<2x128xf32> to vector<2x32xf32>
    %119 = vector.extract_strided_slice %116 {offsets = [0, 96], sizes = [2, 32], strides = [1, 1]} : vector<2x128xf32> to vector<2x32xf32>
    %120 = vector.extract_strided_slice %111 {offsets = [0, 64], sizes = [2, 32], strides = [1, 1]} : vector<2x128xf32> to vector<2x32xf32>
    %121 = math.tanh %120 : vector<2x32xf32>
    %122 = arith.mulf %118, %105 : vector<2x32xf32>
    %123 = arith.mulf %117, %121 : vector<2x32xf32>
    %124 = arith.addf %122, %123 : vector<2x32xf32>
    %125 = math.tanh %124 : vector<2x32xf32>
    %126 = arith.mulf %119, %125 : vector<2x32xf32>
    %127 = vector.extract_strided_slice %10 {offsets = [12, 0], sizes = [2, 128], strides = [1, 1]} : vector<16x128xf32> to vector<2x128xf32>
    %128 = arith.truncf %126 : vector<2x32xf32> to vector<2x32xbf16>
    %cst_21 = arith.constant dense<0.000000e+00> : vector<2x128xf32>
    %129 = tpu.matmul %128, %4, %cst_21 {dimension_numbers = #tpu.dot_dimension_numbers<[1], [0], [0], [1], [0, 0, 1, 1], [], []>} : vector<2x32xbf16>, vector<32x128xbf16>, vector<2x128xf32> -> vector<2x128xf32>
    %130 = arith.addf %127, %129 : vector<2x128xf32>
    %131 = arith.negf %130 : vector<2x128xf32>
    %132 = math.exp %131 : vector<2x128xf32>
    %cst_22 = arith.constant 1.000000e+00 : f32
    %133 = vector.broadcast %cst_22 : f32 to vector<2x128xf32>
    %134 = arith.addf %133, %132 : vector<2x128xf32>
    %135 = arith.divf %133, %134 : vector<2x128xf32>
    %136 = vector.extract_strided_slice %135 {offsets = [0, 0], sizes = [2, 32], strides = [1, 1]} : vector<2x128xf32> to vector<2x32xf32>
    %137 = vector.extract_strided_slice %135 {offsets = [0, 32], sizes = [2, 32], strides = [1, 1]} : vector<2x128xf32> to vector<2x32xf32>
    %138 = vector.extract_strided_slice %135 {offsets = [0, 96], sizes = [2, 32], strides = [1, 1]} : vector<2x128xf32> to vector<2x32xf32>
    %139 = vector.extract_strided_slice %130 {offsets = [0, 64], sizes = [2, 32], strides = [1, 1]} : vector<2x128xf32> to vector<2x32xf32>
    %140 = math.tanh %139 : vector<2x32xf32>
    %141 = arith.mulf %137, %124 : vector<2x32xf32>
    %142 = arith.mulf %136, %140 : vector<2x32xf32>
    %143 = arith.addf %141, %142 : vector<2x32xf32>
    %144 = math.tanh %143 : vector<2x32xf32>
    %145 = arith.mulf %138, %144 : vector<2x32xf32>
    %146 = vector.extract_strided_slice %10 {offsets = [14, 0], sizes = [2, 128], strides = [1, 1]} : vector<16x128xf32> to vector<2x128xf32>
    %147 = arith.truncf %145 : vector<2x32xf32> to vector<2x32xbf16>
    %cst_23 = arith.constant dense<0.000000e+00> : vector<2x128xf32>
    %148 = tpu.matmul %147, %4, %cst_23 {dimension_numbers = #tpu.dot_dimension_numbers<[1], [0], [0], [1], [0, 0, 1, 1], [], []>} : vector<2x32xbf16>, vector<32x128xbf16>, vector<2x128xf32> -> vector<2x128xf32>
    %149 = arith.addf %146, %148 : vector<2x128xf32>
    %150 = arith.negf %149 : vector<2x128xf32>
    %151 = math.exp %150 : vector<2x128xf32>
    %cst_24 = arith.constant 1.000000e+00 : f32
    %152 = vector.broadcast %cst_24 : f32 to vector<2x128xf32>
    %153 = arith.addf %152, %151 : vector<2x128xf32>
    %154 = arith.divf %152, %153 : vector<2x128xf32>
    %155 = vector.extract_strided_slice %154 {offsets = [0, 0], sizes = [2, 32], strides = [1, 1]} : vector<2x128xf32> to vector<2x32xf32>
    %156 = vector.extract_strided_slice %154 {offsets = [0, 32], sizes = [2, 32], strides = [1, 1]} : vector<2x128xf32> to vector<2x32xf32>
    %157 = vector.extract_strided_slice %154 {offsets = [0, 96], sizes = [2, 32], strides = [1, 1]} : vector<2x128xf32> to vector<2x32xf32>
    %158 = vector.extract_strided_slice %149 {offsets = [0, 64], sizes = [2, 32], strides = [1, 1]} : vector<2x128xf32> to vector<2x32xf32>
    %159 = math.tanh %158 : vector<2x32xf32>
    %160 = arith.mulf %156, %143 : vector<2x32xf32>
    %161 = arith.mulf %155, %159 : vector<2x32xf32>
    %162 = arith.addf %160, %161 : vector<2x32xf32>
    %163 = math.tanh %162 : vector<2x32xf32>
    %164 = arith.mulf %157, %163 : vector<2x32xf32>
    %165 = tpu.concatenate %31, %50, %69, %88, %107, %126, %145, %164 in 0 : vector<2x32xf32>, vector<2x32xf32>, vector<2x32xf32>, vector<2x32xf32>, vector<2x32xf32>, vector<2x32xf32>, vector<2x32xf32>, vector<2x32xf32> -> vector<16x32xf32>
    %c1 = arith.constant 1 : index
    %c0_25 = arith.constant 0 : index
    %c0_26 = arith.constant 0 : index
    %166 = vector.load %arg1[%c1, %c0_25, %c0_26] : memref<4x64x128xbf16, #tpu.memory_space<vmem>>, vector<1x64x128xbf16>
    %167 = vector.shape_cast %166 : vector<1x64x128xbf16> to vector<64x128xbf16>
    %168 = vector.extract_strided_slice %167 {offsets = [0, 0], sizes = [32, 128], strides = [1, 1]} : vector<64x128xbf16> to vector<32x128xbf16>
    %169 = vector.extract_strided_slice %167 {offsets = [32, 0], sizes = [32, 128], strides = [1, 1]} : vector<64x128xbf16> to vector<32x128xbf16>
    %c1_27 = arith.constant 1 : index
    %c0_28 = arith.constant 0 : index
    %c0_29 = arith.constant 0 : index
    %170 = vector.load %arg2[%c1_27, %c0_28, %c0_29] : memref<4x1x128xf32, #tpu.memory_space<vmem>>, vector<1x1x128xf32>
    %171 = vector.shape_cast %170 : vector<1x1x128xf32> to vector<1x128xf32>
    %172 = arith.truncf %165 : vector<16x32xf32> to vector<16x32xbf16>
    %cst_30 = arith.constant dense<0.000000e+00> : vector<16x128xf32>
    %173 = tpu.matmul %172, %168, %cst_30 {dimension_numbers = #tpu.dot_dimension_numbers<[1], [0], [0], [1], [0, 0, 1, 1], [], []>} : vector<16x32xbf16>, vector<32x128xbf16>, vector<16x128xf32> -> vector<16x128xf32>
    %174 = vector.broadcast %171 : vector<1x128xf32> to vector<16x128xf32>
    %175 = arith.addf %173, %174 : vector<16x128xf32>
    %cst_31 = arith.constant 0.000000e+00 : f32
    %176 = vector.broadcast %cst_31 : f32 to vector<2x32xf32>
    %cst_32 = arith.constant 0.000000e+00 : f32
    %177 = vector.broadcast %cst_32 : f32 to vector<2x32xf32>
    %178 = vector.extract_strided_slice %175 {offsets = [0, 0], sizes = [2, 128], strides = [1, 1]} : vector<16x128xf32> to vector<2x128xf32>
    %179 = arith.truncf %176 : vector<2x32xf32> to vector<2x32xbf16>
    %cst_33 = arith.constant dense<0.000000e+00> : vector<2x128xf32>
    %180 = tpu.matmul %179, %169, %cst_33 {dimension_numbers = #tpu.dot_dimension_numbers<[1], [0], [0], [1], [0, 0, 1, 1], [], []>} : vector<2x32xbf16>, vector<32x128xbf16>, vector<2x128xf32> -> vector<2x128xf32>
    %181 = arith.addf %178, %180 : vector<2x128xf32>
    %182 = arith.negf %181 : vector<2x128xf32>
    %183 = math.exp %182 : vector<2x128xf32>
    %cst_34 = arith.constant 1.000000e+00 : f32
    %184 = vector.broadcast %cst_34 : f32 to vector<2x128xf32>
    %185 = arith.addf %184, %183 : vector<2x128xf32>
    %186 = arith.divf %184, %185 : vector<2x128xf32>
    %187 = vector.extract_strided_slice %186 {offsets = [0, 0], sizes = [2, 32], strides = [1, 1]} : vector<2x128xf32> to vector<2x32xf32>
    %188 = vector.extract_strided_slice %186 {offsets = [0, 32], sizes = [2, 32], strides = [1, 1]} : vector<2x128xf32> to vector<2x32xf32>
    %189 = vector.extract_strided_slice %186 {offsets = [0, 96], sizes = [2, 32], strides = [1, 1]} : vector<2x128xf32> to vector<2x32xf32>
    %190 = vector.extract_strided_slice %181 {offsets = [0, 64], sizes = [2, 32], strides = [1, 1]} : vector<2x128xf32> to vector<2x32xf32>
    %191 = math.tanh %190 : vector<2x32xf32>
    %192 = arith.mulf %188, %177 : vector<2x32xf32>
    %193 = arith.mulf %187, %191 : vector<2x32xf32>
    %194 = arith.addf %192, %193 : vector<2x32xf32>
    %195 = math.tanh %194 : vector<2x32xf32>
    %196 = arith.mulf %189, %195 : vector<2x32xf32>
    %197 = vector.extract_strided_slice %175 {offsets = [2, 0], sizes = [2, 128], strides = [1, 1]} : vector<16x128xf32> to vector<2x128xf32>
    %198 = arith.truncf %196 : vector<2x32xf32> to vector<2x32xbf16>
    %cst_35 = arith.constant dense<0.000000e+00> : vector<2x128xf32>
    %199 = tpu.matmul %198, %169, %cst_35 {dimension_numbers = #tpu.dot_dimension_numbers<[1], [0], [0], [1], [0, 0, 1, 1], [], []>} : vector<2x32xbf16>, vector<32x128xbf16>, vector<2x128xf32> -> vector<2x128xf32>
    %200 = arith.addf %197, %199 : vector<2x128xf32>
    %201 = arith.negf %200 : vector<2x128xf32>
    %202 = math.exp %201 : vector<2x128xf32>
    %cst_36 = arith.constant 1.000000e+00 : f32
    %203 = vector.broadcast %cst_36 : f32 to vector<2x128xf32>
    %204 = arith.addf %203, %202 : vector<2x128xf32>
    %205 = arith.divf %203, %204 : vector<2x128xf32>
    %206 = vector.extract_strided_slice %205 {offsets = [0, 0], sizes = [2, 32], strides = [1, 1]} : vector<2x128xf32> to vector<2x32xf32>
    %207 = vector.extract_strided_slice %205 {offsets = [0, 32], sizes = [2, 32], strides = [1, 1]} : vector<2x128xf32> to vector<2x32xf32>
    %208 = vector.extract_strided_slice %205 {offsets = [0, 96], sizes = [2, 32], strides = [1, 1]} : vector<2x128xf32> to vector<2x32xf32>
    %209 = vector.extract_strided_slice %200 {offsets = [0, 64], sizes = [2, 32], strides = [1, 1]} : vector<2x128xf32> to vector<2x32xf32>
    %210 = math.tanh %209 : vector<2x32xf32>
    %211 = arith.mulf %207, %194 : vector<2x32xf32>
    %212 = arith.mulf %206, %210 : vector<2x32xf32>
    %213 = arith.addf %211, %212 : vector<2x32xf32>
    %214 = math.tanh %213 : vector<2x32xf32>
    %215 = arith.mulf %208, %214 : vector<2x32xf32>
    %216 = vector.extract_strided_slice %175 {offsets = [4, 0], sizes = [2, 128], strides = [1, 1]} : vector<16x128xf32> to vector<2x128xf32>
    %217 = arith.truncf %215 : vector<2x32xf32> to vector<2x32xbf16>
    %cst_37 = arith.constant dense<0.000000e+00> : vector<2x128xf32>
    %218 = tpu.matmul %217, %169, %cst_37 {dimension_numbers = #tpu.dot_dimension_numbers<[1], [0], [0], [1], [0, 0, 1, 1], [], []>} : vector<2x32xbf16>, vector<32x128xbf16>, vector<2x128xf32> -> vector<2x128xf32>
    %219 = arith.addf %216, %218 : vector<2x128xf32>
    %220 = arith.negf %219 : vector<2x128xf32>
    %221 = math.exp %220 : vector<2x128xf32>
    %cst_38 = arith.constant 1.000000e+00 : f32
    %222 = vector.broadcast %cst_38 : f32 to vector<2x128xf32>
    %223 = arith.addf %222, %221 : vector<2x128xf32>
    %224 = arith.divf %222, %223 : vector<2x128xf32>
    %225 = vector.extract_strided_slice %224 {offsets = [0, 0], sizes = [2, 32], strides = [1, 1]} : vector<2x128xf32> to vector<2x32xf32>
    %226 = vector.extract_strided_slice %224 {offsets = [0, 32], sizes = [2, 32], strides = [1, 1]} : vector<2x128xf32> to vector<2x32xf32>
    %227 = vector.extract_strided_slice %224 {offsets = [0, 96], sizes = [2, 32], strides = [1, 1]} : vector<2x128xf32> to vector<2x32xf32>
    %228 = vector.extract_strided_slice %219 {offsets = [0, 64], sizes = [2, 32], strides = [1, 1]} : vector<2x128xf32> to vector<2x32xf32>
    %229 = math.tanh %228 : vector<2x32xf32>
    %230 = arith.mulf %226, %213 : vector<2x32xf32>
    %231 = arith.mulf %225, %229 : vector<2x32xf32>
    %232 = arith.addf %230, %231 : vector<2x32xf32>
    %233 = math.tanh %232 : vector<2x32xf32>
    %234 = arith.mulf %227, %233 : vector<2x32xf32>
    %235 = vector.extract_strided_slice %175 {offsets = [6, 0], sizes = [2, 128], strides = [1, 1]} : vector<16x128xf32> to vector<2x128xf32>
    %236 = arith.truncf %234 : vector<2x32xf32> to vector<2x32xbf16>
    %cst_39 = arith.constant dense<0.000000e+00> : vector<2x128xf32>
    %237 = tpu.matmul %236, %169, %cst_39 {dimension_numbers = #tpu.dot_dimension_numbers<[1], [0], [0], [1], [0, 0, 1, 1], [], []>} : vector<2x32xbf16>, vector<32x128xbf16>, vector<2x128xf32> -> vector<2x128xf32>
    %238 = arith.addf %235, %237 : vector<2x128xf32>
    %239 = arith.negf %238 : vector<2x128xf32>
    %240 = math.exp %239 : vector<2x128xf32>
    %cst_40 = arith.constant 1.000000e+00 : f32
    %241 = vector.broadcast %cst_40 : f32 to vector<2x128xf32>
    %242 = arith.addf %241, %240 : vector<2x128xf32>
    %243 = arith.divf %241, %242 : vector<2x128xf32>
    %244 = vector.extract_strided_slice %243 {offsets = [0, 0], sizes = [2, 32], strides = [1, 1]} : vector<2x128xf32> to vector<2x32xf32>
    %245 = vector.extract_strided_slice %243 {offsets = [0, 32], sizes = [2, 32], strides = [1, 1]} : vector<2x128xf32> to vector<2x32xf32>
    %246 = vector.extract_strided_slice %243 {offsets = [0, 96], sizes = [2, 32], strides = [1, 1]} : vector<2x128xf32> to vector<2x32xf32>
    %247 = vector.extract_strided_slice %238 {offsets = [0, 64], sizes = [2, 32], strides = [1, 1]} : vector<2x128xf32> to vector<2x32xf32>
    %248 = math.tanh %247 : vector<2x32xf32>
    %249 = arith.mulf %245, %232 : vector<2x32xf32>
    %250 = arith.mulf %244, %248 : vector<2x32xf32>
    %251 = arith.addf %249, %250 : vector<2x32xf32>
    %252 = math.tanh %251 : vector<2x32xf32>
    %253 = arith.mulf %246, %252 : vector<2x32xf32>
    %254 = vector.extract_strided_slice %175 {offsets = [8, 0], sizes = [2, 128], strides = [1, 1]} : vector<16x128xf32> to vector<2x128xf32>
    %255 = arith.truncf %253 : vector<2x32xf32> to vector<2x32xbf16>
    %cst_41 = arith.constant dense<0.000000e+00> : vector<2x128xf32>
    %256 = tpu.matmul %255, %169, %cst_41 {dimension_numbers = #tpu.dot_dimension_numbers<[1], [0], [0], [1], [0, 0, 1, 1], [], []>} : vector<2x32xbf16>, vector<32x128xbf16>, vector<2x128xf32> -> vector<2x128xf32>
    %257 = arith.addf %254, %256 : vector<2x128xf32>
    %258 = arith.negf %257 : vector<2x128xf32>
    %259 = math.exp %258 : vector<2x128xf32>
    %cst_42 = arith.constant 1.000000e+00 : f32
    %260 = vector.broadcast %cst_42 : f32 to vector<2x128xf32>
    %261 = arith.addf %260, %259 : vector<2x128xf32>
    %262 = arith.divf %260, %261 : vector<2x128xf32>
    %263 = vector.extract_strided_slice %262 {offsets = [0, 0], sizes = [2, 32], strides = [1, 1]} : vector<2x128xf32> to vector<2x32xf32>
    %264 = vector.extract_strided_slice %262 {offsets = [0, 32], sizes = [2, 32], strides = [1, 1]} : vector<2x128xf32> to vector<2x32xf32>
    %265 = vector.extract_strided_slice %262 {offsets = [0, 96], sizes = [2, 32], strides = [1, 1]} : vector<2x128xf32> to vector<2x32xf32>
    %266 = vector.extract_strided_slice %257 {offsets = [0, 64], sizes = [2, 32], strides = [1, 1]} : vector<2x128xf32> to vector<2x32xf32>
    %267 = math.tanh %266 : vector<2x32xf32>
    %268 = arith.mulf %264, %251 : vector<2x32xf32>
    %269 = arith.mulf %263, %267 : vector<2x32xf32>
    %270 = arith.addf %268, %269 : vector<2x32xf32>
    %271 = math.tanh %270 : vector<2x32xf32>
    %272 = arith.mulf %265, %271 : vector<2x32xf32>
    %273 = vector.extract_strided_slice %175 {offsets = [10, 0], sizes = [2, 128], strides = [1, 1]} : vector<16x128xf32> to vector<2x128xf32>
    %274 = arith.truncf %272 : vector<2x32xf32> to vector<2x32xbf16>
    %cst_43 = arith.constant dense<0.000000e+00> : vector<2x128xf32>
    %275 = tpu.matmul %274, %169, %cst_43 {dimension_numbers = #tpu.dot_dimension_numbers<[1], [0], [0], [1], [0, 0, 1, 1], [], []>} : vector<2x32xbf16>, vector<32x128xbf16>, vector<2x128xf32> -> vector<2x128xf32>
    %276 = arith.addf %273, %275 : vector<2x128xf32>
    %277 = arith.negf %276 : vector<2x128xf32>
    %278 = math.exp %277 : vector<2x128xf32>
    %cst_44 = arith.constant 1.000000e+00 : f32
    %279 = vector.broadcast %cst_44 : f32 to vector<2x128xf32>
    %280 = arith.addf %279, %278 : vector<2x128xf32>
    %281 = arith.divf %279, %280 : vector<2x128xf32>
    %282 = vector.extract_strided_slice %281 {offsets = [0, 0], sizes = [2, 32], strides = [1, 1]} : vector<2x128xf32> to vector<2x32xf32>
    %283 = vector.extract_strided_slice %281 {offsets = [0, 32], sizes = [2, 32], strides = [1, 1]} : vector<2x128xf32> to vector<2x32xf32>
    %284 = vector.extract_strided_slice %281 {offsets = [0, 96], sizes = [2, 32], strides = [1, 1]} : vector<2x128xf32> to vector<2x32xf32>
    %285 = vector.extract_strided_slice %276 {offsets = [0, 64], sizes = [2, 32], strides = [1, 1]} : vector<2x128xf32> to vector<2x32xf32>
    %286 = math.tanh %285 : vector<2x32xf32>
    %287 = arith.mulf %283, %270 : vector<2x32xf32>
    %288 = arith.mulf %282, %286 : vector<2x32xf32>
    %289 = arith.addf %287, %288 : vector<2x32xf32>
    %290 = math.tanh %289 : vector<2x32xf32>
    %291 = arith.mulf %284, %290 : vector<2x32xf32>
    %292 = vector.extract_strided_slice %175 {offsets = [12, 0], sizes = [2, 128], strides = [1, 1]} : vector<16x128xf32> to vector<2x128xf32>
    %293 = arith.truncf %291 : vector<2x32xf32> to vector<2x32xbf16>
    %cst_45 = arith.constant dense<0.000000e+00> : vector<2x128xf32>
    %294 = tpu.matmul %293, %169, %cst_45 {dimension_numbers = #tpu.dot_dimension_numbers<[1], [0], [0], [1], [0, 0, 1, 1], [], []>} : vector<2x32xbf16>, vector<32x128xbf16>, vector<2x128xf32> -> vector<2x128xf32>
    %295 = arith.addf %292, %294 : vector<2x128xf32>
    %296 = arith.negf %295 : vector<2x128xf32>
    %297 = math.exp %296 : vector<2x128xf32>
    %cst_46 = arith.constant 1.000000e+00 : f32
    %298 = vector.broadcast %cst_46 : f32 to vector<2x128xf32>
    %299 = arith.addf %298, %297 : vector<2x128xf32>
    %300 = arith.divf %298, %299 : vector<2x128xf32>
    %301 = vector.extract_strided_slice %300 {offsets = [0, 0], sizes = [2, 32], strides = [1, 1]} : vector<2x128xf32> to vector<2x32xf32>
    %302 = vector.extract_strided_slice %300 {offsets = [0, 32], sizes = [2, 32], strides = [1, 1]} : vector<2x128xf32> to vector<2x32xf32>
    %303 = vector.extract_strided_slice %300 {offsets = [0, 96], sizes = [2, 32], strides = [1, 1]} : vector<2x128xf32> to vector<2x32xf32>
    %304 = vector.extract_strided_slice %295 {offsets = [0, 64], sizes = [2, 32], strides = [1, 1]} : vector<2x128xf32> to vector<2x32xf32>
    %305 = math.tanh %304 : vector<2x32xf32>
    %306 = arith.mulf %302, %289 : vector<2x32xf32>
    %307 = arith.mulf %301, %305 : vector<2x32xf32>
    %308 = arith.addf %306, %307 : vector<2x32xf32>
    %309 = math.tanh %308 : vector<2x32xf32>
    %310 = arith.mulf %303, %309 : vector<2x32xf32>
    %311 = vector.extract_strided_slice %175 {offsets = [14, 0], sizes = [2, 128], strides = [1, 1]} : vector<16x128xf32> to vector<2x128xf32>
    %312 = arith.truncf %310 : vector<2x32xf32> to vector<2x32xbf16>
    %cst_47 = arith.constant dense<0.000000e+00> : vector<2x128xf32>
    %313 = tpu.matmul %312, %169, %cst_47 {dimension_numbers = #tpu.dot_dimension_numbers<[1], [0], [0], [1], [0, 0, 1, 1], [], []>} : vector<2x32xbf16>, vector<32x128xbf16>, vector<2x128xf32> -> vector<2x128xf32>
    %314 = arith.addf %311, %313 : vector<2x128xf32>
    %315 = arith.negf %314 : vector<2x128xf32>
    %316 = math.exp %315 : vector<2x128xf32>
    %cst_48 = arith.constant 1.000000e+00 : f32
    %317 = vector.broadcast %cst_48 : f32 to vector<2x128xf32>
    %318 = arith.addf %317, %316 : vector<2x128xf32>
    %319 = arith.divf %317, %318 : vector<2x128xf32>
    %320 = vector.extract_strided_slice %319 {offsets = [0, 0], sizes = [2, 32], strides = [1, 1]} : vector<2x128xf32> to vector<2x32xf32>
    %321 = vector.extract_strided_slice %319 {offsets = [0, 32], sizes = [2, 32], strides = [1, 1]} : vector<2x128xf32> to vector<2x32xf32>
    %322 = vector.extract_strided_slice %319 {offsets = [0, 96], sizes = [2, 32], strides = [1, 1]} : vector<2x128xf32> to vector<2x32xf32>
    %323 = vector.extract_strided_slice %314 {offsets = [0, 64], sizes = [2, 32], strides = [1, 1]} : vector<2x128xf32> to vector<2x32xf32>
    %324 = math.tanh %323 : vector<2x32xf32>
    %325 = arith.mulf %321, %308 : vector<2x32xf32>
    %326 = arith.mulf %320, %324 : vector<2x32xf32>
    %327 = arith.addf %325, %326 : vector<2x32xf32>
    %328 = math.tanh %327 : vector<2x32xf32>
    %329 = arith.mulf %322, %328 : vector<2x32xf32>
    %330 = tpu.concatenate %196, %215, %234, %253, %272, %291, %310, %329 in 0 : vector<2x32xf32>, vector<2x32xf32>, vector<2x32xf32>, vector<2x32xf32>, vector<2x32xf32>, vector<2x32xf32>, vector<2x32xf32>, vector<2x32xf32> -> vector<16x32xf32>
    %c2 = arith.constant 2 : index
    %c0_49 = arith.constant 0 : index
    %c0_50 = arith.constant 0 : index
    %331 = vector.load %arg1[%c2, %c0_49, %c0_50] : memref<4x64x128xbf16, #tpu.memory_space<vmem>>, vector<1x64x128xbf16>
    %332 = vector.shape_cast %331 : vector<1x64x128xbf16> to vector<64x128xbf16>
    %333 = vector.extract_strided_slice %332 {offsets = [0, 0], sizes = [32, 128], strides = [1, 1]} : vector<64x128xbf16> to vector<32x128xbf16>
    %334 = vector.extract_strided_slice %332 {offsets = [32, 0], sizes = [32, 128], strides = [1, 1]} : vector<64x128xbf16> to vector<32x128xbf16>
    %c2_51 = arith.constant 2 : index
    %c0_52 = arith.constant 0 : index
    %c0_53 = arith.constant 0 : index
    %335 = vector.load %arg2[%c2_51, %c0_52, %c0_53] : memref<4x1x128xf32, #tpu.memory_space<vmem>>, vector<1x1x128xf32>
    %336 = vector.shape_cast %335 : vector<1x1x128xf32> to vector<1x128xf32>
    %337 = arith.truncf %330 : vector<16x32xf32> to vector<16x32xbf16>
    %cst_54 = arith.constant dense<0.000000e+00> : vector<16x128xf32>
    %338 = tpu.matmul %337, %333, %cst_54 {dimension_numbers = #tpu.dot_dimension_numbers<[1], [0], [0], [1], [0, 0, 1, 1], [], []>} : vector<16x32xbf16>, vector<32x128xbf16>, vector<16x128xf32> -> vector<16x128xf32>
    %339 = vector.broadcast %336 : vector<1x128xf32> to vector<16x128xf32>
    %340 = arith.addf %338, %339 : vector<16x128xf32>
    %cst_55 = arith.constant 0.000000e+00 : f32
    %341 = vector.broadcast %cst_55 : f32 to vector<2x32xf32>
    %cst_56 = arith.constant 0.000000e+00 : f32
    %342 = vector.broadcast %cst_56 : f32 to vector<2x32xf32>
    %343 = vector.extract_strided_slice %340 {offsets = [0, 0], sizes = [2, 128], strides = [1, 1]} : vector<16x128xf32> to vector<2x128xf32>
    %344 = arith.truncf %341 : vector<2x32xf32> to vector<2x32xbf16>
    %cst_57 = arith.constant dense<0.000000e+00> : vector<2x128xf32>
    %345 = tpu.matmul %344, %334, %cst_57 {dimension_numbers = #tpu.dot_dimension_numbers<[1], [0], [0], [1], [0, 0, 1, 1], [], []>} : vector<2x32xbf16>, vector<32x128xbf16>, vector<2x128xf32> -> vector<2x128xf32>
    %346 = arith.addf %343, %345 : vector<2x128xf32>
    %347 = arith.negf %346 : vector<2x128xf32>
    %348 = math.exp %347 : vector<2x128xf32>
    %cst_58 = arith.constant 1.000000e+00 : f32
    %349 = vector.broadcast %cst_58 : f32 to vector<2x128xf32>
    %350 = arith.addf %349, %348 : vector<2x128xf32>
    %351 = arith.divf %349, %350 : vector<2x128xf32>
    %352 = vector.extract_strided_slice %351 {offsets = [0, 0], sizes = [2, 32], strides = [1, 1]} : vector<2x128xf32> to vector<2x32xf32>
    %353 = vector.extract_strided_slice %351 {offsets = [0, 32], sizes = [2, 32], strides = [1, 1]} : vector<2x128xf32> to vector<2x32xf32>
    %354 = vector.extract_strided_slice %351 {offsets = [0, 96], sizes = [2, 32], strides = [1, 1]} : vector<2x128xf32> to vector<2x32xf32>
    %355 = vector.extract_strided_slice %346 {offsets = [0, 64], sizes = [2, 32], strides = [1, 1]} : vector<2x128xf32> to vector<2x32xf32>
    %356 = math.tanh %355 : vector<2x32xf32>
    %357 = arith.mulf %353, %342 : vector<2x32xf32>
    %358 = arith.mulf %352, %356 : vector<2x32xf32>
    %359 = arith.addf %357, %358 : vector<2x32xf32>
    %360 = math.tanh %359 : vector<2x32xf32>
    %361 = arith.mulf %354, %360 : vector<2x32xf32>
    %362 = vector.extract_strided_slice %340 {offsets = [2, 0], sizes = [2, 128], strides = [1, 1]} : vector<16x128xf32> to vector<2x128xf32>
    %363 = arith.truncf %361 : vector<2x32xf32> to vector<2x32xbf16>
    %cst_59 = arith.constant dense<0.000000e+00> : vector<2x128xf32>
    %364 = tpu.matmul %363, %334, %cst_59 {dimension_numbers = #tpu.dot_dimension_numbers<[1], [0], [0], [1], [0, 0, 1, 1], [], []>} : vector<2x32xbf16>, vector<32x128xbf16>, vector<2x128xf32> -> vector<2x128xf32>
    %365 = arith.addf %362, %364 : vector<2x128xf32>
    %366 = arith.negf %365 : vector<2x128xf32>
    %367 = math.exp %366 : vector<2x128xf32>
    %cst_60 = arith.constant 1.000000e+00 : f32
    %368 = vector.broadcast %cst_60 : f32 to vector<2x128xf32>
    %369 = arith.addf %368, %367 : vector<2x128xf32>
    %370 = arith.divf %368, %369 : vector<2x128xf32>
    %371 = vector.extract_strided_slice %370 {offsets = [0, 0], sizes = [2, 32], strides = [1, 1]} : vector<2x128xf32> to vector<2x32xf32>
    %372 = vector.extract_strided_slice %370 {offsets = [0, 32], sizes = [2, 32], strides = [1, 1]} : vector<2x128xf32> to vector<2x32xf32>
    %373 = vector.extract_strided_slice %370 {offsets = [0, 96], sizes = [2, 32], strides = [1, 1]} : vector<2x128xf32> to vector<2x32xf32>
    %374 = vector.extract_strided_slice %365 {offsets = [0, 64], sizes = [2, 32], strides = [1, 1]} : vector<2x128xf32> to vector<2x32xf32>
    %375 = math.tanh %374 : vector<2x32xf32>
    %376 = arith.mulf %372, %359 : vector<2x32xf32>
    %377 = arith.mulf %371, %375 : vector<2x32xf32>
    %378 = arith.addf %376, %377 : vector<2x32xf32>
    %379 = math.tanh %378 : vector<2x32xf32>
    %380 = arith.mulf %373, %379 : vector<2x32xf32>
    %381 = vector.extract_strided_slice %340 {offsets = [4, 0], sizes = [2, 128], strides = [1, 1]} : vector<16x128xf32> to vector<2x128xf32>
    %382 = arith.truncf %380 : vector<2x32xf32> to vector<2x32xbf16>
    %cst_61 = arith.constant dense<0.000000e+00> : vector<2x128xf32>
    %383 = tpu.matmul %382, %334, %cst_61 {dimension_numbers = #tpu.dot_dimension_numbers<[1], [0], [0], [1], [0, 0, 1, 1], [], []>} : vector<2x32xbf16>, vector<32x128xbf16>, vector<2x128xf32> -> vector<2x128xf32>
    %384 = arith.addf %381, %383 : vector<2x128xf32>
    %385 = arith.negf %384 : vector<2x128xf32>
    %386 = math.exp %385 : vector<2x128xf32>
    %cst_62 = arith.constant 1.000000e+00 : f32
    %387 = vector.broadcast %cst_62 : f32 to vector<2x128xf32>
    %388 = arith.addf %387, %386 : vector<2x128xf32>
    %389 = arith.divf %387, %388 : vector<2x128xf32>
    %390 = vector.extract_strided_slice %389 {offsets = [0, 0], sizes = [2, 32], strides = [1, 1]} : vector<2x128xf32> to vector<2x32xf32>
    %391 = vector.extract_strided_slice %389 {offsets = [0, 32], sizes = [2, 32], strides = [1, 1]} : vector<2x128xf32> to vector<2x32xf32>
    %392 = vector.extract_strided_slice %389 {offsets = [0, 96], sizes = [2, 32], strides = [1, 1]} : vector<2x128xf32> to vector<2x32xf32>
    %393 = vector.extract_strided_slice %384 {offsets = [0, 64], sizes = [2, 32], strides = [1, 1]} : vector<2x128xf32> to vector<2x32xf32>
    %394 = math.tanh %393 : vector<2x32xf32>
    %395 = arith.mulf %391, %378 : vector<2x32xf32>
    %396 = arith.mulf %390, %394 : vector<2x32xf32>
    %397 = arith.addf %395, %396 : vector<2x32xf32>
    %398 = math.tanh %397 : vector<2x32xf32>
    %399 = arith.mulf %392, %398 : vector<2x32xf32>
    %400 = vector.extract_strided_slice %340 {offsets = [6, 0], sizes = [2, 128], strides = [1, 1]} : vector<16x128xf32> to vector<2x128xf32>
    %401 = arith.truncf %399 : vector<2x32xf32> to vector<2x32xbf16>
    %cst_63 = arith.constant dense<0.000000e+00> : vector<2x128xf32>
    %402 = tpu.matmul %401, %334, %cst_63 {dimension_numbers = #tpu.dot_dimension_numbers<[1], [0], [0], [1], [0, 0, 1, 1], [], []>} : vector<2x32xbf16>, vector<32x128xbf16>, vector<2x128xf32> -> vector<2x128xf32>
    %403 = arith.addf %400, %402 : vector<2x128xf32>
    %404 = arith.negf %403 : vector<2x128xf32>
    %405 = math.exp %404 : vector<2x128xf32>
    %cst_64 = arith.constant 1.000000e+00 : f32
    %406 = vector.broadcast %cst_64 : f32 to vector<2x128xf32>
    %407 = arith.addf %406, %405 : vector<2x128xf32>
    %408 = arith.divf %406, %407 : vector<2x128xf32>
    %409 = vector.extract_strided_slice %408 {offsets = [0, 0], sizes = [2, 32], strides = [1, 1]} : vector<2x128xf32> to vector<2x32xf32>
    %410 = vector.extract_strided_slice %408 {offsets = [0, 32], sizes = [2, 32], strides = [1, 1]} : vector<2x128xf32> to vector<2x32xf32>
    %411 = vector.extract_strided_slice %408 {offsets = [0, 96], sizes = [2, 32], strides = [1, 1]} : vector<2x128xf32> to vector<2x32xf32>
    %412 = vector.extract_strided_slice %403 {offsets = [0, 64], sizes = [2, 32], strides = [1, 1]} : vector<2x128xf32> to vector<2x32xf32>
    %413 = math.tanh %412 : vector<2x32xf32>
    %414 = arith.mulf %410, %397 : vector<2x32xf32>
    %415 = arith.mulf %409, %413 : vector<2x32xf32>
    %416 = arith.addf %414, %415 : vector<2x32xf32>
    %417 = math.tanh %416 : vector<2x32xf32>
    %418 = arith.mulf %411, %417 : vector<2x32xf32>
    %419 = vector.extract_strided_slice %340 {offsets = [8, 0], sizes = [2, 128], strides = [1, 1]} : vector<16x128xf32> to vector<2x128xf32>
    %420 = arith.truncf %418 : vector<2x32xf32> to vector<2x32xbf16>
    %cst_65 = arith.constant dense<0.000000e+00> : vector<2x128xf32>
    %421 = tpu.matmul %420, %334, %cst_65 {dimension_numbers = #tpu.dot_dimension_numbers<[1], [0], [0], [1], [0, 0, 1, 1], [], []>} : vector<2x32xbf16>, vector<32x128xbf16>, vector<2x128xf32> -> vector<2x128xf32>
    %422 = arith.addf %419, %421 : vector<2x128xf32>
    %423 = arith.negf %422 : vector<2x128xf32>
    %424 = math.exp %423 : vector<2x128xf32>
    %cst_66 = arith.constant 1.000000e+00 : f32
    %425 = vector.broadcast %cst_66 : f32 to vector<2x128xf32>
    %426 = arith.addf %425, %424 : vector<2x128xf32>
    %427 = arith.divf %425, %426 : vector<2x128xf32>
    %428 = vector.extract_strided_slice %427 {offsets = [0, 0], sizes = [2, 32], strides = [1, 1]} : vector<2x128xf32> to vector<2x32xf32>
    %429 = vector.extract_strided_slice %427 {offsets = [0, 32], sizes = [2, 32], strides = [1, 1]} : vector<2x128xf32> to vector<2x32xf32>
    %430 = vector.extract_strided_slice %427 {offsets = [0, 96], sizes = [2, 32], strides = [1, 1]} : vector<2x128xf32> to vector<2x32xf32>
    %431 = vector.extract_strided_slice %422 {offsets = [0, 64], sizes = [2, 32], strides = [1, 1]} : vector<2x128xf32> to vector<2x32xf32>
    %432 = math.tanh %431 : vector<2x32xf32>
    %433 = arith.mulf %429, %416 : vector<2x32xf32>
    %434 = arith.mulf %428, %432 : vector<2x32xf32>
    %435 = arith.addf %433, %434 : vector<2x32xf32>
    %436 = math.tanh %435 : vector<2x32xf32>
    %437 = arith.mulf %430, %436 : vector<2x32xf32>
    %438 = vector.extract_strided_slice %340 {offsets = [10, 0], sizes = [2, 128], strides = [1, 1]} : vector<16x128xf32> to vector<2x128xf32>
    %439 = arith.truncf %437 : vector<2x32xf32> to vector<2x32xbf16>
    %cst_67 = arith.constant dense<0.000000e+00> : vector<2x128xf32>
    %440 = tpu.matmul %439, %334, %cst_67 {dimension_numbers = #tpu.dot_dimension_numbers<[1], [0], [0], [1], [0, 0, 1, 1], [], []>} : vector<2x32xbf16>, vector<32x128xbf16>, vector<2x128xf32> -> vector<2x128xf32>
    %441 = arith.addf %438, %440 : vector<2x128xf32>
    %442 = arith.negf %441 : vector<2x128xf32>
    %443 = math.exp %442 : vector<2x128xf32>
    %cst_68 = arith.constant 1.000000e+00 : f32
    %444 = vector.broadcast %cst_68 : f32 to vector<2x128xf32>
    %445 = arith.addf %444, %443 : vector<2x128xf32>
    %446 = arith.divf %444, %445 : vector<2x128xf32>
    %447 = vector.extract_strided_slice %446 {offsets = [0, 0], sizes = [2, 32], strides = [1, 1]} : vector<2x128xf32> to vector<2x32xf32>
    %448 = vector.extract_strided_slice %446 {offsets = [0, 32], sizes = [2, 32], strides = [1, 1]} : vector<2x128xf32> to vector<2x32xf32>
    %449 = vector.extract_strided_slice %446 {offsets = [0, 96], sizes = [2, 32], strides = [1, 1]} : vector<2x128xf32> to vector<2x32xf32>
    %450 = vector.extract_strided_slice %441 {offsets = [0, 64], sizes = [2, 32], strides = [1, 1]} : vector<2x128xf32> to vector<2x32xf32>
    %451 = math.tanh %450 : vector<2x32xf32>
    %452 = arith.mulf %448, %435 : vector<2x32xf32>
    %453 = arith.mulf %447, %451 : vector<2x32xf32>
    %454 = arith.addf %452, %453 : vector<2x32xf32>
    %455 = math.tanh %454 : vector<2x32xf32>
    %456 = arith.mulf %449, %455 : vector<2x32xf32>
    %457 = vector.extract_strided_slice %340 {offsets = [12, 0], sizes = [2, 128], strides = [1, 1]} : vector<16x128xf32> to vector<2x128xf32>
    %458 = arith.truncf %456 : vector<2x32xf32> to vector<2x32xbf16>
    %cst_69 = arith.constant dense<0.000000e+00> : vector<2x128xf32>
    %459 = tpu.matmul %458, %334, %cst_69 {dimension_numbers = #tpu.dot_dimension_numbers<[1], [0], [0], [1], [0, 0, 1, 1], [], []>} : vector<2x32xbf16>, vector<32x128xbf16>, vector<2x128xf32> -> vector<2x128xf32>
    %460 = arith.addf %457, %459 : vector<2x128xf32>
    %461 = arith.negf %460 : vector<2x128xf32>
    %462 = math.exp %461 : vector<2x128xf32>
    %cst_70 = arith.constant 1.000000e+00 : f32
    %463 = vector.broadcast %cst_70 : f32 to vector<2x128xf32>
    %464 = arith.addf %463, %462 : vector<2x128xf32>
    %465 = arith.divf %463, %464 : vector<2x128xf32>
    %466 = vector.extract_strided_slice %465 {offsets = [0, 0], sizes = [2, 32], strides = [1, 1]} : vector<2x128xf32> to vector<2x32xf32>
    %467 = vector.extract_strided_slice %465 {offsets = [0, 32], sizes = [2, 32], strides = [1, 1]} : vector<2x128xf32> to vector<2x32xf32>
    %468 = vector.extract_strided_slice %465 {offsets = [0, 96], sizes = [2, 32], strides = [1, 1]} : vector<2x128xf32> to vector<2x32xf32>
    %469 = vector.extract_strided_slice %460 {offsets = [0, 64], sizes = [2, 32], strides = [1, 1]} : vector<2x128xf32> to vector<2x32xf32>
    %470 = math.tanh %469 : vector<2x32xf32>
    %471 = arith.mulf %467, %454 : vector<2x32xf32>
    %472 = arith.mulf %466, %470 : vector<2x32xf32>
    %473 = arith.addf %471, %472 : vector<2x32xf32>
    %474 = math.tanh %473 : vector<2x32xf32>
    %475 = arith.mulf %468, %474 : vector<2x32xf32>
    %476 = vector.extract_strided_slice %340 {offsets = [14, 0], sizes = [2, 128], strides = [1, 1]} : vector<16x128xf32> to vector<2x128xf32>
    %477 = arith.truncf %475 : vector<2x32xf32> to vector<2x32xbf16>
    %cst_71 = arith.constant dense<0.000000e+00> : vector<2x128xf32>
    %478 = tpu.matmul %477, %334, %cst_71 {dimension_numbers = #tpu.dot_dimension_numbers<[1], [0], [0], [1], [0, 0, 1, 1], [], []>} : vector<2x32xbf16>, vector<32x128xbf16>, vector<2x128xf32> -> vector<2x128xf32>
    %479 = arith.addf %476, %478 : vector<2x128xf32>
    %480 = arith.negf %479 : vector<2x128xf32>
    %481 = math.exp %480 : vector<2x128xf32>
    %cst_72 = arith.constant 1.000000e+00 : f32
    %482 = vector.broadcast %cst_72 : f32 to vector<2x128xf32>
    %483 = arith.addf %482, %481 : vector<2x128xf32>
    %484 = arith.divf %482, %483 : vector<2x128xf32>
    %485 = vector.extract_strided_slice %484 {offsets = [0, 0], sizes = [2, 32], strides = [1, 1]} : vector<2x128xf32> to vector<2x32xf32>
    %486 = vector.extract_strided_slice %484 {offsets = [0, 32], sizes = [2, 32], strides = [1, 1]} : vector<2x128xf32> to vector<2x32xf32>
    %487 = vector.extract_strided_slice %484 {offsets = [0, 96], sizes = [2, 32], strides = [1, 1]} : vector<2x128xf32> to vector<2x32xf32>
    %488 = vector.extract_strided_slice %479 {offsets = [0, 64], sizes = [2, 32], strides = [1, 1]} : vector<2x128xf32> to vector<2x32xf32>
    %489 = math.tanh %488 : vector<2x32xf32>
    %490 = arith.mulf %486, %473 : vector<2x32xf32>
    %491 = arith.mulf %485, %489 : vector<2x32xf32>
    %492 = arith.addf %490, %491 : vector<2x32xf32>
    %493 = math.tanh %492 : vector<2x32xf32>
    %494 = arith.mulf %487, %493 : vector<2x32xf32>
    %495 = tpu.concatenate %361, %380, %399, %418, %437, %456, %475, %494 in 0 : vector<2x32xf32>, vector<2x32xf32>, vector<2x32xf32>, vector<2x32xf32>, vector<2x32xf32>, vector<2x32xf32>, vector<2x32xf32>, vector<2x32xf32> -> vector<16x32xf32>
    %c3 = arith.constant 3 : index
    %c0_73 = arith.constant 0 : index
    %c0_74 = arith.constant 0 : index
    %496 = vector.load %arg1[%c3, %c0_73, %c0_74] : memref<4x64x128xbf16, #tpu.memory_space<vmem>>, vector<1x64x128xbf16>
    %497 = vector.shape_cast %496 : vector<1x64x128xbf16> to vector<64x128xbf16>
    %498 = vector.extract_strided_slice %497 {offsets = [0, 0], sizes = [32, 128], strides = [1, 1]} : vector<64x128xbf16> to vector<32x128xbf16>
    %499 = vector.extract_strided_slice %497 {offsets = [32, 0], sizes = [32, 128], strides = [1, 1]} : vector<64x128xbf16> to vector<32x128xbf16>
    %c3_75 = arith.constant 3 : index
    %c0_76 = arith.constant 0 : index
    %c0_77 = arith.constant 0 : index
    %500 = vector.load %arg2[%c3_75, %c0_76, %c0_77] : memref<4x1x128xf32, #tpu.memory_space<vmem>>, vector<1x1x128xf32>
    %501 = vector.shape_cast %500 : vector<1x1x128xf32> to vector<1x128xf32>
    %502 = arith.truncf %495 : vector<16x32xf32> to vector<16x32xbf16>
    %cst_78 = arith.constant dense<0.000000e+00> : vector<16x128xf32>
    %503 = tpu.matmul %502, %498, %cst_78 {dimension_numbers = #tpu.dot_dimension_numbers<[1], [0], [0], [1], [0, 0, 1, 1], [], []>} : vector<16x32xbf16>, vector<32x128xbf16>, vector<16x128xf32> -> vector<16x128xf32>
    %504 = vector.broadcast %501 : vector<1x128xf32> to vector<16x128xf32>
    %505 = arith.addf %503, %504 : vector<16x128xf32>
    %cst_79 = arith.constant 0.000000e+00 : f32
    %506 = vector.broadcast %cst_79 : f32 to vector<2x32xf32>
    %cst_80 = arith.constant 0.000000e+00 : f32
    %507 = vector.broadcast %cst_80 : f32 to vector<2x32xf32>
    %508 = vector.extract_strided_slice %505 {offsets = [0, 0], sizes = [2, 128], strides = [1, 1]} : vector<16x128xf32> to vector<2x128xf32>
    %509 = arith.truncf %506 : vector<2x32xf32> to vector<2x32xbf16>
    %cst_81 = arith.constant dense<0.000000e+00> : vector<2x128xf32>
    %510 = tpu.matmul %509, %499, %cst_81 {dimension_numbers = #tpu.dot_dimension_numbers<[1], [0], [0], [1], [0, 0, 1, 1], [], []>} : vector<2x32xbf16>, vector<32x128xbf16>, vector<2x128xf32> -> vector<2x128xf32>
    %511 = arith.addf %508, %510 : vector<2x128xf32>
    %512 = arith.negf %511 : vector<2x128xf32>
    %513 = math.exp %512 : vector<2x128xf32>
    %cst_82 = arith.constant 1.000000e+00 : f32
    %514 = vector.broadcast %cst_82 : f32 to vector<2x128xf32>
    %515 = arith.addf %514, %513 : vector<2x128xf32>
    %516 = arith.divf %514, %515 : vector<2x128xf32>
    %517 = vector.extract_strided_slice %516 {offsets = [0, 0], sizes = [2, 32], strides = [1, 1]} : vector<2x128xf32> to vector<2x32xf32>
    %518 = vector.extract_strided_slice %516 {offsets = [0, 32], sizes = [2, 32], strides = [1, 1]} : vector<2x128xf32> to vector<2x32xf32>
    %519 = vector.extract_strided_slice %516 {offsets = [0, 96], sizes = [2, 32], strides = [1, 1]} : vector<2x128xf32> to vector<2x32xf32>
    %520 = vector.extract_strided_slice %511 {offsets = [0, 64], sizes = [2, 32], strides = [1, 1]} : vector<2x128xf32> to vector<2x32xf32>
    %521 = math.tanh %520 : vector<2x32xf32>
    %522 = arith.mulf %518, %507 : vector<2x32xf32>
    %523 = arith.mulf %517, %521 : vector<2x32xf32>
    %524 = arith.addf %522, %523 : vector<2x32xf32>
    %525 = math.tanh %524 : vector<2x32xf32>
    %526 = arith.mulf %519, %525 : vector<2x32xf32>
    %527 = vector.extract_strided_slice %505 {offsets = [2, 0], sizes = [2, 128], strides = [1, 1]} : vector<16x128xf32> to vector<2x128xf32>
    %528 = arith.truncf %526 : vector<2x32xf32> to vector<2x32xbf16>
    %cst_83 = arith.constant dense<0.000000e+00> : vector<2x128xf32>
    %529 = tpu.matmul %528, %499, %cst_83 {dimension_numbers = #tpu.dot_dimension_numbers<[1], [0], [0], [1], [0, 0, 1, 1], [], []>} : vector<2x32xbf16>, vector<32x128xbf16>, vector<2x128xf32> -> vector<2x128xf32>
    %530 = arith.addf %527, %529 : vector<2x128xf32>
    %531 = arith.negf %530 : vector<2x128xf32>
    %532 = math.exp %531 : vector<2x128xf32>
    %cst_84 = arith.constant 1.000000e+00 : f32
    %533 = vector.broadcast %cst_84 : f32 to vector<2x128xf32>
    %534 = arith.addf %533, %532 : vector<2x128xf32>
    %535 = arith.divf %533, %534 : vector<2x128xf32>
    %536 = vector.extract_strided_slice %535 {offsets = [0, 0], sizes = [2, 32], strides = [1, 1]} : vector<2x128xf32> to vector<2x32xf32>
    %537 = vector.extract_strided_slice %535 {offsets = [0, 32], sizes = [2, 32], strides = [1, 1]} : vector<2x128xf32> to vector<2x32xf32>
    %538 = vector.extract_strided_slice %535 {offsets = [0, 96], sizes = [2, 32], strides = [1, 1]} : vector<2x128xf32> to vector<2x32xf32>
    %539 = vector.extract_strided_slice %530 {offsets = [0, 64], sizes = [2, 32], strides = [1, 1]} : vector<2x128xf32> to vector<2x32xf32>
    %540 = math.tanh %539 : vector<2x32xf32>
    %541 = arith.mulf %537, %524 : vector<2x32xf32>
    %542 = arith.mulf %536, %540 : vector<2x32xf32>
    %543 = arith.addf %541, %542 : vector<2x32xf32>
    %544 = math.tanh %543 : vector<2x32xf32>
    %545 = arith.mulf %538, %544 : vector<2x32xf32>
    %546 = vector.extract_strided_slice %505 {offsets = [4, 0], sizes = [2, 128], strides = [1, 1]} : vector<16x128xf32> to vector<2x128xf32>
    %547 = arith.truncf %545 : vector<2x32xf32> to vector<2x32xbf16>
    %cst_85 = arith.constant dense<0.000000e+00> : vector<2x128xf32>
    %548 = tpu.matmul %547, %499, %cst_85 {dimension_numbers = #tpu.dot_dimension_numbers<[1], [0], [0], [1], [0, 0, 1, 1], [], []>} : vector<2x32xbf16>, vector<32x128xbf16>, vector<2x128xf32> -> vector<2x128xf32>
    %549 = arith.addf %546, %548 : vector<2x128xf32>
    %550 = arith.negf %549 : vector<2x128xf32>
    %551 = math.exp %550 : vector<2x128xf32>
    %cst_86 = arith.constant 1.000000e+00 : f32
    %552 = vector.broadcast %cst_86 : f32 to vector<2x128xf32>
    %553 = arith.addf %552, %551 : vector<2x128xf32>
    %554 = arith.divf %552, %553 : vector<2x128xf32>
    %555 = vector.extract_strided_slice %554 {offsets = [0, 0], sizes = [2, 32], strides = [1, 1]} : vector<2x128xf32> to vector<2x32xf32>
    %556 = vector.extract_strided_slice %554 {offsets = [0, 32], sizes = [2, 32], strides = [1, 1]} : vector<2x128xf32> to vector<2x32xf32>
    %557 = vector.extract_strided_slice %554 {offsets = [0, 96], sizes = [2, 32], strides = [1, 1]} : vector<2x128xf32> to vector<2x32xf32>
    %558 = vector.extract_strided_slice %549 {offsets = [0, 64], sizes = [2, 32], strides = [1, 1]} : vector<2x128xf32> to vector<2x32xf32>
    %559 = math.tanh %558 : vector<2x32xf32>
    %560 = arith.mulf %556, %543 : vector<2x32xf32>
    %561 = arith.mulf %555, %559 : vector<2x32xf32>
    %562 = arith.addf %560, %561 : vector<2x32xf32>
    %563 = math.tanh %562 : vector<2x32xf32>
    %564 = arith.mulf %557, %563 : vector<2x32xf32>
    %565 = vector.extract_strided_slice %505 {offsets = [6, 0], sizes = [2, 128], strides = [1, 1]} : vector<16x128xf32> to vector<2x128xf32>
    %566 = arith.truncf %564 : vector<2x32xf32> to vector<2x32xbf16>
    %cst_87 = arith.constant dense<0.000000e+00> : vector<2x128xf32>
    %567 = tpu.matmul %566, %499, %cst_87 {dimension_numbers = #tpu.dot_dimension_numbers<[1], [0], [0], [1], [0, 0, 1, 1], [], []>} : vector<2x32xbf16>, vector<32x128xbf16>, vector<2x128xf32> -> vector<2x128xf32>
    %568 = arith.addf %565, %567 : vector<2x128xf32>
    %569 = arith.negf %568 : vector<2x128xf32>
    %570 = math.exp %569 : vector<2x128xf32>
    %cst_88 = arith.constant 1.000000e+00 : f32
    %571 = vector.broadcast %cst_88 : f32 to vector<2x128xf32>
    %572 = arith.addf %571, %570 : vector<2x128xf32>
    %573 = arith.divf %571, %572 : vector<2x128xf32>
    %574 = vector.extract_strided_slice %573 {offsets = [0, 0], sizes = [2, 32], strides = [1, 1]} : vector<2x128xf32> to vector<2x32xf32>
    %575 = vector.extract_strided_slice %573 {offsets = [0, 32], sizes = [2, 32], strides = [1, 1]} : vector<2x128xf32> to vector<2x32xf32>
    %576 = vector.extract_strided_slice %573 {offsets = [0, 96], sizes = [2, 32], strides = [1, 1]} : vector<2x128xf32> to vector<2x32xf32>
    %577 = vector.extract_strided_slice %568 {offsets = [0, 64], sizes = [2, 32], strides = [1, 1]} : vector<2x128xf32> to vector<2x32xf32>
    %578 = math.tanh %577 : vector<2x32xf32>
    %579 = arith.mulf %575, %562 : vector<2x32xf32>
    %580 = arith.mulf %574, %578 : vector<2x32xf32>
    %581 = arith.addf %579, %580 : vector<2x32xf32>
    %582 = math.tanh %581 : vector<2x32xf32>
    %583 = arith.mulf %576, %582 : vector<2x32xf32>
    %584 = vector.extract_strided_slice %505 {offsets = [8, 0], sizes = [2, 128], strides = [1, 1]} : vector<16x128xf32> to vector<2x128xf32>
    %585 = arith.truncf %583 : vector<2x32xf32> to vector<2x32xbf16>
    %cst_89 = arith.constant dense<0.000000e+00> : vector<2x128xf32>
    %586 = tpu.matmul %585, %499, %cst_89 {dimension_numbers = #tpu.dot_dimension_numbers<[1], [0], [0], [1], [0, 0, 1, 1], [], []>} : vector<2x32xbf16>, vector<32x128xbf16>, vector<2x128xf32> -> vector<2x128xf32>
    %587 = arith.addf %584, %586 : vector<2x128xf32>
    %588 = arith.negf %587 : vector<2x128xf32>
    %589 = math.exp %588 : vector<2x128xf32>
    %cst_90 = arith.constant 1.000000e+00 : f32
    %590 = vector.broadcast %cst_90 : f32 to vector<2x128xf32>
    %591 = arith.addf %590, %589 : vector<2x128xf32>
    %592 = arith.divf %590, %591 : vector<2x128xf32>
    %593 = vector.extract_strided_slice %592 {offsets = [0, 0], sizes = [2, 32], strides = [1, 1]} : vector<2x128xf32> to vector<2x32xf32>
    %594 = vector.extract_strided_slice %592 {offsets = [0, 32], sizes = [2, 32], strides = [1, 1]} : vector<2x128xf32> to vector<2x32xf32>
    %595 = vector.extract_strided_slice %592 {offsets = [0, 96], sizes = [2, 32], strides = [1, 1]} : vector<2x128xf32> to vector<2x32xf32>
    %596 = vector.extract_strided_slice %587 {offsets = [0, 64], sizes = [2, 32], strides = [1, 1]} : vector<2x128xf32> to vector<2x32xf32>
    %597 = math.tanh %596 : vector<2x32xf32>
    %598 = arith.mulf %594, %581 : vector<2x32xf32>
    %599 = arith.mulf %593, %597 : vector<2x32xf32>
    %600 = arith.addf %598, %599 : vector<2x32xf32>
    %601 = math.tanh %600 : vector<2x32xf32>
    %602 = arith.mulf %595, %601 : vector<2x32xf32>
    %603 = vector.extract_strided_slice %505 {offsets = [10, 0], sizes = [2, 128], strides = [1, 1]} : vector<16x128xf32> to vector<2x128xf32>
    %604 = arith.truncf %602 : vector<2x32xf32> to vector<2x32xbf16>
    %cst_91 = arith.constant dense<0.000000e+00> : vector<2x128xf32>
    %605 = tpu.matmul %604, %499, %cst_91 {dimension_numbers = #tpu.dot_dimension_numbers<[1], [0], [0], [1], [0, 0, 1, 1], [], []>} : vector<2x32xbf16>, vector<32x128xbf16>, vector<2x128xf32> -> vector<2x128xf32>
    %606 = arith.addf %603, %605 : vector<2x128xf32>
    %607 = arith.negf %606 : vector<2x128xf32>
    %608 = math.exp %607 : vector<2x128xf32>
    %cst_92 = arith.constant 1.000000e+00 : f32
    %609 = vector.broadcast %cst_92 : f32 to vector<2x128xf32>
    %610 = arith.addf %609, %608 : vector<2x128xf32>
    %611 = arith.divf %609, %610 : vector<2x128xf32>
    %612 = vector.extract_strided_slice %611 {offsets = [0, 0], sizes = [2, 32], strides = [1, 1]} : vector<2x128xf32> to vector<2x32xf32>
    %613 = vector.extract_strided_slice %611 {offsets = [0, 32], sizes = [2, 32], strides = [1, 1]} : vector<2x128xf32> to vector<2x32xf32>
    %614 = vector.extract_strided_slice %611 {offsets = [0, 96], sizes = [2, 32], strides = [1, 1]} : vector<2x128xf32> to vector<2x32xf32>
    %615 = vector.extract_strided_slice %606 {offsets = [0, 64], sizes = [2, 32], strides = [1, 1]} : vector<2x128xf32> to vector<2x32xf32>
    %616 = math.tanh %615 : vector<2x32xf32>
    %617 = arith.mulf %613, %600 : vector<2x32xf32>
    %618 = arith.mulf %612, %616 : vector<2x32xf32>
    %619 = arith.addf %617, %618 : vector<2x32xf32>
    %620 = math.tanh %619 : vector<2x32xf32>
    %621 = arith.mulf %614, %620 : vector<2x32xf32>
    %622 = vector.extract_strided_slice %505 {offsets = [12, 0], sizes = [2, 128], strides = [1, 1]} : vector<16x128xf32> to vector<2x128xf32>
    %623 = arith.truncf %621 : vector<2x32xf32> to vector<2x32xbf16>
    %cst_93 = arith.constant dense<0.000000e+00> : vector<2x128xf32>
    %624 = tpu.matmul %623, %499, %cst_93 {dimension_numbers = #tpu.dot_dimension_numbers<[1], [0], [0], [1], [0, 0, 1, 1], [], []>} : vector<2x32xbf16>, vector<32x128xbf16>, vector<2x128xf32> -> vector<2x128xf32>
    %625 = arith.addf %622, %624 : vector<2x128xf32>
    %626 = arith.negf %625 : vector<2x128xf32>
    %627 = math.exp %626 : vector<2x128xf32>
    %cst_94 = arith.constant 1.000000e+00 : f32
    %628 = vector.broadcast %cst_94 : f32 to vector<2x128xf32>
    %629 = arith.addf %628, %627 : vector<2x128xf32>
    %630 = arith.divf %628, %629 : vector<2x128xf32>
    %631 = vector.extract_strided_slice %630 {offsets = [0, 0], sizes = [2, 32], strides = [1, 1]} : vector<2x128xf32> to vector<2x32xf32>
    %632 = vector.extract_strided_slice %630 {offsets = [0, 32], sizes = [2, 32], strides = [1, 1]} : vector<2x128xf32> to vector<2x32xf32>
    %633 = vector.extract_strided_slice %630 {offsets = [0, 96], sizes = [2, 32], strides = [1, 1]} : vector<2x128xf32> to vector<2x32xf32>
    %634 = vector.extract_strided_slice %625 {offsets = [0, 64], sizes = [2, 32], strides = [1, 1]} : vector<2x128xf32> to vector<2x32xf32>
    %635 = math.tanh %634 : vector<2x32xf32>
    %636 = arith.mulf %632, %619 : vector<2x32xf32>
    %637 = arith.mulf %631, %635 : vector<2x32xf32>
    %638 = arith.addf %636, %637 : vector<2x32xf32>
    %639 = math.tanh %638 : vector<2x32xf32>
    %640 = arith.mulf %633, %639 : vector<2x32xf32>
    %641 = vector.extract_strided_slice %505 {offsets = [14, 0], sizes = [2, 128], strides = [1, 1]} : vector<16x128xf32> to vector<2x128xf32>
    %642 = arith.truncf %640 : vector<2x32xf32> to vector<2x32xbf16>
    %cst_95 = arith.constant dense<0.000000e+00> : vector<2x128xf32>
    %643 = tpu.matmul %642, %499, %cst_95 {dimension_numbers = #tpu.dot_dimension_numbers<[1], [0], [0], [1], [0, 0, 1, 1], [], []>} : vector<2x32xbf16>, vector<32x128xbf16>, vector<2x128xf32> -> vector<2x128xf32>
    %644 = arith.addf %641, %643 : vector<2x128xf32>
    %645 = arith.negf %644 : vector<2x128xf32>
    %646 = math.exp %645 : vector<2x128xf32>
    %cst_96 = arith.constant 1.000000e+00 : f32
    %647 = vector.broadcast %cst_96 : f32 to vector<2x128xf32>
    %648 = arith.addf %647, %646 : vector<2x128xf32>
    %649 = arith.divf %647, %648 : vector<2x128xf32>
    %650 = vector.extract_strided_slice %649 {offsets = [0, 0], sizes = [2, 32], strides = [1, 1]} : vector<2x128xf32> to vector<2x32xf32>
    %651 = vector.extract_strided_slice %649 {offsets = [0, 32], sizes = [2, 32], strides = [1, 1]} : vector<2x128xf32> to vector<2x32xf32>
    %652 = vector.extract_strided_slice %649 {offsets = [0, 96], sizes = [2, 32], strides = [1, 1]} : vector<2x128xf32> to vector<2x32xf32>
    %653 = vector.extract_strided_slice %644 {offsets = [0, 64], sizes = [2, 32], strides = [1, 1]} : vector<2x128xf32> to vector<2x32xf32>
    %654 = math.tanh %653 : vector<2x32xf32>
    %655 = arith.mulf %651, %638 : vector<2x32xf32>
    %656 = arith.mulf %650, %654 : vector<2x32xf32>
    %657 = arith.addf %655, %656 : vector<2x32xf32>
    %658 = math.tanh %657 : vector<2x32xf32>
    %659 = arith.mulf %652, %658 : vector<2x32xf32>
    %660 = tpu.concatenate %526, %545, %564, %583, %602, %621, %640, %659 in 0 : vector<2x32xf32>, vector<2x32xf32>, vector<2x32xf32>, vector<2x32xf32>, vector<2x32xf32>, vector<2x32xf32>, vector<2x32xf32>, vector<2x32xf32> -> vector<16x32xf32>
    %c0_97 = arith.constant 0 : index
    %c0_98 = arith.constant 0 : index
    %661 = vector.load %arg3[%c0_97, %c0_98] : memref<1x32xf32, #tpu.memory_space<vmem>>, vector<1x32xf32>
    %662 = vector.shape_cast %661 : vector<1x32xf32> to vector<1x32xf32>
    %663 = vector.broadcast %662 : vector<1x32xf32> to vector<16x32xf32>
    %c0_99 = arith.constant 0 : index
    %c0_100 = arith.constant 0 : index
    %664 = memref.load %arg4[%c0_99, %c0_100] : memref<1x1xf32, #tpu.memory_space<smem>>
    %665 = arith.mulf %660, %663 : vector<16x32xf32>
    %cst_101 = arith.constant dense<0.000000e+00> : vector<16xf32>
    %666 = vector.multi_reduction <add>, %665, %cst_101 [1] : vector<16x32xf32> to vector<16xf32>
    %667 = vector.shape_cast %666 : vector<16xf32> to vector<16x1xf32>
    %668 = vector.broadcast %664 : f32 to vector<16x1xf32>
    %669 = arith.addf %667, %668 : vector<16x1xf32>
    %cst_102 = arith.constant dense<0xFF800000> : vector<1xf32>
    %670 = vector.multi_reduction <maximumf>, %669, %cst_102 [0] : vector<16x1xf32> to vector<1xf32>
    %671 = vector.shape_cast %670 : vector<1xf32> to vector<1x1xf32>
    %672 = vector.broadcast %671 : vector<1x1xf32> to vector<16x1xf32>
    %673 = arith.subf %669, %672 : vector<16x1xf32>
    %674 = math.exp %673 : vector<16x1xf32>
    %cst_103 = arith.constant 0.000000e+00 : f32
    %675 = vector.broadcast %cst_103 : f32 to vector<2x32xf32>
    %cst_104 = arith.constant 0.000000e+00 : f32
    %676 = vector.broadcast %cst_104 : f32 to vector<2x1xf32>
    %677 = vector.extract_strided_slice %674 {offsets = [0, 0], sizes = [2, 1], strides = [1, 1]} : vector<16x1xf32> to vector<2x1xf32>
    %678 = arith.addf %676, %677 : vector<2x1xf32>
    %679 = vector.broadcast %677 : vector<2x1xf32> to vector<2x32xf32>
    %680 = arith.mulf %679, %526 : vector<2x32xf32>
    %681 = arith.addf %675, %680 : vector<2x32xf32>
    %682 = vector.extract_strided_slice %674 {offsets = [2, 0], sizes = [2, 1], strides = [1, 1]} : vector<16x1xf32> to vector<2x1xf32>
    %683 = arith.addf %678, %682 : vector<2x1xf32>
    %684 = vector.broadcast %682 : vector<2x1xf32> to vector<2x32xf32>
    %685 = arith.mulf %684, %545 : vector<2x32xf32>
    %686 = arith.addf %681, %685 : vector<2x32xf32>
    %687 = vector.extract_strided_slice %674 {offsets = [4, 0], sizes = [2, 1], strides = [1, 1]} : vector<16x1xf32> to vector<2x1xf32>
    %688 = arith.addf %683, %687 : vector<2x1xf32>
    %689 = vector.broadcast %687 : vector<2x1xf32> to vector<2x32xf32>
    %690 = arith.mulf %689, %564 : vector<2x32xf32>
    %691 = arith.addf %686, %690 : vector<2x32xf32>
    %692 = vector.extract_strided_slice %674 {offsets = [6, 0], sizes = [2, 1], strides = [1, 1]} : vector<16x1xf32> to vector<2x1xf32>
    %693 = arith.addf %688, %692 : vector<2x1xf32>
    %694 = vector.broadcast %692 : vector<2x1xf32> to vector<2x32xf32>
    %695 = arith.mulf %694, %583 : vector<2x32xf32>
    %696 = arith.addf %691, %695 : vector<2x32xf32>
    %697 = vector.extract_strided_slice %674 {offsets = [8, 0], sizes = [2, 1], strides = [1, 1]} : vector<16x1xf32> to vector<2x1xf32>
    %698 = arith.addf %693, %697 : vector<2x1xf32>
    %699 = vector.broadcast %697 : vector<2x1xf32> to vector<2x32xf32>
    %700 = arith.mulf %699, %602 : vector<2x32xf32>
    %701 = arith.addf %696, %700 : vector<2x32xf32>
    %702 = vector.extract_strided_slice %674 {offsets = [10, 0], sizes = [2, 1], strides = [1, 1]} : vector<16x1xf32> to vector<2x1xf32>
    %703 = arith.addf %698, %702 : vector<2x1xf32>
    %704 = vector.broadcast %702 : vector<2x1xf32> to vector<2x32xf32>
    %705 = arith.mulf %704, %621 : vector<2x32xf32>
    %706 = arith.addf %701, %705 : vector<2x32xf32>
    %707 = vector.extract_strided_slice %674 {offsets = [12, 0], sizes = [2, 1], strides = [1, 1]} : vector<16x1xf32> to vector<2x1xf32>
    %708 = arith.addf %703, %707 : vector<2x1xf32>
    %709 = vector.broadcast %707 : vector<2x1xf32> to vector<2x32xf32>
    %710 = arith.mulf %709, %640 : vector<2x32xf32>
    %711 = arith.addf %706, %710 : vector<2x32xf32>
    %712 = vector.extract_strided_slice %674 {offsets = [14, 0], sizes = [2, 1], strides = [1, 1]} : vector<16x1xf32> to vector<2x1xf32>
    %713 = arith.addf %708, %712 : vector<2x1xf32>
    %714 = vector.broadcast %712 : vector<2x1xf32> to vector<2x32xf32>
    %715 = arith.mulf %714, %659 : vector<2x32xf32>
    %716 = arith.addf %711, %715 : vector<2x32xf32>
    %717 = tpu.reciprocal %713 {approx = true} : vector<2x1xf32> -> vector<2x1xf32>
    %718 = vector.broadcast %717 : vector<2x1xf32> to vector<2x32xf32>
    %719 = arith.mulf %716, %718 : vector<2x32xf32>
    %c0_105 = arith.constant 0 : index
    %c0_106 = arith.constant 0 : index
    %720 = vector.load %arg5[%c0_105, %c0_106] : memref<2x32xf32, #tpu.memory_space<vmem>>, vector<2x32xf32>
    tpu.vector_store %arg5[%c0_105, %c0_106], %719 {strides = array<i32>} : memref<2x32xf32, #tpu.memory_space<vmem>>, vector<2x32xf32>,
    return
  }
}

</mosaic_0001>

<bundles_post_ra>
// kernel: hierarchical_lstm_attention_forward.1
= control target key start
LH: loop header
LB: loop body
LE: loop exit
PB: predicated region body
PF: predicated region fallthrough
CT: control target
= control target key end

     0   :  { %11 = vsyncpa [#allocation4], 0  ;;  %s3322_s0 = inlined_call_operand.vmem [shape: f32[16,32], index: 0, kind: input, shape index: {}]   ;;  %s3323_s1 = inlined_call_operand.hbm [shape: bf16[4,64,128], index: 1, kind: input, shape index: {}]   ;;  %s3324_s2 = inlined_call_operand.vmem [shape: f32[4,1,128], index: 2, kind: input, shape index: {}]   ;;  %s3325_s3 = inlined_call_operand.vmem [shape: f32[1,32], index: 3, kind: input, shape index: {}]   ;;  %s3326_s4 = inlined_call_operand.<no memory space> [shape: f32[1,1], index: 4, kind: input, shape index: {}]   ;;  %s3327_s5 = inlined_call_operand.hbm [shape: f32[2,32], index: 5, kind: output, shape index: {}]  }
   0x1   :  { %12 = vsyncpa [#allocation5], 0  ;;  %s19_s20 = sshll.u32 %s3323_s1, 4  ;;  %s2906_s21 = smov [#allocation3]   ;;  %s20_s20 = int_to_ptr.hbm [resolvable:$true] %s19_s20 }
   0x2   :  { %s21_s22 = sshll.u32 %s2906_s21, 4  ;;  %s2907_s23 = smov 64   ;;  %s22_s22 = int_to_ptr.vmem [resolvable:$true] %s21_s22 }
   0x3   :  { %s2908_s24 = smov 4  }
   0x4   :  { %27 = dma.hbm_to_vmem [thread:$0]  %s20_s20, 2048, %s22_s22, [#allocation4], %s2907_s23, %s2907_s23, %s2908_s24  }
   0x5   :  { %2902 = dma.done.wait [#allocation4], 2048  }
   0x6   :  { %2903 = vsyncadd [#allocation4], 4294965248  ;;  %v2909_v0 = vmov 0   ;;  %v2564_v1 = vld [vmem:[#allocation3 + $0x8] sm:$0xff]  ;;  %v2566_v2 = vld [vmem:[#allocation3 + $0x18] sm:$0xff]  ;;  %vm66_vm0 = vcmask 261120  }
   0x7   :  { %2586 = vset.pattern.permute.xlu0 %v2909_v0  ;;  %v2563_v3 = vld [vmem:[#allocation3] sm:$0xff]  ;;  %v2565_v4 = vld [vmem:[#allocation3 + $0x10] sm:$0xff]  ;;  %76 = vmatpush.bf16.msra.mxu0 %v2564_v1  ;;  %v40_v6 = vld [vmem:[%s3322_s0 + $0x8] sm:$0xff]  ;;  %s2910_s29 = smov 32   ;;  %vm600_vm13 = vcmask 1041408   ;;  %vm602_vm14 = vcmask 1043456  }
   0x8   :  { %v39_v5 = vld [vmem:[%s3322_s0] sm:$0xff]  ;;  %105 = vmatpush.bf16.msra.mxu1 %v2566_v2  ;;  %163 = vmatpush.bf16.msra.mxu2 %v2566_v2  ;;  %s2911_s12 = smov 96   ;;  %s2422_s17 = sshll.u32 %s3327_s5, 4  ;;  %s2423_s17 = int_to_ptr.hbm [resolvable:$true] %s2422_s17 }
   0x9   :  { %228 = vmatpush.bf16.msra.mxu3 %v2566_v2  ;;  %v50_v7 = vpack.c.bf16 %v40_v6, %v39_v5  ;;  %v2960_v8 = vld [vmem:[%s3324_s2] ss:$0 sm:$0xff] }
   0xb   :  { %77 = vmatpush.bf16.msra.mxu0 %v2563_v3 }
   0xc   :  { %106 = vmatpush.bf16.msra.mxu1 %v2565_v4  ;;  %164 = vmatpush.bf16.msra.mxu2 %v2565_v4 }
   0xd   :  { %229 = vmatpush.bf16.msra.mxu3 %v2565_v4 }
   0xe   :  { %2440 = vmatmul.msk.bf16.vlgmr.msra.gmra.mxu0 %vm66_vm0, %v50_v7 }
   0xf   :  { %293 = vmatpush.bf16.msrb.mxu0 %v2566_v2  ;;  %107 = vmatmul.bf16.vlgmr.msra.gmra.mxu1 %v2909_v0 }
  0x10   :  { %358 = vmatpush.bf16.msrb.mxu1 %v2566_v2  ;;  %419 = vmatpush.bf16.msrb.mxu2 %v2566_v2 }
  0x11   :  { %484 = vmatpush.bf16.msrb.mxu3 %v2566_v2 }
  0x13   :  { %294 = vmatpush.bf16.msrb.mxu0 %v2565_v4 }
  0x14   :  { %359 = vmatpush.bf16.msrb.mxu1 %v2565_v4  ;;  %420 = vmatpush.bf16.msrb.mxu2 %v2565_v4 }
  0x15   :  { %485 = vmatpush.bf16.msrb.mxu3 %v2565_v4 }
  0x17   :  { %549 = vmatpush.bf16.msra.mxu0 %v2566_v2 }
  0x1b   :  { %550 = vmatpush.bf16.msra.mxu0 %v2565_v4 }
  0x8b   :  { %v79_v9 = vpop.f32.mrf.mxu0 }
  0x8c   :  { %v108_v10 = vpop.f32.mrf.mxu1  ;;  %v2963_v11 = vadd.f32 %v2960_v8, %v79_v9 }
  0x8e   :  { %v112_v12 = vadd.f32 %v108_v10, %v2963_v11 }
  0x90   :  { %2592 = vtanh.f32 %v112_v12  ;;  %v2449_v15 = vmul.f32 -1.442695, %v112_v12 }
  0x92   :  { %2594 = vpow2.f32 %v2449_v15 }
  0x94   :  { %v110_v13 = vpop.f32.mrf.mxu1 }
  0x96   :  { %v2593_v14 = vpop.eup %2592 }
  0x97   :  { %135 = vrot.lane.b32.xlu0 %v2593_v14, %s2907_s23 }
  0x98   :  { %v2595_v16 = vpop.eup %2594 }
  0x99   :  { %v116_v17 = vadd.f32 1.0, %v2595_v16 }
  0x9b   :  { %2596 = vrcp.f32 %v116_v17  ;;  %v128_v23 = vand.u32 2147483648, %v116_v17  ;;  %vm122_vm2 = vweird.f32 %v116_v17  ;;  %v126_v24 = vand.u32 2147483647, %v116_v17 }
  0x9d   :  { %v129_v26 = vor.u32 1.1754944e-38, %v128_v23  ;;  %vm127_vm4 = vcmp.eq.f32.partialorder %v126_v24, 8.507059e+37 }
  0xa1   :  { %v2597_v18 = vpop.eup %2596 }
  0xa2   :  { %v118_v19 = vmul.f32 %v2597_v18, %v116_v17  ;;  %vm123_vm1 = vweird.f32 %v2597_v18 }
  0xa3   :  { %vm124_vm3 = vmor %vm122_vm2, %vm123_vm1 }
  0xa4   :  { %v119_v20 = vsub.f32 1.0, %v118_v19 }
  0xa6   :  { %v120_v21 = vmul.f32 %v2597_v18, %v119_v20 }
  0xa8   :  { %v121_v22 = vadd.f32 %v2597_v18, %v120_v21 }
  0xaa   :  { %v125_v25 = vsel %vm124_vm3, %v2597_v18, %v121_v22 }
  0xab   :  { %v130_v28 = vsel %vm127_vm4, %v129_v26, %v125_v25  ;;  %vm604_vm4 = vcmask 1045504  }
  0xac   :  { %v133_v30 = vmul.f32 0.0, %v130_v28 }
 0x109   :  { %v136_v27 = vpop.permute.xlu0 %135 }
 0x10a   :  { %v138_v29 = vmul.f32 %v136_v27, %v130_v28 }
 0x10c   :  { %140 = vrot.lane.b32.xlu0 %v138_v29, %s2910_s29 }
 0x17e   :  { %v141_v31 = vpop.permute.xlu0 %140 }
 0x17f   :  { %v143_v32 = vadd.f32 %v141_v31, %v133_v30 }
 0x181   :  { %2598 = vtanh.f32 %v143_v32  ;;  %v195_v58 = vrot.slane %v143_v32, 6 }
 0x187   :  { %v2599_v33 = vpop.eup %2598 }
 0x188   :  { %146 = vrot.lane.b32.xlu1 %v2599_v33, %s2907_s23 }
 0x1fa   :  { %v147_v34 = vpop.permute.xlu1 %146 }
 0x1fb   :  { %v2969_v35 = vmul.f32 %v147_v34, %v130_v28 }
 0x1fd   :  { %v150_v36 = vpack.c.bf16 %v2969_v35, %v2969_v35 }
 0x1ff   :  { %152 = vrot.lane.b32.xlu1 %v150_v36, %s2910_s29 }
 0x271   :  { %v153_v37 = vpop.permute.xlu1 %152 }
 0x272   :  { %2450 = vmatmul.msk.bf16.vlgmr.msra.gmra.mxu2 %vm66_vm0, %v153_v37 }
 0x2f5   :  { %v166_v38 = vpop.f32.mrf.mxu2 }
 0x2f6   :  { %v171_v39 = vrot.slane %v166_v38, 6 }
 0x2f8   :  { %v173_v40 = vadd.f32 %v171_v39, %v2963_v11 }
 0x2fa   :  { %2600 = vtanh.f32 %v173_v40  ;;  %v2451_v43 = vmul.f32 -1.442695, %v173_v40  ;;  %v81_v40 = vpop.f32.mrf.mxu0 }
 0x2fc   :  { %2602 = vpow2.f32 %v2451_v43 }
 0x2fd   :  { %v168_v41 = vpop.f32.mrf.mxu2 }
 0x300   :  { %v2601_v42 = vpop.eup %2600 }
 0x301   :  { %199 = vrot.lane.b32.xlu2 %v2601_v42, %s2907_s23 }
 0x302   :  { %v2603_v44 = vpop.eup %2602 }
 0x303   :  { %v177_v45 = vadd.f32 1.0, %v2603_v44 }
 0x305   :  { %2604 = vrcp.f32 %v177_v45  ;;  %v189_v51 = vand.u32 2147483648, %v177_v45  ;;  %vm183_vm6 = vweird.f32 %v177_v45  ;;  %v187_v52 = vand.u32 2147483647, %v177_v45 }
 0x307   :  { %v190_v54 = vor.u32 1.1754944e-38, %v189_v51  ;;  %vm188_vm8 = vcmp.eq.f32.partialorder %v187_v52, 8.507059e+37 }
 0x30b   :  { %v2605_v46 = vpop.eup %2604 }
 0x30c   :  { %v179_v47 = vmul.f32 %v2605_v46, %v177_v45  ;;  %vm184_vm5 = vweird.f32 %v2605_v46 }
 0x30d   :  { %vm185_vm7 = vmor %vm183_vm6, %vm184_vm5 }
 0x30e   :  { %v180_v48 = vsub.f32 1.0, %v179_v47 }
 0x310   :  { %v181_v49 = vmul.f32 %v2605_v46, %v180_v48 }
 0x312   :  { %v182_v50 = vadd.f32 %v2605_v46, %v181_v49 }
 0x314   :  { %v186_v53 = vsel %vm185_vm7, %v2605_v46, %v182_v50 }
 0x315   :  { %v191_v56 = vsel %vm188_vm8, %v190_v54, %v186_v53 }
 0x316   :  { %v197_v59 = vmul.f32 %v195_v58, %v191_v56 }
 0x35b   :  { %v200_v55 = vpop.permute.xlu2 %199 }
 0x35c   :  { %v202_v57 = vmul.f32 %v200_v55, %v191_v56 }
 0x35e   :  { %204 = vrot.lane.b32.xlu2 %v202_v57, %s2910_s29 }
 0x3b8   :  { %v205_v60 = vpop.permute.xlu2 %204 }
 0x3b9   :  { %v207_v61 = vadd.f32 %v205_v60, %v197_v59 }
 0x3bb   :  { %2606 = vtanh.f32 %v207_v61  ;;  %v260_v27 = vrot.slane %v207_v61, 6 }
 0x3c1   :  { %v2607_v62 = vpop.eup %2606 }
 0x3c2   :  { %210 = vrot.lane.b32.xlu0 %v2607_v62, %s2907_s23 }
 0x434   :  { %v211_v63 = vpop.permute.xlu0 %210 }
 0x435   :  { %v213_v1 = vmul.f32 %v211_v63, %v191_v56 }
 0x437   :  { %v214_v2 = vpack.c.bf16 %v213_v1, %v213_v1  ;;  %v601_v34 = vsel %vm600_vm13, %v2969_v35, %v213_v1 }
 0x439   :  { %v216_v3 = vrot.slane %v214_v2, 1 }
 0x43b   :  { %217 = vrot.lane.b32.xlu1 %v216_v3, %s2910_s29 }
 0x4ad   :  { %v218_v4 = vpop.permute.xlu1 %217 }
 0x4ae   :  { %2452 = vmatmul.msk.bf16.vlgmr.msra.gmra.mxu3 %vm66_vm0, %v218_v4 }
 0x531   :  { %v231_v5 = vpop.f32.mrf.mxu3 }
 0x532   :  { %v236_v6 = vrot.slane %v231_v5, 4 }
 0x534   :  { %v238_v7 = vadd.f32 %v236_v6, %v2963_v11 }
 0x536   :  { %2608 = vtanh.f32 %v238_v7  ;;  %v2453_v12 = vmul.f32 -1.442695, %v238_v7  ;;  %v3000_v7 = vadd.f32 %v2960_v8, %v81_v40 }
 0x538   :  { %2610 = vpow2.f32 %v2453_v12 }
 0x539   :  { %v233_v9 = vpop.f32.mrf.mxu3 }
 0x53c   :  { %v2609_v10 = vpop.eup %2608 }
 0x53d   :  { %264 = vrot.lane.b32.xlu2 %v2609_v10, %s2907_s23 }
 0x53e   :  { %v2611_v13 = vpop.eup %2610 }
 0x53f   :  { %v242_v14 = vadd.f32 1.0, %v2611_v13 }
 0x541   :  { %2612 = vrcp.f32 %v242_v14  ;;  %v254_v20 = vand.u32 2147483648, %v242_v14  ;;  %vm248_vm10 = vweird.f32 %v242_v14  ;;  %v252_v21 = vand.u32 2147483647, %v242_v14 }
 0x543   :  { %v255_v23 = vor.u32 1.1754944e-38, %v254_v20  ;;  %vm253_vm12 = vcmp.eq.f32.partialorder %v252_v21, 8.507059e+37 }
 0x547   :  { %v2613_v15 = vpop.eup %2612 }
 0x548   :  { %v244_v16 = vmul.f32 %v2613_v15, %v242_v14  ;;  %vm249_vm9 = vweird.f32 %v2613_v15 }
 0x549   :  { %vm250_vm11 = vmor %vm248_vm10, %vm249_vm9 }
 0x54a   :  { %v245_v17 = vsub.f32 1.0, %v244_v16 }
 0x54c   :  { %v246_v18 = vmul.f32 %v2613_v15, %v245_v17 }
 0x54e   :  { %v247_v19 = vadd.f32 %v2613_v15, %v246_v18 }
 0x550   :  { %v251_v22 = vsel %vm250_vm11, %v2613_v15, %v247_v19 }
 0x551   :  { %v256_v25 = vsel %vm253_vm12, %v255_v23, %v251_v22 }
 0x552   :  { %v262_v28 = vmul.f32 %v260_v27, %v256_v25 }
 0x597   :  { %v265_v24 = vpop.permute.xlu2 %264 }
 0x598   :  { %v267_v26 = vmul.f32 %v265_v24, %v256_v25 }
 0x59a   :  { %269 = vrot.lane.b32.xlu0 %v267_v26, %s2910_s29 }
 0x60c   :  { %v270_v29 = vpop.permute.xlu0 %269 }
 0x60d   :  { %v272_v30 = vadd.f32 %v270_v29, %v262_v28 }
 0x60f   :  { %2614 = vtanh.f32 %v272_v30  ;;  %v325_v59 = vrot.slane %v272_v30, 6 }
 0x615   :  { %v2615_v31 = vpop.eup %2614 }
 0x616   :  { %275 = vrot.lane.b32.xlu1 %v2615_v31, %s2907_s23 }
 0x688   :  { %v276_v32 = vpop.permute.xlu1 %275 }
 0x689   :  { %v278_v33 = vmul.f32 %v276_v32, %v256_v25 }
 0x68b   :  { %v279_v36 = vpack.c.bf16 %v278_v33, %v278_v33  ;;  %v603_v37 = vsel %vm602_vm14, %v601_v34, %v278_v33 }
 0x68d   :  { %v281_v38 = vrot.slane %v279_v36, 2 }
 0x68f   :  { %282 = vrot.lane.b32.xlu2 %v281_v38, %s2910_s29 }
 0x6e9   :  { %v283_v39 = vpop.permute.xlu2 %282 }
 0x6ea   :  { %2454 = vmatmul.msk.bf16.vlgmr.msrb.gmra.mxu0 %vm66_vm0, %v283_v39 }
 0x767   :  { %v296_v41 = vpop.f32.mrf.mxu0 }
 0x768   :  { %v301_v42 = vrot.slane %v296_v41, 2 }
 0x76a   :  { %v303_v43 = vadd.f32 %v301_v42, %v2963_v11 }
 0x76c   :  { %2616 = vtanh.f32 %v303_v43  ;;  %v2455_v35 = vmul.f32 -1.442695, %v303_v43 }
 0x76e   :  { %2618 = vpow2.f32 %v2455_v35 }
 0x76f   :  { %v298_v44 = vpop.f32.mrf.mxu0 }
 0x772   :  { %v2617_v45 = vpop.eup %2616 }
 0x773   :  { %329 = vrot.lane.b32.xlu0 %v2617_v45, %s2907_s23 }
 0x774   :  { %v2619_v46 = vpop.eup %2618 }
 0x775   :  { %v307_v47 = vadd.f32 1.0, %v2619_v46 }
 0x777   :  { %2620 = vrcp.f32 %v307_v47  ;;  %v319_v53 = vand.u32 2147483648, %v307_v47  ;;  %vm313_vm1 = vweird.f32 %v307_v47  ;;  %v317_v54 = vand.u32 2147483647, %v307_v47 }
 0x779   :  { %v320_v55 = vor.u32 1.1754944e-38, %v319_v53  ;;  %vm318_vm3 = vcmp.eq.f32.partialorder %v317_v54, 8.507059e+37 }
 0x77d   :  { %v2621_v48 = vpop.eup %2620 }
 0x77e   :  { %v309_v49 = vmul.f32 %v2621_v48, %v307_v47  ;;  %vm314_vm15 = vweird.f32 %v2621_v48 }
 0x77f   :  { %vm315_vm2 = vmor %vm313_vm1, %vm314_vm15 }
 0x780   :  { %v310_v50 = vsub.f32 1.0, %v309_v49 }
 0x782   :  { %v311_v51 = vmul.f32 %v2621_v48, %v310_v50 }
 0x784   :  { %v312_v52 = vadd.f32 %v2621_v48, %v311_v51 }
 0x786   :  { %v316_v11 = vsel %vm315_vm2, %v2621_v48, %v312_v52 }
 0x787   :  { %v321_v57 = vsel %vm318_vm3, %v320_v55, %v316_v11 }
 0x788   :  { %v327_v60 = vmul.f32 %v325_v59, %v321_v57 }
 0x7e5   :  { %v330_v56 = vpop.permute.xlu0 %329 }
 0x7e6   :  { %v332_v58 = vmul.f32 %v330_v56, %v321_v57 }
 0x7e8   :  { %334 = vrot.lane.b32.xlu1 %v332_v58, %s2910_s29 }
 0x85a   :  { %v335_v61 = vpop.permute.xlu1 %334 }
 0x85b   :  { %v337_v62 = vadd.f32 %v335_v61, %v327_v60 }
 0x85d   :  { %2622 = vtanh.f32 %v337_v62  ;;  %v387_v28 = vrot.slane %v337_v62, 6 }
 0x863   :  { %v2623_v63 = vpop.eup %2622 }
 0x864   :  { %340 = vrot.lane.b32.xlu2 %v2623_v63, %s2907_s23 }
 0x8be   :  { %v341_v1 = vpop.permute.xlu2 %340 }
 0x8bf   :  { %v343_v2 = vmul.f32 %v341_v1, %v321_v57 }
 0x8c1   :  { %v344_v3 = vpack.c.bf16 %v343_v2, %v343_v2  ;;  %v2995_v4 = vsel %vm604_vm4, %v603_v37, %v343_v2 }
 0x8c3   :  { %v346_v5 = vrot.slane %v344_v3, 3 }
 0x8c5   :  { %347 = vrot.lane.b32.xlu0 %v346_v5, %s2910_s29 }
 0x937   :  { %v348_v6 = vpop.permute.xlu0 %347 }
 0x938   :  { %2456 = vmatmul.msk.bf16.vlgmr.msrb.gmra.mxu1 %vm66_vm0, %v348_v6 }
 0x9b5   :  { %v361_v9 = vpop.f32.mrf.mxu1 }
 0x9b6   :  { %v365_v10 = vadd.f32 %v361_v9, %v3000_v7 }
 0x9b8   :  { %2624 = vtanh.f32 %v365_v10  ;;  %v2457_v14 = vmul.f32 -1.442695, %v365_v10 }
 0x9ba   :  { %2626 = vpow2.f32 %v2457_v14 }
 0x9bd   :  { %v363_v12 = vpop.f32.mrf.mxu1 }
 0x9be   :  { %v2625_v13 = vpop.eup %2624 }
 0x9bf   :  { %391 = vrot.lane.b32.xlu1 %v2625_v13, %s2907_s23 }
 0x9c0   :  { %v2627_v15 = vpop.eup %2626 }
 0x9c1   :  { %v369_v16 = vadd.f32 1.0, %v2627_v15 }
 0x9c3   :  { %2628 = vrcp.f32 %v369_v16  ;;  %v381_v8 = vand.u32 2147483648, %v369_v16  ;;  %vm375_vm6 = vweird.f32 %v369_v16  ;;  %v379_v22 = vand.u32 2147483647, %v369_v16 }
 0x9c5   :  { %v382_v24 = vor.u32 1.1754944e-38, %v381_v8  ;;  %vm380_vm8 = vcmp.eq.f32.partialorder %v379_v22, 8.507059e+37 }
 0x9c9   :  { %v2629_v17 = vpop.eup %2628 }
 0x9ca   :  { %v371_v18 = vmul.f32 %v2629_v17, %v369_v16  ;;  %vm376_vm5 = vweird.f32 %v2629_v17 }
 0x9cb   :  { %vm377_vm7 = vmor %vm375_vm6, %vm376_vm5 }
 0x9cc   :  { %v372_v19 = vsub.f32 1.0, %v371_v18 }
 0x9ce   :  { %v373_v20 = vmul.f32 %v2629_v17, %v372_v19 }
 0x9d0   :  { %v374_v21 = vadd.f32 %v2629_v17, %v373_v20 }
 0x9d2   :  { %v378_v23 = vsel %vm377_vm7, %v2629_v17, %v374_v21 }
 0x9d3   :  { %v383_v26 = vsel %vm380_vm8, %v382_v24, %v378_v23 }
 0x9d4   :  { %v389_v29 = vmul.f32 %v387_v28, %v383_v26 }
 0xa31   :  { %v392_v25 = vpop.permute.xlu1 %391 }
 0xa32   :  { %v394_v27 = vmul.f32 %v392_v25, %v383_v26 }
 0xa34   :  { %396 = vrot.lane.b32.xlu2 %v394_v27, %s2910_s29 }
 0xa8e   :  { %v397_v30 = vpop.permute.xlu2 %396 }
 0xa8f   :  { %v399_v31 = vadd.f32 %v397_v30, %v389_v29 }
 0xa91   :  { %2630 = vtanh.f32 %v399_v31  ;;  %v451_v56 = vrot.slane %v399_v31, 6 }
 0xa97   :  { %v2631_v32 = vpop.eup %2630 }
 0xa98   :  { %402 = vrot.lane.b32.xlu0 %v2631_v32, %s2907_s23 }
 0xb0a   :  { %v403_v33 = vpop.permute.xlu0 %402 }
 0xb0b   :  { %v3006_v34 = vmul.f32 %v403_v33, %v383_v26 }
 0xb0d   :  { %v406_v36 = vpack.c.bf16 %v3006_v34, %v3006_v34 }
 0xb0f   :  { %408 = vrot.lane.b32.xlu1 %v406_v36, %s2910_s29 }
 0xb81   :  { %v409_v37 = vpop.permute.xlu1 %408 }
 0xb82   :  { %2458 = vmatmul.msk.bf16.vlgmr.msrb.gmra.mxu2 %vm66_vm0, %v409_v37 }
 0xc05   :  { %v422_v38 = vpop.f32.mrf.mxu2 }
 0xc06   :  { %v427_v39 = vrot.slane %v422_v38, 6 }
 0xc08   :  { %v429_v40 = vadd.f32 %v427_v39, %v3000_v7 }
 0xc0a   :  { %2632 = vtanh.f32 %v429_v40  ;;  %v2459_v43 = vmul.f32 -1.442695, %v429_v40 }
 0xc0c   :  { %2634 = vpow2.f32 %v2459_v43 }
 0xc0d   :  { %v424_v41 = vpop.f32.mrf.mxu2 }
 0xc10   :  { %v2633_v42 = vpop.eup %2632 }
 0xc11   :  { %455 = vrot.lane.b32.xlu2 %v2633_v42, %s2907_s23 }
 0xc12   :  { %v2635_v44 = vpop.eup %2634 }
 0xc13   :  { %v433_v45 = vadd.f32 1.0, %v2635_v44 }
 0xc15   :  { %2636 = vrcp.f32 %v433_v45  ;;  %v445_v50 = vand.u32 2147483648, %v433_v45  ;;  %vm439_vm10 = vweird.f32 %v433_v45  ;;  %v443_v51 = vand.u32 2147483647, %v433_v45 }
 0xc17   :  { %v446_v53 = vor.u32 1.1754944e-38, %v445_v50  ;;  %vm444_vm12 = vcmp.eq.f32.partialorder %v443_v51, 8.507059e+37 }
 0xc1b   :  { %v2637_v35 = vpop.eup %2636 }
 0xc1c   :  { %v435_v46 = vmul.f32 %v2637_v35, %v433_v45  ;;  %vm440_vm9 = vweird.f32 %v2637_v35 }
 0xc1d   :  { %vm441_vm11 = vmor %vm439_vm10, %vm440_vm9 }
 0xc1e   :  { %v436_v47 = vsub.f32 1.0, %v435_v46 }
 0xc20   :  { %v437_v48 = vmul.f32 %v2637_v35, %v436_v47 }
 0xc22   :  { %v438_v49 = vadd.f32 %v2637_v35, %v437_v48 }
 0xc24   :  { %v442_v52 = vsel %vm441_vm11, %v2637_v35, %v438_v49 }
 0xc25   :  { %v447_v11 = vsel %vm444_vm12, %v446_v53, %v442_v52 }
 0xc26   :  { %v453_v57 = vmul.f32 %v451_v56, %v447_v11 }
 0xc6b   :  { %v456_v54 = vpop.permute.xlu2 %455 }
 0xc6c   :  { %v458_v55 = vmul.f32 %v456_v54, %v447_v11 }
 0xc6e   :  { %460 = vrot.lane.b32.xlu0 %v458_v55, %s2910_s29 }
 0xce0   :  { %v461_v58 = vpop.permute.xlu0 %460 }
 0xce1   :  { %v463_v59 = vadd.f32 %v461_v58, %v453_v57 }
 0xce3   :  { %2638 = vtanh.f32 %v463_v59  ;;  %v516_v26 = vrot.slane %v463_v59, 6 }
 0xce9   :  { %v2639_v60 = vpop.eup %2638 }
 0xcea   :  { %466 = vrot.lane.b32.xlu1 %v2639_v60, %s2907_s23 }
 0xd5c   :  { %v467_v61 = vpop.permute.xlu1 %466 }
 0xd5d   :  { %v469_v62 = vmul.f32 %v467_v61, %v447_v11  ;;  %v2570_v61 = vld [vmem:[#allocation3 + $0x38] sm:$0xff] }
 0xd5e   :  { %674 = vmatpush.bf16.msra.mxu2 %v2570_v61  ;;  %732 = vmatpush.bf16.msra.mxu3 %v2570_v61 }
 0xd5f   :  { %v470_v63 = vpack.c.bf16 %v469_v62, %v469_v62  ;;  %v606_v33 = vsel %vm600_vm13, %v3006_v34, %v469_v62  ;;  %v2568_v62 = vld [vmem:[#allocation3 + $0x28] sm:$0xff]  ;;  %797 = vmatpush.bf16.msrb.mxu0 %v2570_v61 }
 0xd60   :  { %648 = vmatpush.bf16.msra.mxu1 %v2568_v62 }
 0xd61   :  { %v472_v1 = vrot.slane %v470_v63, 1  ;;  %v2569_v63 = vld [vmem:[#allocation3 + $0x30] sm:$0xff] }
 0xd62   :  { %675 = vmatpush.bf16.msra.mxu2 %v2569_v63  ;;  %733 = vmatpush.bf16.msra.mxu3 %v2569_v63 }
 0xd63   :  { %473 = vrot.lane.b32.xlu2 %v472_v1, %s2910_s29  ;;  %v2567_v1 = vld [vmem:[#allocation3 + $0x20] sm:$0xff]  ;;  %798 = vmatpush.bf16.msrb.mxu0 %v2569_v63 }
 0xd64   :  { %649 = vmatpush.bf16.msra.mxu1 %v2567_v1 }
 0xd65   :  { %676 = vmatmul.bf16.vlgmr.msra.gmra.mxu2 %v2909_v0 }
 0xd66   :  { %927 = vmatpush.bf16.msrb.mxu2 %v2570_v61 }
 0xd68   :  { %862 = vmatpush.bf16.msrb.mxu1 %v2570_v61 }
 0xd6a   :  { %928 = vmatpush.bf16.msrb.mxu2 %v2569_v63 }
 0xd6c   :  { %863 = vmatpush.bf16.msrb.mxu1 %v2569_v63 }
 0xdbd   :  { %v474_v2 = vpop.permute.xlu2 %473 }
 0xdbe   :  { %2460 = vmatmul.msk.bf16.vlgmr.msrb.gmra.mxu3 %vm66_vm0, %v474_v2 }
 0xdbf   :  { %988 = vmatpush.bf16.msrb.mxu3 %v2570_v61 }
 0xdc3   :  { %989 = vmatpush.bf16.msrb.mxu3 %v2569_v63 }
 0xe41   :  { %v487_v3 = vpop.f32.mrf.mxu3 }
 0xe42   :  { %v492_v5 = vrot.slane %v487_v3, 4 }
 0xe44   :  { %v494_v6 = vadd.f32 %v492_v5, %v3000_v7 }
 0xe46   :  { %2640 = vtanh.f32 %v494_v6  ;;  %v2461_v12 = vmul.f32 -1.442695, %v494_v6 }
 0xe48   :  { %2642 = vpow2.f32 %v2461_v12 }
 0xe49   :  { %v489_v9 = vpop.f32.mrf.mxu3 }
 0xe4a   :  { %v677_v9 = vpop.f32.mrf.mxu2 }
 0xe4c   :  { %v2641_v10 = vpop.eup %2640 }
 0xe4d   :  { %520 = vrot.lane.b32.xlu0 %v2641_v10, %s2907_s23 }
 0xe4e   :  { %v2643_v13 = vpop.eup %2642 }
 0xe4f   :  { %v498_v14 = vadd.f32 1.0, %v2643_v13  ;;  %v3042_v13 = vld [vmem:[%s3324_s2 + $0x1] ss:$0 sm:$0xff] }
 0xe51   :  { %2644 = vrcp.f32 %v498_v14  ;;  %v510_v20 = vand.u32 2147483648, %v498_v14  ;;  %vm504_vm1 = vweird.f32 %v498_v14  ;;  %v508_v21 = vand.u32 2147483647, %v498_v14 }
 0xe52   :  { %v679_v12 = vpop.f32.mrf.mxu2 }
 0xe53   :  { %v511_v22 = vor.u32 1.1754944e-38, %v510_v20  ;;  %vm509_vm3 = vcmp.eq.f32.partialorder %v508_v21, 8.507059e+37 }
 0xe57   :  { %v2645_v15 = vpop.eup %2644 }
 0xe58   :  { %v500_v16 = vmul.f32 %v2645_v15, %v498_v14  ;;  %vm505_vm15 = vweird.f32 %v2645_v15 }
 0xe59   :  { %vm506_vm2 = vmor %vm504_vm1, %vm505_vm15 }
 0xe5a   :  { %v501_v17 = vsub.f32 1.0, %v500_v16 }
 0xe5c   :  { %v502_v18 = vmul.f32 %v2645_v15, %v501_v17 }
 0xe5e   :  { %v503_v19 = vadd.f32 %v2645_v15, %v502_v18 }
 0xe60   :  { %v507_v8 = vsel %vm506_vm2, %v2645_v15, %v503_v19 }
 0xe61   :  { %v512_v24 = vsel %vm509_vm3, %v511_v22, %v507_v8 }
 0xe62   :  { %v518_v27 = vmul.f32 %v516_v26, %v512_v24 }
 0xebf   :  { %v521_v23 = vpop.permute.xlu0 %520 }
 0xec0   :  { %v523_v25 = vmul.f32 %v521_v23, %v512_v24 }
 0xec2   :  { %525 = vrot.lane.b32.xlu1 %v523_v25, %s2910_s29 }
 0xf34   :  { %v526_v28 = vpop.permute.xlu1 %525 }
 0xf35   :  { %v528_v29 = vadd.f32 %v526_v28, %v518_v27 }
 0xf37   :  { %2646 = vtanh.f32 %v528_v29  ;;  %v581_v56 = vrot.slane %v528_v29, 6 }
 0xf3d   :  { %v2647_v30 = vpop.eup %2646 }
 0xf3e   :  { %531 = vrot.lane.b32.xlu2 %v2647_v30, %s2907_s23 }
 0xf98   :  { %v532_v31 = vpop.permute.xlu2 %531 }
 0xf99   :  { %v534_v32 = vmul.f32 %v532_v31, %v512_v24 }
 0xf9b   :  { %v535_v36 = vpack.c.bf16 %v534_v32, %v534_v32  ;;  %v3025_v37 = vsel %vm602_vm14, %v606_v33, %v534_v32 }
 0xf9d   :  { %v537_v38 = vrot.slane %v535_v36, 2 }
 0xf9f   :  { %538 = vrot.lane.b32.xlu0 %v537_v38, %s2910_s29 }
0x1011   :  { %v539_v39 = vpop.permute.xlu0 %538 }
0x1012   :  { %2462 = vmatmul.msk.bf16.vlgmr.msra.gmra.mxu0 %vm66_vm0, %v539_v39 }
0x1013   :  { %1053 = vmatpush.bf16.msra.mxu0 %v2570_v61 }
0x1017   :  { %1054 = vmatpush.bf16.msra.mxu0 %v2569_v63 }
0x108f   :  { %v552_v40 = vpop.f32.mrf.mxu0 }
0x1090   :  { %v557_v41 = vrot.slane %v552_v40, 2 }
0x1092   :  { %v559_v42 = vadd.f32 %v557_v41, %v3000_v7 }
0x1094   :  { %2648 = vtanh.f32 %v559_v42  ;;  %v2463_v34 = vmul.f32 -1.442695, %v559_v42 }
0x1096   :  { %2650 = vpow2.f32 %v2463_v34 }
0x1097   :  { %v554_v43 = vpop.f32.mrf.mxu0 }
0x109a   :  { %v2649_v44 = vpop.eup %2648 }
0x109b   :  { %585 = vrot.lane.b32.xlu1 %v2649_v44, %s2907_s23 }
0x109c   :  { %v2651_v45 = vpop.eup %2650 }
0x109d   :  { %v563_v35 = vadd.f32 1.0, %v2651_v45 }
0x109f   :  { %2652 = vrcp.f32 %v563_v35  ;;  %v575_v51 = vand.u32 2147483648, %v563_v35  ;;  %vm569_vm6 = vweird.f32 %v563_v35  ;;  %v573_v52 = vand.u32 2147483647, %v563_v35 }
0x10a1   :  { %v576_v53 = vor.u32 1.1754944e-38, %v575_v51  ;;  %vm574_vm8 = vcmp.eq.f32.partialorder %v573_v52, 8.507059e+37 }
0x10a5   :  { %v2653_v46 = vpop.eup %2652 }
0x10a6   :  { %v565_v47 = vmul.f32 %v2653_v46, %v563_v35  ;;  %vm570_vm5 = vweird.f32 %v2653_v46 }
0x10a7   :  { %vm571_vm7 = vmor %vm569_vm6, %vm570_vm5 }
0x10a8   :  { %v566_v48 = vsub.f32 1.0, %v565_v47 }
0x10aa   :  { %v567_v49 = vmul.f32 %v2653_v46, %v566_v48 }
0x10ac   :  { %v568_v50 = vadd.f32 %v2653_v46, %v567_v49 }
0x10ae   :  { %v572_v7 = vsel %vm571_vm7, %v2653_v46, %v568_v50 }
0x10af   :  { %v577_v11 = vsel %vm574_vm8, %v576_v53, %v572_v7 }
0x10b0   :  { %v583_v57 = vmul.f32 %v581_v56, %v577_v11 }
0x110d   :  { %v586_v54 = vpop.permute.xlu1 %585 }
0x110e   :  { %v588_v55 = vmul.f32 %v586_v54, %v577_v11 }
0x1110   :  { %590 = vrot.lane.b32.xlu2 %v588_v55, %s2910_s29 }
0x116a   :  { %v591_v58 = vpop.permute.xlu2 %590 }
0x116b   :  { %v593_v59 = vadd.f32 %v591_v58, %v583_v57 }
0x116d   :  { %2654 = vtanh.f32 %v593_v59 }
0x1173   :  { %v2655_v60 = vpop.eup %2654 }
0x1174   :  { %596 = vrot.lane.b32.xlu0 %v2655_v60, %s2907_s23 }
0x11e6   :  { %v597_v2 = vpop.permute.xlu0 %596 }
0x11e7   :  { %v599_v3 = vmul.f32 %v597_v2, %v577_v11 }
0x11e9   :  { %v608_v5 = vsel %vm604_vm4, %v3025_v37, %v599_v3 }
0x11ea   :  { %v620_v6 = vpack.c.bf16 %v608_v5, %v2995_v4 }
0x11ec   :  { %625 = vrot.lane.b32.xlu1 %v620_v6, %s2910_s29 }
0x125e   :  { %v626_v10 = vpop.permute.xlu1 %625 }
0x125f   :  { %2473 = vmatmul.msk.bf16.vlgmr.msra.gmra.mxu1 %vm66_vm0, %v626_v10 }
0x1260   :  { %1118 = vmatpush.bf16.msra.mxu1 %v2570_v61 }
0x1264   :  { %1119 = vmatpush.bf16.msra.mxu1 %v2569_v63 }
0x12dc   :  { %v651_v14 = vpop.f32.mrf.mxu1 }
0x12dd   :  { %v3045_v15 = vadd.f32 %v3042_v13, %v651_v14 }
0x12df   :  { %v681_v4 = vadd.f32 %v677_v9, %v3045_v15 }
0x12e1   :  { %2656 = vtanh.f32 %v681_v4  ;;  %v2482_v17 = vmul.f32 -1.442695, %v681_v4 }
0x12e3   :  { %2658 = vpow2.f32 %v2482_v17 }
0x12e7   :  { %v2657_v16 = vpop.eup %2656 }
0x12e8   :  { %704 = vrot.lane.b32.xlu2 %v2657_v16, %s2907_s23 }
0x12e9   :  { %v2659_v18 = vpop.eup %2658 }
0x12ea   :  { %v685_v19 = vadd.f32 1.0, %v2659_v18 }
0x12ec   :  { %2660 = vrcp.f32 %v685_v19  ;;  %v697_v24 = vand.u32 2147483648, %v685_v19  ;;  %vm691_vm10 = vweird.f32 %v685_v19  ;;  %v695_v25 = vand.u32 2147483647, %v685_v19 }
0x12ee   :  { %v698_v27 = vor.u32 1.1754944e-38, %v697_v24  ;;  %vm696_vm12 = vcmp.eq.f32.partialorder %v695_v25, 8.507059e+37 }
0x12f2   :  { %v2661_v20 = vpop.eup %2660 }
0x12f3   :  { %v687_v21 = vmul.f32 %v2661_v20, %v685_v19  ;;  %vm692_vm9 = vweird.f32 %v2661_v20 }
0x12f4   :  { %vm693_vm11 = vmor %vm691_vm10, %vm692_vm9 }
0x12f5   :  { %v688_v8 = vsub.f32 1.0, %v687_v21 }
0x12f7   :  { %v689_v22 = vmul.f32 %v2661_v20, %v688_v8 }
0x12f9   :  { %v690_v23 = vadd.f32 %v2661_v20, %v689_v22 }
0x12fb   :  { %v694_v26 = vsel %vm693_vm11, %v2661_v20, %v690_v23 }
0x12fc   :  { %v699_v29 = vsel %vm696_vm12, %v698_v27, %v694_v26 }
0x12fd   :  { %v702_v31 = vmul.f32 0.0, %v699_v29 }
0x1342   :  { %v705_v28 = vpop.permute.xlu2 %704 }
0x1343   :  { %v707_v30 = vmul.f32 %v705_v28, %v699_v29 }
0x1345   :  { %709 = vrot.lane.b32.xlu0 %v707_v30, %s2910_s29 }
0x13b7   :  { %v710_v32 = vpop.permute.xlu0 %709 }
0x13b8   :  { %v712_v33 = vadd.f32 %v710_v32, %v702_v31 }
0x13ba   :  { %2662 = vtanh.f32 %v712_v33  ;;  %v764_v57 = vrot.slane %v712_v33, 6 }
0x13c0   :  { %v2663_v36 = vpop.eup %2662 }
0x13c1   :  { %715 = vrot.lane.b32.xlu1 %v2663_v36, %s2907_s23 }
0x1433   :  { %v716_v37 = vpop.permute.xlu1 %715 }
0x1434   :  { %v3051_v38 = vmul.f32 %v716_v37, %v699_v29 }
0x1436   :  { %v719_v39 = vpack.c.bf16 %v3051_v38, %v3051_v38 }
0x1438   :  { %721 = vrot.lane.b32.xlu2 %v719_v39, %s2910_s29 }
0x1492   :  { %v722_v40 = vpop.permute.xlu2 %721 }
0x1493   :  { %2483 = vmatmul.msk.bf16.vlgmr.msra.gmra.mxu3 %vm66_vm0, %v722_v40 }
0x1516   :  { %v735_v41 = vpop.f32.mrf.mxu3 }
0x1517   :  { %v740_v42 = vrot.slane %v735_v41, 6 }
0x1519   :  { %v742_v43 = vadd.f32 %v740_v42, %v3045_v15 }
0x151b   :  { %2664 = vtanh.f32 %v742_v43  ;;  %v2484_v45 = vmul.f32 -1.442695, %v742_v43  ;;  %v653_v43 = vpop.f32.mrf.mxu1 }
0x151d   :  { %2666 = vpow2.f32 %v2484_v45 }
0x151e   :  { %v737_v44 = vpop.f32.mrf.mxu3 }
0x1521   :  { %v2665_v34 = vpop.eup %2664 }
0x1522   :  { %768 = vrot.lane.b32.xlu0 %v2665_v34, %s2907_s23 }
0x1523   :  { %v2667_v35 = vpop.eup %2666 }
0x1524   :  { %v746_v46 = vadd.f32 1.0, %v2667_v35 }
0x1526   :  { %2668 = vrcp.f32 %v746_v46  ;;  %v758_v52 = vand.u32 2147483648, %v746_v46  ;;  %vm752_vm1 = vweird.f32 %v746_v46  ;;  %v756_v7 = vand.u32 2147483647, %v746_v46 }
0x1528   :  { %v759_v54 = vor.u32 1.1754944e-38, %v758_v52  ;;  %vm757_vm3 = vcmp.eq.f32.partialorder %v756_v7, 8.507059e+37 }
0x152c   :  { %v2669_v47 = vpop.eup %2668 }
0x152d   :  { %v748_v48 = vmul.f32 %v2669_v47, %v746_v46  ;;  %vm753_vm15 = vweird.f32 %v2669_v47 }
0x152e   :  { %vm754_vm2 = vmor %vm752_vm1, %vm753_vm15 }
0x152f   :  { %v749_v49 = vsub.f32 1.0, %v748_v48 }
0x1531   :  { %v750_v50 = vmul.f32 %v2669_v47, %v749_v49 }
0x1533   :  { %v751_v51 = vadd.f32 %v2669_v47, %v750_v50 }
0x1535   :  { %v755_v53 = vsel %vm754_vm2, %v2669_v47, %v751_v51 }
0x1536   :  { %v760_v55 = vsel %vm757_vm3, %v759_v54, %v755_v53 }
0x1537   :  { %v766_v58 = vmul.f32 %v764_v57, %v760_v55 }
0x1594   :  { %v769_v11 = vpop.permute.xlu0 %768 }
0x1595   :  { %v771_v56 = vmul.f32 %v769_v11, %v760_v55 }
0x1597   :  { %773 = vrot.lane.b32.xlu1 %v771_v56, %s2910_s29 }
0x1609   :  { %v774_v59 = vpop.permute.xlu1 %773 }
0x160a   :  { %v776_v60 = vadd.f32 %v774_v59, %v766_v58 }
0x160c   :  { %2670 = vtanh.f32 %v776_v60  ;;  %v829_v28 = vrot.slane %v776_v60, 6 }
0x1612   :  { %v2671_v61 = vpop.eup %2670 }
0x1613   :  { %779 = vrot.lane.b32.xlu2 %v2671_v61, %s2907_s23 }
0x166d   :  { %v780_v62 = vpop.permute.xlu2 %779 }
0x166e   :  { %v782_v63 = vmul.f32 %v780_v62, %v760_v55 }
0x1670   :  { %v783_v1 = vpack.c.bf16 %v782_v63, %v782_v63  ;;  %v1169_v37 = vsel %vm600_vm13, %v3051_v38, %v782_v63 }
0x1672   :  { %v785_v2 = vrot.slane %v783_v1, 1 }
0x1674   :  { %786 = vrot.lane.b32.xlu0 %v785_v2, %s2910_s29 }
0x16e6   :  { %v787_v3 = vpop.permute.xlu0 %786 }
0x16e7   :  { %2485 = vmatmul.msk.bf16.vlgmr.msrb.gmra.mxu0 %vm66_vm0, %v787_v3 }
0x1764   :  { %v800_v5 = vpop.f32.mrf.mxu0 }
0x1765   :  { %v805_v6 = vrot.slane %v800_v5, 4 }
0x1767   :  { %v807_v9 = vadd.f32 %v805_v6, %v3045_v15 }
0x1769   :  { %2672 = vtanh.f32 %v807_v9  ;;  %v2486_v14 = vmul.f32 -1.442695, %v807_v9  ;;  %v3082_v9 = vadd.f32 %v3042_v13, %v653_v43 }
0x176b   :  { %2674 = vpow2.f32 %v2486_v14 }
0x176c   :  { %v802_v10 = vpop.f32.mrf.mxu0 }
0x176f   :  { %v2673_v12 = vpop.eup %2672 }
0x1770   :  { %833 = vrot.lane.b32.xlu1 %v2673_v12, %s2907_s23 }
0x1771   :  { %v2675_v4 = vpop.eup %2674 }
0x1772   :  { %v811_v16 = vadd.f32 1.0, %v2675_v4 }
0x1774   :  { %2676 = vrcp.f32 %v811_v16  ;;  %v823_v8 = vand.u32 2147483648, %v811_v16  ;;  %vm817_vm6 = vweird.f32 %v811_v16  ;;  %v821_v22 = vand.u32 2147483647, %v811_v16 }
0x1776   :  { %v824_v24 = vor.u32 1.1754944e-38, %v823_v8  ;;  %vm822_vm8 = vcmp.eq.f32.partialorder %v821_v22, 8.507059e+37 }
0x177a   :  { %v2677_v17 = vpop.eup %2676 }
0x177b   :  { %v813_v18 = vmul.f32 %v2677_v17, %v811_v16  ;;  %vm818_vm5 = vweird.f32 %v2677_v17 }
0x177c   :  { %vm819_vm7 = vmor %vm817_vm6, %vm818_vm5 }
0x177d   :  { %v814_v19 = vsub.f32 1.0, %v813_v18 }
0x177f   :  { %v815_v20 = vmul.f32 %v2677_v17, %v814_v19 }
0x1781   :  { %v816_v21 = vadd.f32 %v2677_v17, %v815_v20 }
0x1783   :  { %v820_v23 = vsel %vm819_vm7, %v2677_v17, %v816_v21 }
0x1784   :  { %v825_v26 = vsel %vm822_vm8, %v824_v24, %v820_v23 }
0x1785   :  { %v831_v29 = vmul.f32 %v829_v28, %v825_v26 }
0x17e2   :  { %v834_v25 = vpop.permute.xlu1 %833 }
0x17e3   :  { %v836_v27 = vmul.f32 %v834_v25, %v825_v26 }
0x17e5   :  { %838 = vrot.lane.b32.xlu2 %v836_v27, %s2910_s29 }
0x183f   :  { %v839_v30 = vpop.permute.xlu2 %838 }
0x1840   :  { %v841_v31 = vadd.f32 %v839_v30, %v831_v29 }
0x1842   :  { %2678 = vtanh.f32 %v841_v31  ;;  %v894_v58 = vrot.slane %v841_v31, 6 }
0x1848   :  { %v2679_v32 = vpop.eup %2678 }
0x1849   :  { %844 = vrot.lane.b32.xlu0 %v2679_v32, %s2907_s23 }
0x18bb   :  { %v845_v33 = vpop.permute.xlu0 %844 }
0x18bc   :  { %v847_v36 = vmul.f32 %v845_v33, %v825_v26 }
0x18be   :  { %v848_v39 = vpack.c.bf16 %v847_v36, %v847_v36  ;;  %v1170_v40 = vsel %vm602_vm14, %v1169_v37, %v847_v36 }
0x18c0   :  { %v850_v41 = vrot.slane %v848_v39, 2 }
0x18c2   :  { %851 = vrot.lane.b32.xlu1 %v850_v41, %s2910_s29 }
0x1934   :  { %v852_v42 = vpop.permute.xlu1 %851 }
0x1935   :  { %2487 = vmatmul.msk.bf16.vlgmr.msrb.gmra.mxu1 %vm66_vm0, %v852_v42 }
0x19b2   :  { %v865_v44 = vpop.f32.mrf.mxu1 }
0x19b3   :  { %v870_v34 = vrot.slane %v865_v44, 2 }
0x19b5   :  { %v872_v45 = vadd.f32 %v870_v34, %v3045_v15 }
0x19b7   :  { %2680 = vtanh.f32 %v872_v45  ;;  %v2488_v38 = vmul.f32 -1.442695, %v872_v45 }
0x19b9   :  { %2682 = vpow2.f32 %v2488_v38 }
0x19ba   :  { %v867_v35 = vpop.f32.mrf.mxu1 }
0x19bd   :  { %v2681_v46 = vpop.eup %2680 }
0x19be   :  { %898 = vrot.lane.b32.xlu2 %v2681_v46, %s2907_s23 }
0x19bf   :  { %v2683_v47 = vpop.eup %2682 }
0x19c0   :  { %v876_v48 = vadd.f32 1.0, %v2683_v47 }
0x19c2   :  { %2684 = vrcp.f32 %v876_v48  ;;  %v888_v53 = vand.u32 2147483648, %v876_v48  ;;  %vm882_vm10 = vweird.f32 %v876_v48  ;;  %v886_v54 = vand.u32 2147483647, %v876_v48 }
0x19c4   :  { %v889_v11 = vor.u32 1.1754944e-38, %v888_v53  ;;  %vm887_vm12 = vcmp.eq.f32.partialorder %v886_v54, 8.507059e+37 }
0x19c8   :  { %v2685_v49 = vpop.eup %2684 }
0x19c9   :  { %v878_v50 = vmul.f32 %v2685_v49, %v876_v48  ;;  %vm883_vm9 = vweird.f32 %v2685_v49 }
0x19ca   :  { %vm884_vm11 = vmor %vm882_vm10, %vm883_vm9 }
0x19cb   :  { %v879_v51 = vsub.f32 1.0, %v878_v50 }
0x19cd   :  { %v880_v52 = vmul.f32 %v2685_v49, %v879_v51 }
0x19cf   :  { %v881_v7 = vadd.f32 %v2685_v49, %v880_v52 }
0x19d1   :  { %v885_v15 = vsel %vm884_vm11, %v2685_v49, %v881_v7 }
0x19d2   :  { %v890_v56 = vsel %vm887_vm12, %v889_v11, %v885_v15 }
0x19d3   :  { %v896_v59 = vmul.f32 %v894_v58, %v890_v56 }
0x1a18   :  { %v899_v55 = vpop.permute.xlu2 %898 }
0x1a19   :  { %v901_v57 = vmul.f32 %v899_v55, %v890_v56 }
0x1a1b   :  { %903 = vrot.lane.b32.xlu0 %v901_v57, %s2910_s29 }
0x1a8d   :  { %v904_v60 = vpop.permute.xlu0 %903 }
0x1a8e   :  { %v906_v61 = vadd.f32 %v904_v60, %v896_v59 }
0x1a90   :  { %2686 = vtanh.f32 %v906_v61  ;;  %v956_v29 = vrot.slane %v906_v61, 6 }
0x1a96   :  { %v2687_v62 = vpop.eup %2686 }
0x1a97   :  { %909 = vrot.lane.b32.xlu1 %v2687_v62, %s2907_s23 }
0x1b09   :  { %v910_v63 = vpop.permute.xlu1 %909 }
0x1b0a   :  { %v912_v1 = vmul.f32 %v910_v63, %v890_v56 }
0x1b0c   :  { %v913_v2 = vpack.c.bf16 %v912_v1, %v912_v1  ;;  %v3077_v3 = vsel %vm604_vm4, %v1170_v40, %v912_v1 }
0x1b0e   :  { %v915_v5 = vrot.slane %v913_v2, 3 }
0x1b10   :  { %916 = vrot.lane.b32.xlu2 %v915_v5, %s2910_s29 }
0x1b6a   :  { %v917_v6 = vpop.permute.xlu2 %916 }
0x1b6b   :  { %2489 = vmatmul.msk.bf16.vlgmr.msrb.gmra.mxu2 %vm66_vm0, %v917_v6 }
0x1bee   :  { %v930_v10 = vpop.f32.mrf.mxu2 }
0x1bef   :  { %v934_v12 = vadd.f32 %v930_v10, %v3082_v9 }
0x1bf1   :  { %2688 = vtanh.f32 %v934_v12  ;;  %v2490_v16 = vmul.f32 -1.442695, %v934_v12 }
0x1bf3   :  { %2690 = vpow2.f32 %v2490_v16 }
0x1bf6   :  { %v932_v14 = vpop.f32.mrf.mxu2 }
0x1bf7   :  { %v2689_v4 = vpop.eup %2688 }
0x1bf8   :  { %960 = vrot.lane.b32.xlu0 %v2689_v4, %s2907_s23 }
0x1bf9   :  { %v2691_v17 = vpop.eup %2690 }
0x1bfa   :  { %v938_v18 = vadd.f32 1.0, %v2691_v17 }
0x1bfc   :  { %2692 = vrcp.f32 %v938_v18  ;;  %v950_v13 = vand.u32 2147483648, %v938_v18  ;;  %vm944_vm1 = vweird.f32 %v938_v18  ;;  %v948_v23 = vand.u32 2147483647, %v938_v18 }
0x1bfe   :  { %v951_v25 = vor.u32 1.1754944e-38, %v950_v13  ;;  %vm949_vm3 = vcmp.eq.f32.partialorder %v948_v23, 8.507059e+37 }
0x1c02   :  { %v2693_v19 = vpop.eup %2692 }
0x1c03   :  { %v940_v20 = vmul.f32 %v2693_v19, %v938_v18  ;;  %vm945_vm15 = vweird.f32 %v2693_v19 }
0x1c04   :  { %vm946_vm2 = vmor %vm944_vm1, %vm945_vm15 }
0x1c05   :  { %v941_v21 = vsub.f32 1.0, %v940_v20 }
0x1c07   :  { %v942_v8 = vmul.f32 %v2693_v19, %v941_v21 }
0x1c09   :  { %v943_v22 = vadd.f32 %v2693_v19, %v942_v8 }
0x1c0b   :  { %v947_v24 = vsel %vm946_vm2, %v2693_v19, %v943_v22 }
0x1c0c   :  { %v952_v27 = vsel %vm949_vm3, %v951_v25, %v947_v24 }
0x1c0d   :  { %v958_v30 = vmul.f32 %v956_v29, %v952_v27 }
0x1c6a   :  { %v961_v26 = vpop.permute.xlu0 %960 }
0x1c6b   :  { %v963_v28 = vmul.f32 %v961_v26, %v952_v27 }
0x1c6d   :  { %965 = vrot.lane.b32.xlu1 %v963_v28, %s2910_s29 }
0x1cdf   :  { %v966_v31 = vpop.permute.xlu1 %965 }
0x1ce0   :  { %v968_v32 = vadd.f32 %v966_v31, %v958_v30 }
0x1ce2   :  { %2694 = vtanh.f32 %v968_v32  ;;  %v1020_v55 = vrot.slane %v968_v32, 6 }
0x1ce8   :  { %v2695_v33 = vpop.eup %2694 }
0x1ce9   :  { %971 = vrot.lane.b32.xlu2 %v2695_v33, %s2907_s23 }
0x1d43   :  { %v972_v36 = vpop.permute.xlu2 %971 }
0x1d44   :  { %v3088_v37 = vmul.f32 %v972_v36, %v952_v27 }
0x1d46   :  { %v975_v39 = vpack.c.bf16 %v3088_v37, %v3088_v37 }
0x1d48   :  { %977 = vrot.lane.b32.xlu0 %v975_v39, %s2910_s29 }
0x1dba   :  { %v978_v40 = vpop.permute.xlu0 %977 }
0x1dbb   :  { %2491 = vmatmul.msk.bf16.vlgmr.msrb.gmra.mxu3 %vm66_vm0, %v978_v40 }
0x1e3e   :  { %v991_v41 = vpop.f32.mrf.mxu3 }
0x1e3f   :  { %v996_v42 = vrot.slane %v991_v41, 6 }
0x1e41   :  { %v998_v43 = vadd.f32 %v996_v42, %v3082_v9 }
0x1e43   :  { %2696 = vtanh.f32 %v998_v43  ;;  %v2492_v45 = vmul.f32 -1.442695, %v998_v43 }
0x1e45   :  { %2698 = vpow2.f32 %v2492_v45 }
0x1e46   :  { %v993_v44 = vpop.f32.mrf.mxu3 }
0x1e49   :  { %v2697_v34 = vpop.eup %2696 }
0x1e4a   :  { %1024 = vrot.lane.b32.xlu1 %v2697_v34, %s2907_s23 }
0x1e4b   :  { %v2699_v35 = vpop.eup %2698 }
0x1e4c   :  { %v1002_v46 = vadd.f32 1.0, %v2699_v35 }
0x1e4e   :  { %2700 = vrcp.f32 %v1002_v46  ;;  %v1014_v51 = vand.u32 2147483648, %v1002_v46  ;;  %vm1008_vm6 = vweird.f32 %v1002_v46  ;;  %v1012_v52 = vand.u32 2147483647, %v1002_v46 }
0x1e50   :  { %v1015_v53 = vor.u32 1.1754944e-38, %v1014_v51  ;;  %vm1013_vm8 = vcmp.eq.f32.partialorder %v1012_v52, 8.507059e+37 }
0x1e54   :  { %v2701_v38 = vpop.eup %2700 }
0x1e55   :  { %v1004_v47 = vmul.f32 %v2701_v38, %v1002_v46  ;;  %vm1009_vm5 = vweird.f32 %v2701_v38 }
0x1e56   :  { %vm1010_vm7 = vmor %vm1008_vm6, %vm1009_vm5 }
0x1e57   :  { %v1005_v48 = vsub.f32 1.0, %v1004_v47 }
0x1e59   :  { %v1006_v49 = vmul.f32 %v2701_v38, %v1005_v48 }
0x1e5b   :  { %v1007_v50 = vadd.f32 %v2701_v38, %v1006_v49 }
0x1e5d   :  { %v1011_v7 = vsel %vm1010_vm7, %v2701_v38, %v1007_v50 }
0x1e5e   :  { %v1016_v15 = vsel %vm1013_vm8, %v1015_v53, %v1011_v7 }
0x1e5f   :  { %v1022_v56 = vmul.f32 %v1020_v55, %v1016_v15 }
0x1ebc   :  { %v1025_v54 = vpop.permute.xlu1 %1024 }
0x1ebd   :  { %v1027_v11 = vmul.f32 %v1025_v54, %v1016_v15 }
0x1ebf   :  { %1029 = vrot.lane.b32.xlu2 %v1027_v11, %s2910_s29 }
0x1f19   :  { %v1030_v57 = vpop.permute.xlu2 %1029 }
0x1f1a   :  { %v1032_v58 = vadd.f32 %v1030_v57, %v1022_v56 }
0x1f1c   :  { %2702 = vtanh.f32 %v1032_v58  ;;  %v1085_v27 = vrot.slane %v1032_v58, 6 }
0x1f22   :  { %v2703_v59 = vpop.eup %2702 }
0x1f23   :  { %1035 = vrot.lane.b32.xlu0 %v2703_v59, %s2907_s23 }
0x1f95   :  { %v1036_v60 = vpop.permute.xlu0 %1035 }
0x1f96   :  { %v1038_v61 = vmul.f32 %v1036_v60, %v1016_v15  ;;  %v2572_v60 = vld [vmem:[#allocation3 + $0x48] sm:$0xff] }
0x1f97   :  { %1214 = vmatpush.bf16.msra.mxu2 %v2572_v60 }
0x1f98   :  { %v1039_v62 = vpack.c.bf16 %v1038_v61, %v1038_v61  ;;  %v1172_v36 = vsel %vm600_vm13, %v3088_v37, %v1038_v61  ;;  %v2574_v61 = vld [vmem:[#allocation3 + $0x58] sm:$0xff] }
0x1f99   :  { %1240 = vmatpush.bf16.msra.mxu3 %v2574_v61  ;;  %1298 = vmatpush.bf16.msrb.mxu0 %v2574_v61 }
0x1f9a   :  { %v1041_v63 = vrot.slane %v1039_v62, 1  ;;  %v2573_v62 = vld [vmem:[#allocation3 + $0x50] sm:$0xff]  ;;  %1363 = vmatpush.bf16.msrb.mxu1 %v2574_v61 }
0x1f9c   :  { %1042 = vrot.lane.b32.xlu1 %v1041_v63, %s2910_s29  ;;  %v2571_v63 = vld [vmem:[#allocation3 + $0x40] sm:$0xff] }
0x1f9d   :  { %1241 = vmatpush.bf16.msra.mxu3 %v2573_v62  ;;  %1215 = vmatpush.bf16.msra.mxu2 %v2571_v63 }
0x1f9e   :  { %1299 = vmatpush.bf16.msrb.mxu0 %v2573_v62  ;;  %1364 = vmatpush.bf16.msrb.mxu1 %v2573_v62 }
0x1fa0   :  { %1242 = vmatmul.bf16.vlgmr.msra.gmra.mxu3 %v2909_v0 }
0x1fa1   :  { %1428 = vmatpush.bf16.msrb.mxu2 %v2574_v61  ;;  %1493 = vmatpush.bf16.msrb.mxu3 %v2574_v61 }
0x1fa5   :  { %1429 = vmatpush.bf16.msrb.mxu2 %v2573_v62  ;;  %1494 = vmatpush.bf16.msrb.mxu3 %v2573_v62 }
0x200e   :  { %v1043_v1 = vpop.permute.xlu1 %1042 }
0x200f   :  { %2493 = vmatmul.msk.bf16.vlgmr.msra.gmra.mxu0 %vm66_vm0, %v1043_v1 }
0x2010   :  { %1554 = vmatpush.bf16.msra.mxu0 %v2574_v61 }
0x2014   :  { %1555 = vmatpush.bf16.msra.mxu0 %v2573_v62 }
0x208c   :  { %v1056_v2 = vpop.f32.mrf.mxu0 }
0x208d   :  { %v1061_v5 = vrot.slane %v1056_v2, 4 }
0x208f   :  { %v1063_v6 = vadd.f32 %v1061_v5, %v3082_v9 }
0x2091   :  { %2704 = vtanh.f32 %v1063_v6  ;;  %v2494_v14 = vmul.f32 -1.442695, %v1063_v6 }
0x2093   :  { %2706 = vpow2.f32 %v2494_v14 }
0x2094   :  { %v1058_v10 = vpop.f32.mrf.mxu0 }
0x2095   :  { %v1243_v10 = vpop.f32.mrf.mxu3 }
0x2097   :  { %v2705_v12 = vpop.eup %2704 }
0x2098   :  { %1089 = vrot.lane.b32.xlu2 %v2705_v12, %s2907_s23 }
0x2099   :  { %v2707_v4 = vpop.eup %2706 }
0x209a   :  { %v1067_v16 = vadd.f32 1.0, %v2707_v4  ;;  %v3124_v4 = vld [vmem:[%s3324_s2 + $0x2] ss:$0 sm:$0xff] }
0x209c   :  { %2708 = vrcp.f32 %v1067_v16  ;;  %v1079_v8 = vand.u32 2147483648, %v1067_v16  ;;  %vm1073_vm10 = vweird.f32 %v1067_v16  ;;  %v1077_v22 = vand.u32 2147483647, %v1067_v16 }
0x209d   :  { %v1245_v14 = vpop.f32.mrf.mxu3 }
0x209e   :  { %v1080_v23 = vor.u32 1.1754944e-38, %v1079_v8  ;;  %vm1078_vm12 = vcmp.eq.f32.partialorder %v1077_v22, 8.507059e+37 }
0x20a2   :  { %v2709_v17 = vpop.eup %2708 }
0x20a3   :  { %v1069_v18 = vmul.f32 %v2709_v17, %v1067_v16  ;;  %vm1074_vm9 = vweird.f32 %v2709_v17 }
0x20a4   :  { %vm1075_vm11 = vmor %vm1073_vm10, %vm1074_vm9 }
0x20a5   :  { %v1070_v19 = vsub.f32 1.0, %v1069_v18 }
0x20a7   :  { %v1071_v20 = vmul.f32 %v2709_v17, %v1070_v19 }
0x20a9   :  { %v1072_v21 = vadd.f32 %v2709_v17, %v1071_v20 }
0x20ab   :  { %v1076_v13 = vsel %vm1075_vm11, %v2709_v17, %v1072_v21 }
0x20ac   :  { %v1081_v25 = vsel %vm1078_vm12, %v1080_v23, %v1076_v13 }
0x20ad   :  { %v1087_v28 = vmul.f32 %v1085_v27, %v1081_v25 }
0x20f2   :  { %v1090_v24 = vpop.permute.xlu2 %1089 }
0x20f3   :  { %v1092_v26 = vmul.f32 %v1090_v24, %v1081_v25 }
0x20f5   :  { %1094 = vrot.lane.b32.xlu0 %v1092_v26, %s2910_s29 }
0x2167   :  { %v1095_v29 = vpop.permute.xlu0 %1094 }
0x2168   :  { %v1097_v30 = vadd.f32 %v1095_v29, %v1087_v28 }
0x216a   :  { %2710 = vtanh.f32 %v1097_v30  ;;  %v1150_v55 = vrot.slane %v1097_v30, 6 }
0x2170   :  { %v2711_v31 = vpop.eup %2710 }
0x2171   :  { %1100 = vrot.lane.b32.xlu1 %v2711_v31, %s2907_s23 }
0x21e3   :  { %v1101_v32 = vpop.permute.xlu1 %1100 }
0x21e4   :  { %v1103_v33 = vmul.f32 %v1101_v32, %v1081_v25 }
0x21e6   :  { %v1104_v39 = vpack.c.bf16 %v1103_v33, %v1103_v33  ;;  %v3107_v40 = vsel %vm602_vm14, %v1172_v36, %v1103_v33 }
0x21e8   :  { %v1106_v41 = vrot.slane %v1104_v39, 2 }
0x21ea   :  { %1107 = vrot.lane.b32.xlu2 %v1106_v41, %s2910_s29 }
0x2244   :  { %v1108_v42 = vpop.permute.xlu2 %1107 }
0x2245   :  { %2495 = vmatmul.msk.bf16.vlgmr.msra.gmra.mxu1 %vm66_vm0, %v1108_v42 }
0x2246   :  { %1619 = vmatpush.bf16.msra.mxu1 %v2574_v61 }
0x224a   :  { %1620 = vmatpush.bf16.msra.mxu1 %v2573_v62 }
0x22c2   :  { %v1121_v43 = vpop.f32.mrf.mxu1 }
0x22c3   :  { %v1126_v44 = vrot.slane %v1121_v43, 2 }
0x22c5   :  { %v1128_v34 = vadd.f32 %v1126_v44, %v3082_v9 }
0x22c7   :  { %2712 = vtanh.f32 %v1128_v34  ;;  %v2496_v37 = vmul.f32 -1.442695, %v1128_v34 }
0x22c9   :  { %2714 = vpow2.f32 %v2496_v37 }
0x22ca   :  { %v1123_v45 = vpop.f32.mrf.mxu1 }
0x22cd   :  { %v2713_v35 = vpop.eup %2712 }
0x22ce   :  { %1154 = vrot.lane.b32.xlu0 %v2713_v35, %s2907_s23 }
0x22cf   :  { %v2715_v46 = vpop.eup %2714 }
0x22d0   :  { %v1132_v38 = vadd.f32 1.0, %v2715_v46 }
0x22d2   :  { %2716 = vrcp.f32 %v1132_v38  ;;  %v1144_v52 = vand.u32 2147483648, %v1132_v38  ;;  %vm1138_vm1 = vweird.f32 %v1132_v38  ;;  %v1142_v7 = vand.u32 2147483647, %v1132_v38 }
0x22d4   :  { %v1145_v53 = vor.u32 1.1754944e-38, %v1144_v52  ;;  %vm1143_vm3 = vcmp.eq.f32.partialorder %v1142_v7, 8.507059e+37 }
0x22d8   :  { %v2717_v47 = vpop.eup %2716 }
0x22d9   :  { %v1134_v48 = vmul.f32 %v2717_v47, %v1132_v38  ;;  %vm1139_vm15 = vweird.f32 %v2717_v47 }
0x22da   :  { %vm1140_vm2 = vmor %vm1138_vm1, %vm1139_vm15 }
0x22db   :  { %v1135_v49 = vsub.f32 1.0, %v1134_v48 }
0x22dd   :  { %v1136_v50 = vmul.f32 %v2717_v47, %v1135_v49 }
0x22df   :  { %v1137_v51 = vadd.f32 %v2717_v47, %v1136_v50 }
0x22e1   :  { %v1141_v9 = vsel %vm1140_vm2, %v2717_v47, %v1137_v51 }
0x22e2   :  { %v1146_v15 = vsel %vm1143_vm3, %v1145_v53, %v1141_v9 }
0x22e3   :  { %v1152_v56 = vmul.f32 %v1150_v55, %v1146_v15 }
0x2340   :  { %v1155_v54 = vpop.permute.xlu0 %1154 }
0x2341   :  { %v1157_v11 = vmul.f32 %v1155_v54, %v1146_v15 }
0x2343   :  { %1159 = vrot.lane.b32.xlu1 %v1157_v11, %s2910_s29 }
0x23b5   :  { %v1160_v57 = vpop.permute.xlu1 %1159 }
0x23b6   :  { %v1162_v58 = vadd.f32 %v1160_v57, %v1152_v56 }
0x23b8   :  { %2718 = vtanh.f32 %v1162_v58 }
0x23be   :  { %v2719_v59 = vpop.eup %2718 }
0x23bf   :  { %1165 = vrot.lane.b32.xlu2 %v2719_v59, %s2907_s23 }
0x2419   :  { %v1166_v1 = vpop.permute.xlu2 %1165 }
0x241a   :  { %v1168_v2 = vmul.f32 %v1166_v1, %v1146_v15 }
0x241c   :  { %v1174_v5 = vsel %vm604_vm4, %v3107_v40, %v1168_v2 }
0x241d   :  { %v1186_v6 = vpack.c.bf16 %v1174_v5, %v3077_v3 }
0x241f   :  { %1191 = vrot.lane.b32.xlu0 %v1186_v6, %s2910_s29 }
0x2491   :  { %v1192_v12 = vpop.permute.xlu0 %1191 }
0x2492   :  { %2506 = vmatmul.msk.bf16.vlgmr.msra.gmra.mxu2 %vm66_vm0, %v1192_v12 }
0x2493   :  { %1684 = vmatpush.bf16.msra.mxu2 %v2574_v61 }
0x2497   :  { %1685 = vmatpush.bf16.msra.mxu2 %v2573_v62 }
0x2515   :  { %v1217_v16 = vpop.f32.mrf.mxu2 }
0x2516   :  { %v3127_v17 = vadd.f32 %v3124_v4, %v1217_v16 }
0x2518   :  { %v1247_v3 = vadd.f32 %v1243_v10, %v3127_v17 }
0x251a   :  { %2720 = vtanh.f32 %v1247_v3  ;;  %v2515_v19 = vmul.f32 -1.442695, %v1247_v3 }
0x251c   :  { %2722 = vpow2.f32 %v2515_v19 }
0x2520   :  { %v2721_v18 = vpop.eup %2720 }
0x2521   :  { %1270 = vrot.lane.b32.xlu1 %v2721_v18, %s2907_s23 }
0x2522   :  { %v2723_v20 = vpop.eup %2722 }
0x2523   :  { %v1251_v21 = vadd.f32 1.0, %v2723_v20 }
0x2525   :  { %2724 = vrcp.f32 %v1251_v21  ;;  %v1263_v25 = vand.u32 2147483648, %v1251_v21  ;;  %vm1257_vm6 = vweird.f32 %v1251_v21  ;;  %v1261_v26 = vand.u32 2147483647, %v1251_v21 }
0x2527   :  { %v1264_v28 = vor.u32 1.1754944e-38, %v1263_v25  ;;  %vm1262_vm8 = vcmp.eq.f32.partialorder %v1261_v26, 8.507059e+37 }
0x252b   :  { %v2725_v8 = vpop.eup %2724 }
0x252c   :  { %v1253_v22 = vmul.f32 %v2725_v8, %v1251_v21  ;;  %vm1258_vm5 = vweird.f32 %v2725_v8 }
0x252d   :  { %vm1259_vm7 = vmor %vm1257_vm6, %vm1258_vm5 }
0x252e   :  { %v1254_v13 = vsub.f32 1.0, %v1253_v22 }
0x2530   :  { %v1255_v23 = vmul.f32 %v2725_v8, %v1254_v13 }
0x2532   :  { %v1256_v24 = vadd.f32 %v2725_v8, %v1255_v23 }
0x2534   :  { %v1260_v27 = vsel %vm1259_vm7, %v2725_v8, %v1256_v24 }
0x2535   :  { %v1265_v30 = vsel %vm1262_vm8, %v1264_v28, %v1260_v27 }
0x2536   :  { %v1268_v32 = vmul.f32 0.0, %v1265_v30 }
0x2593   :  { %v1271_v29 = vpop.permute.xlu1 %1270 }
0x2594   :  { %v1273_v31 = vmul.f32 %v1271_v29, %v1265_v30 }
0x2596   :  { %1275 = vrot.lane.b32.xlu2 %v1273_v31, %s2910_s29 }
0x25f0   :  { %v1276_v33 = vpop.permute.xlu2 %1275 }
0x25f1   :  { %v1278_v36 = vadd.f32 %v1276_v33, %v1268_v32 }
0x25f3   :  { %2726 = vtanh.f32 %v1278_v36  ;;  %v1330_v56 = vrot.slane %v1278_v36, 6 }
0x25f9   :  { %v2727_v39 = vpop.eup %2726 }
0x25fa   :  { %1281 = vrot.lane.b32.xlu0 %v2727_v39, %s2907_s23 }
0x266c   :  { %v1282_v40 = vpop.permute.xlu0 %1281 }
0x266d   :  { %v3133_v41 = vmul.f32 %v1282_v40, %v1265_v30 }
0x266f   :  { %v1285_v42 = vpack.c.bf16 %v3133_v41, %v3133_v41 }
0x2671   :  { %1287 = vrot.lane.b32.xlu1 %v1285_v42, %s2910_s29 }
0x26e3   :  { %v1288_v43 = vpop.permute.xlu1 %1287 }
0x26e4   :  { %2516 = vmatmul.msk.bf16.vlgmr.msrb.gmra.mxu0 %vm66_vm0, %v1288_v43 }
0x2761   :  { %v1301_v44 = vpop.f32.mrf.mxu0 }
0x2762   :  { %v1306_v34 = vrot.slane %v1301_v44, 6 }
0x2764   :  { %v1308_v45 = vadd.f32 %v1306_v34, %v3127_v17 }
0x2766   :  { %2728 = vtanh.f32 %v1308_v45  ;;  %v2517_v46 = vmul.f32 -1.442695, %v1308_v45  ;;  %v1219_v45 = vpop.f32.mrf.mxu2 }
0x2768   :  { %2730 = vpow2.f32 %v2517_v46 }
0x2769   :  { %v1303_v35 = vpop.f32.mrf.mxu0 }
0x276c   :  { %v2729_v37 = vpop.eup %2728 }
0x276d   :  { %1334 = vrot.lane.b32.xlu2 %v2729_v37, %s2907_s23 }
0x276e   :  { %v2731_v38 = vpop.eup %2730 }
0x276f   :  { %v1312_v47 = vadd.f32 1.0, %v2731_v38 }
0x2771   :  { %2732 = vrcp.f32 %v1312_v47  ;;  %v1324_v7 = vand.u32 2147483648, %v1312_v47  ;;  %vm1318_vm10 = vweird.f32 %v1312_v47  ;;  %v1322_v9 = vand.u32 2147483647, %v1312_v47 }
0x2773   :  { %v1325_v54 = vor.u32 1.1754944e-38, %v1324_v7  ;;  %vm1323_vm12 = vcmp.eq.f32.partialorder %v1322_v9, 8.507059e+37 }
0x2777   :  { %v2733_v48 = vpop.eup %2732 }
0x2778   :  { %v1314_v49 = vmul.f32 %v2733_v48, %v1312_v47  ;;  %vm1319_vm9 = vweird.f32 %v2733_v48 }
0x2779   :  { %vm1320_vm11 = vmor %vm1318_vm10, %vm1319_vm9 }
0x277a   :  { %v1315_v50 = vsub.f32 1.0, %v1314_v49 }
0x277c   :  { %v1316_v51 = vmul.f32 %v2733_v48, %v1315_v50 }
0x277e   :  { %v1317_v52 = vadd.f32 %v2733_v48, %v1316_v51 }
0x2780   :  { %v1321_v53 = vsel %vm1320_vm11, %v2733_v48, %v1317_v52 }
0x2781   :  { %v1326_v11 = vsel %vm1323_vm12, %v1325_v54, %v1321_v53 }
0x2782   :  { %v1332_v57 = vmul.f32 %v1330_v56, %v1326_v11 }
0x27c7   :  { %v1335_v15 = vpop.permute.xlu2 %1334 }
0x27c8   :  { %v1337_v55 = vmul.f32 %v1335_v15, %v1326_v11 }
0x27ca   :  { %1339 = vrot.lane.b32.xlu0 %v1337_v55, %s2910_s29 }
0x283c   :  { %v1340_v58 = vpop.permute.xlu0 %1339 }
0x283d   :  { %v1342_v59 = vadd.f32 %v1340_v58, %v1332_v57 }
0x283f   :  { %2734 = vtanh.f32 %v1342_v59  ;;  %v1395_v29 = vrot.slane %v1342_v59, 6 }
0x2845   :  { %v2735_v60 = vpop.eup %2734 }
0x2846   :  { %1345 = vrot.lane.b32.xlu1 %v2735_v60, %s2907_s23 }
0x28b8   :  { %v1346_v61 = vpop.permute.xlu1 %1345 }
0x28b9   :  { %v1348_v62 = vmul.f32 %v1346_v61, %v1326_v11 }
0x28bb   :  { %v1349_v63 = vpack.c.bf16 %v1348_v62, %v1348_v62  ;;  %v1735_v40 = vsel %vm600_vm13, %v3133_v41, %v1348_v62 }
0x28bd   :  { %v1351_v1 = vrot.slane %v1349_v63, 1 }
0x28bf   :  { %1352 = vrot.lane.b32.xlu2 %v1351_v1, %s2910_s29 }
0x2919   :  { %v1353_v2 = vpop.permute.xlu2 %1352 }
0x291a   :  { %2518 = vmatmul.msk.bf16.vlgmr.msrb.gmra.mxu1 %vm66_vm0, %v1353_v2 }
0x2997   :  { %v1366_v5 = vpop.f32.mrf.mxu1 }
0x2998   :  { %v1371_v6 = vrot.slane %v1366_v5, 4 }
0x299a   :  { %v1373_v10 = vadd.f32 %v1371_v6, %v3127_v17 }
0x299c   :  { %2736 = vtanh.f32 %v1373_v10  ;;  %v2519_v16 = vmul.f32 -1.442695, %v1373_v10  ;;  %v3164_v10 = vadd.f32 %v3124_v4, %v1219_v45 }
0x299e   :  { %2738 = vpow2.f32 %v2519_v16 }
0x299f   :  { %v1368_v12 = vpop.f32.mrf.mxu1 }
0x29a2   :  { %v2737_v14 = vpop.eup %2736 }
0x29a3   :  { %1399 = vrot.lane.b32.xlu0 %v2737_v14, %s2907_s23 }
0x29a4   :  { %v2739_v3 = vpop.eup %2738 }
0x29a5   :  { %v1377_v18 = vadd.f32 1.0, %v2739_v3 }
0x29a7   :  { %2740 = vrcp.f32 %v1377_v18  ;;  %v1389_v13 = vand.u32 2147483648, %v1377_v18  ;;  %vm1383_vm1 = vweird.f32 %v1377_v18  ;;  %v1387_v23 = vand.u32 2147483647, %v1377_v18 }
0x29a9   :  { %v1390_v25 = vor.u32 1.1754944e-38, %v1389_v13  ;;  %vm1388_vm3 = vcmp.eq.f32.partialorder %v1387_v23, 8.507059e+37 }
0x29ad   :  { %v2741_v19 = vpop.eup %2740 }
0x29ae   :  { %v1379_v20 = vmul.f32 %v2741_v19, %v1377_v18  ;;  %vm1384_vm15 = vweird.f32 %v2741_v19 }
0x29af   :  { %vm1385_vm2 = vmor %vm1383_vm1, %vm1384_vm15 }
0x29b0   :  { %v1380_v21 = vsub.f32 1.0, %v1379_v20 }
0x29b2   :  { %v1381_v8 = vmul.f32 %v2741_v19, %v1380_v21 }
0x29b4   :  { %v1382_v22 = vadd.f32 %v2741_v19, %v1381_v8 }
0x29b6   :  { %v1386_v24 = vsel %vm1385_vm2, %v2741_v19, %v1382_v22 }
0x29b7   :  { %v1391_v27 = vsel %vm1388_vm3, %v1390_v25, %v1386_v24 }
0x29b8   :  { %v1397_v30 = vmul.f32 %v1395_v29, %v1391_v27 }
0x2a15   :  { %v1400_v26 = vpop.permute.xlu0 %1399 }
0x2a16   :  { %v1402_v28 = vmul.f32 %v1400_v26, %v1391_v27 }
0x2a18   :  { %1404 = vrot.lane.b32.xlu1 %v1402_v28, %s2910_s29 }
0x2a8a   :  { %v1405_v31 = vpop.permute.xlu1 %1404 }
0x2a8b   :  { %v1407_v32 = vadd.f32 %v1405_v31, %v1397_v30 }
0x2a8d   :  { %2742 = vtanh.f32 %v1407_v32  ;;  %v1460_v57 = vrot.slane %v1407_v32, 6 }
0x2a93   :  { %v2743_v33 = vpop.eup %2742 }
0x2a94   :  { %1410 = vrot.lane.b32.xlu2 %v2743_v33, %s2907_s23 }
0x2aee   :  { %v1411_v36 = vpop.permute.xlu2 %1410 }
0x2aef   :  { %v1413_v39 = vmul.f32 %v1411_v36, %v1391_v27 }
0x2af1   :  { %v1414_v42 = vpack.c.bf16 %v1413_v39, %v1413_v39  ;;  %v1736_v43 = vsel %vm602_vm14, %v1735_v40, %v1413_v39 }
0x2af3   :  { %v1416_v44 = vrot.slane %v1414_v42, 2 }
0x2af5   :  { %1417 = vrot.lane.b32.xlu0 %v1416_v44, %s2910_s29 }
0x2b67   :  { %v1418_v34 = vpop.permute.xlu0 %1417 }
0x2b68   :  { %2520 = vmatmul.msk.bf16.vlgmr.msrb.gmra.mxu2 %vm66_vm0, %v1418_v34 }
0x2beb   :  { %v1431_v35 = vpop.f32.mrf.mxu2 }
0x2bec   :  { %v1436_v37 = vrot.slane %v1431_v35, 2 }
0x2bee   :  { %v1438_v46 = vadd.f32 %v1436_v37, %v3127_v17 }
0x2bf0   :  { %2744 = vtanh.f32 %v1438_v46  ;;  %v2521_v41 = vmul.f32 -1.442695, %v1438_v46 }
0x2bf2   :  { %2746 = vpow2.f32 %v2521_v41 }
0x2bf3   :  { %v1433_v38 = vpop.f32.mrf.mxu2 }
0x2bf6   :  { %v2745_v47 = vpop.eup %2744 }
0x2bf7   :  { %1464 = vrot.lane.b32.xlu1 %v2745_v47, %s2907_s23 }
0x2bf8   :  { %v2747_v48 = vpop.eup %2746 }
0x2bf9   :  { %v1442_v49 = vadd.f32 1.0, %v2747_v48 }
0x2bfb   :  { %2748 = vrcp.f32 %v1442_v49  ;;  %v1454_v53 = vand.u32 2147483648, %v1442_v49  ;;  %vm1448_vm6 = vweird.f32 %v1442_v49  ;;  %v1452_v54 = vand.u32 2147483647, %v1442_v49 }
0x2bfd   :  { %v1455_v15 = vor.u32 1.1754944e-38, %v1454_v53  ;;  %vm1453_vm8 = vcmp.eq.f32.partialorder %v1452_v54, 8.507059e+37 }
0x2c01   :  { %v2749_v50 = vpop.eup %2748 }
0x2c02   :  { %v1444_v51 = vmul.f32 %v2749_v50, %v1442_v49  ;;  %vm1449_vm5 = vweird.f32 %v2749_v50 }
0x2c03   :  { %vm1450_vm7 = vmor %vm1448_vm6, %vm1449_vm5 }
0x2c04   :  { %v1445_v52 = vsub.f32 1.0, %v1444_v51 }
0x2c06   :  { %v1446_v7 = vmul.f32 %v2749_v50, %v1445_v52 }
0x2c08   :  { %v1447_v9 = vadd.f32 %v2749_v50, %v1446_v7 }
0x2c0a   :  { %v1451_v17 = vsel %vm1450_vm7, %v2749_v50, %v1447_v9 }
0x2c0b   :  { %v1456_v55 = vsel %vm1453_vm8, %v1455_v15, %v1451_v17 }
0x2c0c   :  { %v1462_v58 = vmul.f32 %v1460_v57, %v1456_v55 }
0x2c69   :  { %v1465_v11 = vpop.permute.xlu1 %1464 }
0x2c6a   :  { %v1467_v56 = vmul.f32 %v1465_v11, %v1456_v55 }
0x2c6c   :  { %1469 = vrot.lane.b32.xlu2 %v1467_v56, %s2910_s29 }
0x2cc6   :  { %v1470_v59 = vpop.permute.xlu2 %1469 }
0x2cc7   :  { %v1472_v60 = vadd.f32 %v1470_v59, %v1462_v58 }
0x2cc9   :  { %2750 = vtanh.f32 %v1472_v60  ;;  %v1522_v30 = vrot.slane %v1472_v60, 6 }
0x2ccf   :  { %v2751_v61 = vpop.eup %2750 }
0x2cd0   :  { %1475 = vrot.lane.b32.xlu0 %v2751_v61, %s2907_s23 }
0x2d42   :  { %v1476_v62 = vpop.permute.xlu0 %1475 }
0x2d43   :  { %v1478_v63 = vmul.f32 %v1476_v62, %v1456_v55 }
0x2d45   :  { %v1479_v1 = vpack.c.bf16 %v1478_v63, %v1478_v63  ;;  %v3159_v2 = vsel %vm604_vm4, %v1736_v43, %v1478_v63 }
0x2d47   :  { %v1481_v5 = vrot.slane %v1479_v1, 3 }
0x2d49   :  { %1482 = vrot.lane.b32.xlu1 %v1481_v5, %s2910_s29 }
0x2dbb   :  { %v1483_v6 = vpop.permute.xlu1 %1482 }
0x2dbc   :  { %2522 = vmatmul.msk.bf16.vlgmr.msrb.gmra.mxu3 %vm66_vm0, %v1483_v6 }
0x2e3f   :  { %v1496_v12 = vpop.f32.mrf.mxu3 }
0x2e40   :  { %v1500_v14 = vadd.f32 %v1496_v12, %v3164_v10 }
0x2e42   :  { %2752 = vtanh.f32 %v1500_v14  ;;  %v2523_v18 = vmul.f32 -1.442695, %v1500_v14 }
0x2e44   :  { %2754 = vpow2.f32 %v2523_v18 }
0x2e47   :  { %v1498_v16 = vpop.f32.mrf.mxu3 }
0x2e48   :  { %v2753_v3 = vpop.eup %2752 }
0x2e49   :  { %1526 = vrot.lane.b32.xlu2 %v2753_v3, %s2907_s23 }
0x2e4a   :  { %v2755_v19 = vpop.eup %2754 }
0x2e4b   :  { %v1504_v20 = vadd.f32 1.0, %v2755_v19 }
0x2e4d   :  { %2756 = vrcp.f32 %v1504_v20  ;;  %v1516_v4 = vand.u32 2147483648, %v1504_v20  ;;  %vm1510_vm10 = vweird.f32 %v1504_v20  ;;  %v1514_v24 = vand.u32 2147483647, %v1504_v20 }
0x2e4f   :  { %v1517_v26 = vor.u32 1.1754944e-38, %v1516_v4  ;;  %vm1515_vm12 = vcmp.eq.f32.partialorder %v1514_v24, 8.507059e+37 }
0x2e53   :  { %v2757_v21 = vpop.eup %2756 }
0x2e54   :  { %v1506_v8 = vmul.f32 %v2757_v21, %v1504_v20  ;;  %vm1511_vm9 = vweird.f32 %v2757_v21 }
0x2e55   :  { %vm1512_vm11 = vmor %vm1510_vm10, %vm1511_vm9 }
0x2e56   :  { %v1507_v22 = vsub.f32 1.0, %v1506_v8 }
0x2e58   :  { %v1508_v13 = vmul.f32 %v2757_v21, %v1507_v22 }
0x2e5a   :  { %v1509_v23 = vadd.f32 %v2757_v21, %v1508_v13 }
0x2e5c   :  { %v1513_v25 = vsel %vm1512_vm11, %v2757_v21, %v1509_v23 }
0x2e5d   :  { %v1518_v28 = vsel %vm1515_vm12, %v1517_v26, %v1513_v25 }
0x2e5e   :  { %v1524_v31 = vmul.f32 %v1522_v30, %v1518_v28 }
0x2ea3   :  { %v1527_v27 = vpop.permute.xlu2 %1526 }
0x2ea4   :  { %v1529_v29 = vmul.f32 %v1527_v27, %v1518_v28 }
0x2ea6   :  { %1531 = vrot.lane.b32.xlu0 %v1529_v29, %s2910_s29 }
0x2f18   :  { %v1532_v32 = vpop.permute.xlu0 %1531 }
0x2f19   :  { %v1534_v33 = vadd.f32 %v1532_v32, %v1524_v31 }
0x2f1b   :  { %2758 = vtanh.f32 %v1534_v33  ;;  %v1586_v11 = vrot.slane %v1534_v33, 6 }
0x2f21   :  { %v2759_v36 = vpop.eup %2758 }
0x2f22   :  { %1537 = vrot.lane.b32.xlu1 %v2759_v36, %s2907_s23 }
0x2f94   :  { %v1538_v39 = vpop.permute.xlu1 %1537 }
0x2f95   :  { %v3170_v40 = vmul.f32 %v1538_v39, %v1518_v28 }
0x2f97   :  { %v1541_v42 = vpack.c.bf16 %v3170_v40, %v3170_v40 }
0x2f99   :  { %1543 = vrot.lane.b32.xlu2 %v1541_v42, %s2910_s29 }
0x2ff3   :  { %v1544_v43 = vpop.permute.xlu2 %1543 }
0x2ff4   :  { %2524 = vmatmul.msk.bf16.vlgmr.msra.gmra.mxu0 %vm66_vm0, %v1544_v43 }
0x3071   :  { %v1557_v44 = vpop.f32.mrf.mxu0 }
0x3072   :  { %v1562_v34 = vrot.slane %v1557_v44, 6 }
0x3074   :  { %v1564_v45 = vadd.f32 %v1562_v34, %v3164_v10 }
0x3076   :  { %2760 = vtanh.f32 %v1564_v45  ;;  %v2525_v46 = vmul.f32 -1.442695, %v1564_v45 }
0x3078   :  { %2762 = vpow2.f32 %v2525_v46 }
0x3079   :  { %v1559_v35 = vpop.f32.mrf.mxu0 }
0x307c   :  { %v2761_v37 = vpop.eup %2760 }
0x307d   :  { %1590 = vrot.lane.b32.xlu0 %v2761_v37, %s2907_s23 }
0x307e   :  { %v2763_v38 = vpop.eup %2762 }
0x307f   :  { %v1568_v47 = vadd.f32 1.0, %v2763_v38 }
0x3081   :  { %2764 = vrcp.f32 %v1568_v47  ;;  %v1580_v52 = vand.u32 2147483648, %v1568_v47  ;;  %vm1574_vm1 = vweird.f32 %v1568_v47  ;;  %v1578_v7 = vand.u32 2147483647, %v1568_v47 }
0x3083   :  { %v1581_v53 = vor.u32 1.1754944e-38, %v1580_v52  ;;  %vm1579_vm3 = vcmp.eq.f32.partialorder %v1578_v7, 8.507059e+37 }
0x3087   :  { %v2765_v41 = vpop.eup %2764 }
0x3088   :  { %v1570_v48 = vmul.f32 %v2765_v41, %v1568_v47  ;;  %vm1575_vm15 = vweird.f32 %v2765_v41 }
0x3089   :  { %vm1576_vm2 = vmor %vm1574_vm1, %vm1575_vm15 }
0x308a   :  { %v1571_v49 = vsub.f32 1.0, %v1570_v48 }
0x308c   :  { %v1572_v50 = vmul.f32 %v2765_v41, %v1571_v49 }
0x308e   :  { %v1573_v51 = vadd.f32 %v2765_v41, %v1572_v50 }
0x3090   :  { %v1577_v9 = vsel %vm1576_vm2, %v2765_v41, %v1573_v51 }
0x3091   :  { %v1582_v17 = vsel %vm1579_vm3, %v1581_v53, %v1577_v9 }
0x3092   :  { %v1588_v55 = vmul.f32 %v1586_v11, %v1582_v17 }
0x30ef   :  { %v1591_v54 = vpop.permute.xlu0 %1590 }
0x30f0   :  { %v1593_v15 = vmul.f32 %v1591_v54, %v1582_v17 }
0x30f2   :  { %1595 = vrot.lane.b32.xlu1 %v1593_v15, %s2910_s29 }
0x3164   :  { %v1596_v56 = vpop.permute.xlu1 %1595 }
0x3165   :  { %v1598_v57 = vadd.f32 %v1596_v56, %v1588_v55 }
0x3167   :  { %2766 = vtanh.f32 %v1598_v57  ;;  %v1651_v28 = vrot.slane %v1598_v57, 6 }
0x316d   :  { %v2767_v58 = vpop.eup %2766 }
0x316e   :  { %1601 = vrot.lane.b32.xlu2 %v2767_v58, %s2907_s23 }
0x31c8   :  { %v1602_v59 = vpop.permute.xlu2 %1601 }
0x31c9   :  { %v1604_v60 = vmul.f32 %v1602_v59, %v1582_v17  ;;  %v2576_v59 = vld [vmem:[#allocation3 + $0x68] sm:$0xff] }
0x31ca   :  { %1780 = vmatpush.bf16.msra.mxu3 %v2576_v59 }
0x31cb   :  { %v1605_v61 = vpack.c.bf16 %v1604_v60, %v1604_v60  ;;  %v1738_v39 = vsel %vm600_vm13, %v3170_v40, %v1604_v60  ;;  %v2578_v60 = vld [vmem:[#allocation3 + $0x78] sm:$0xff] }
0x31cc   :  { %1806 = vmatpush.bf16.msrb.mxu0 %v2578_v60  ;;  %1864 = vmatpush.bf16.msrb.mxu1 %v2578_v60 }
0x31cd   :  { %v1607_v62 = vrot.slane %v1605_v61, 1  ;;  %v2575_v61 = vld [vmem:[#allocation3 + $0x60] sm:$0xff]  ;;  %1929 = vmatpush.bf16.msrb.mxu2 %v2578_v60 }
0x31ce   :  { %1781 = vmatpush.bf16.msra.mxu3 %v2575_v61 }
0x31cf   :  { %1608 = vrot.lane.b32.xlu0 %v1607_v62, %s2910_s29  ;;  %v2577_v62 = vld [vmem:[#allocation3 + $0x70] sm:$0xff] }
0x31d0   :  { %1807 = vmatpush.bf16.msrb.mxu0 %v2577_v62  ;;  %1865 = vmatpush.bf16.msrb.mxu1 %v2577_v62 }
0x31d1   :  { %1930 = vmatpush.bf16.msrb.mxu2 %v2577_v62 }
0x31d2   :  { %1994 = vmatpush.bf16.msrb.mxu3 %v2578_v60 }
0x31d3   :  { %1808 = vmatmul.bf16.vlgmr.msrb.gmra.mxu0 %v2909_v0 }
0x31d4   :  { %2059 = vmatpush.bf16.msra.mxu0 %v2578_v60 }
0x31d6   :  { %1995 = vmatpush.bf16.msrb.mxu3 %v2577_v62 }
0x31d8   :  { %2060 = vmatpush.bf16.msra.mxu0 %v2577_v62 }
0x3241   :  { %v1609_v63 = vpop.permute.xlu0 %1608 }
0x3242   :  { %2526 = vmatmul.msk.bf16.vlgmr.msra.gmra.mxu1 %vm66_vm0, %v1609_v63 }
0x3243   :  { %2120 = vmatpush.bf16.msra.mxu1 %v2578_v60 }
0x3247   :  { %2121 = vmatpush.bf16.msra.mxu1 %v2577_v62 }
0x3250   :  { %v1809_v0 = vpop.f32.mrf.mxu0 }
0x32bf   :  { %v1622_v1 = vpop.f32.mrf.mxu1 }
0x32c0   :  { %v1627_v5 = vrot.slane %v1622_v1, 4 }
0x32c2   :  { %v1629_v6 = vadd.f32 %v1627_v5, %v3164_v10 }
0x32c4   :  { %2768 = vtanh.f32 %v1629_v6  ;;  %v2527_v16 = vmul.f32 -1.442695, %v1629_v6 }
0x32c6   :  { %2770 = vpow2.f32 %v2527_v16  ;;  %v3206_v16 = vld [vmem:[%s3324_s2 + $0x3] ss:$0 sm:$0xff] }
0x32c7   :  { %v1624_v12 = vpop.f32.mrf.mxu1 }
0x32ca   :  { %v2769_v14 = vpop.eup %2768 }
0x32cb   :  { %1655 = vrot.lane.b32.xlu1 %v2769_v14, %s2907_s23  ;;  %v1811_v14 = vpop.f32.mrf.mxu0 }
0x32cc   :  { %v2771_v3 = vpop.eup %2770 }
0x32cd   :  { %v1633_v18 = vadd.f32 1.0, %v2771_v3 }
0x32cf   :  { %2772 = vrcp.f32 %v1633_v18  ;;  %v1645_v13 = vand.u32 2147483648, %v1633_v18  ;;  %vm1639_vm6 = vweird.f32 %v1633_v18  ;;  %v1643_v23 = vand.u32 2147483647, %v1633_v18 }
0x32d1   :  { %v1646_v24 = vor.u32 1.1754944e-38, %v1645_v13  ;;  %vm1644_vm8 = vcmp.eq.f32.partialorder %v1643_v23, 8.507059e+37 }
0x32d5   :  { %v2773_v19 = vpop.eup %2772 }
0x32d6   :  { %v1635_v20 = vmul.f32 %v2773_v19, %v1633_v18  ;;  %vm1640_vm5 = vweird.f32 %v2773_v19 }
0x32d7   :  { %vm1641_vm7 = vmor %vm1639_vm6, %vm1640_vm5 }
0x32d8   :  { %v1636_v21 = vsub.f32 1.0, %v1635_v20 }
0x32da   :  { %v1637_v8 = vmul.f32 %v2773_v19, %v1636_v21 }
0x32dc   :  { %v1638_v22 = vadd.f32 %v2773_v19, %v1637_v8 }
0x32de   :  { %v1642_v4 = vsel %vm1641_vm7, %v2773_v19, %v1638_v22 }
0x32df   :  { %v1647_v26 = vsel %vm1644_vm8, %v1646_v24, %v1642_v4 }
0x32e0   :  { %v1653_v29 = vmul.f32 %v1651_v28, %v1647_v26 }
0x333d   :  { %v1656_v25 = vpop.permute.xlu1 %1655 }
0x333e   :  { %v1658_v27 = vmul.f32 %v1656_v25, %v1647_v26 }
0x3340   :  { %1660 = vrot.lane.b32.xlu2 %v1658_v27, %s2910_s29 }
0x339a   :  { %v1661_v30 = vpop.permute.xlu2 %1660 }
0x339b   :  { %v1663_v31 = vadd.f32 %v1661_v30, %v1653_v29 }
0x339d   :  { %2774 = vtanh.f32 %v1663_v31  ;;  %v1716_v11 = vrot.slane %v1663_v31, 6 }
0x33a3   :  { %v2775_v32 = vpop.eup %2774 }
0x33a4   :  { %1666 = vrot.lane.b32.xlu0 %v2775_v32, %s2907_s23 }
0x3416   :  { %v1667_v33 = vpop.permute.xlu0 %1666 }
0x3417   :  { %v1669_v36 = vmul.f32 %v1667_v33, %v1647_v26 }
0x3419   :  { %v1670_v42 = vpack.c.bf16 %v1669_v36, %v1669_v36  ;;  %v3189_v43 = vsel %vm602_vm14, %v1738_v39, %v1669_v36 }
0x341b   :  { %v1672_v44 = vrot.slane %v1670_v42, 2 }
0x341d   :  { %1673 = vrot.lane.b32.xlu1 %v1672_v44, %s2910_s29 }
0x348f   :  { %v1674_v34 = vpop.permute.xlu1 %1673 }
0x3490   :  { %2528 = vmatmul.msk.bf16.vlgmr.msra.gmra.mxu2 %vm66_vm0, %v1674_v34 }
0x3491   :  { %2185 = vmatpush.bf16.msra.mxu2 %v2578_v60 }
0x3495   :  { %2186 = vmatpush.bf16.msra.mxu2 %v2577_v62 }
0x3513   :  { %v1687_v45 = vpop.f32.mrf.mxu2 }
0x3514   :  { %v1692_v35 = vrot.slane %v1687_v45, 2 }
0x3516   :  { %v1694_v37 = vadd.f32 %v1692_v35, %v3164_v10 }
0x3518   :  { %2776 = vtanh.f32 %v1694_v37  ;;  %v2529_v40 = vmul.f32 -1.442695, %v1694_v37 }
0x351a   :  { %2778 = vpow2.f32 %v2529_v40 }
0x351b   :  { %v1689_v46 = vpop.f32.mrf.mxu2 }
0x351e   :  { %v2777_v38 = vpop.eup %2776 }
0x351f   :  { %1720 = vrot.lane.b32.xlu2 %v2777_v38, %s2907_s23 }
0x3520   :  { %v2779_v47 = vpop.eup %2778 }
0x3521   :  { %v1698_v41 = vadd.f32 1.0, %v2779_v47 }
0x3523   :  { %2780 = vrcp.f32 %v1698_v41  ;;  %v1710_v7 = vand.u32 2147483648, %v1698_v41  ;;  %vm1704_vm10 = vweird.f32 %v1698_v41  ;;  %v1708_v9 = vand.u32 2147483647, %v1698_v41 }
0x3525   :  { %v1711_v53 = vor.u32 1.1754944e-38, %v1710_v7  ;;  %vm1709_vm12 = vcmp.eq.f32.partialorder %v1708_v9, 8.507059e+37 }
0x3529   :  { %v2781_v48 = vpop.eup %2780 }
0x352a   :  { %v1700_v49 = vmul.f32 %v2781_v48, %v1698_v41  ;;  %vm1705_vm9 = vweird.f32 %v2781_v48 }
0x352b   :  { %vm1706_vm11 = vmor %vm1704_vm10, %vm1705_vm9 }
0x352c   :  { %v1701_v50 = vsub.f32 1.0, %v1700_v49 }
0x352e   :  { %v1702_v51 = vmul.f32 %v2781_v48, %v1701_v50 }
0x3530   :  { %v1703_v52 = vadd.f32 %v2781_v48, %v1702_v51 }
0x3532   :  { %v1707_v10 = vsel %vm1706_vm11, %v2781_v48, %v1703_v52 }
0x3533   :  { %v1712_v17 = vsel %vm1709_vm12, %v1711_v53, %v1707_v10 }
0x3534   :  { %v1718_v55 = vmul.f32 %v1716_v11, %v1712_v17 }
0x3579   :  { %v1721_v54 = vpop.permute.xlu2 %1720 }
0x357a   :  { %v1723_v15 = vmul.f32 %v1721_v54, %v1712_v17 }
0x357c   :  { %1725 = vrot.lane.b32.xlu0 %v1723_v15, %s2910_s29 }
0x35ee   :  { %v1726_v56 = vpop.permute.xlu0 %1725 }
0x35ef   :  { %v1728_v57 = vadd.f32 %v1726_v56, %v1718_v55 }
0x35f1   :  { %2782 = vtanh.f32 %v1728_v57 }
0x35f7   :  { %v2783_v58 = vpop.eup %2782 }
0x35f8   :  { %1731 = vrot.lane.b32.xlu1 %v2783_v58, %s2907_s23 }
0x366a   :  { %v1732_v63 = vpop.permute.xlu1 %1731 }
0x366b   :  { %v1734_v1 = vmul.f32 %v1732_v63, %v1712_v17 }
0x366d   :  { %v1740_v5 = vsel %vm604_vm4, %v3189_v43, %v1734_v1 }
0x366e   :  { %v1752_v6 = vpack.c.bf16 %v1740_v5, %v3159_v2 }
0x3670   :  { %1757 = vrot.lane.b32.xlu2 %v1752_v6, %s2910_s29 }
0x36ca   :  { %v1758_v12 = vpop.permute.xlu2 %1757 }
0x36cb   :  { %2539 = vmatmul.msk.bf16.vlgmr.msra.gmra.mxu3 %vm66_vm0, %v1758_v12 }
0x36cc   :  { %2250 = vmatpush.bf16.msra.mxu3 %v2578_v60 }
0x36d0   :  { %2251 = vmatpush.bf16.msra.mxu3 %v2577_v62 }
0x374e   :  { %v1783_v3 = vpop.f32.mrf.mxu3 }
0x374f   :  { %v3209_v18 = vadd.f32 %v3206_v16, %v1783_v3 }
0x3751   :  { %v1813_v2 = vadd.f32 %v1809_v0, %v3209_v18 }
0x3753   :  { %2784 = vtanh.f32 %v1813_v2  ;;  %v2548_v20 = vmul.f32 -1.442695, %v1813_v2 }
0x3755   :  { %2786 = vpow2.f32 %v2548_v20 }
0x3759   :  { %v2785_v19 = vpop.eup %2784 }
0x375a   :  { %1836 = vrot.lane.b32.xlu0 %v2785_v19, %s2907_s23 }
0x375b   :  { %v2787_v21 = vpop.eup %2786 }
0x375c   :  { %v1817_v8 = vadd.f32 1.0, %v2787_v21 }
0x375e   :  { %2788 = vrcp.f32 %v1817_v8  ;;  %v1829_v25 = vand.u32 2147483648, %v1817_v8  ;;  %vm1823_vm1 = vweird.f32 %v1817_v8  ;;  %v1827_v26 = vand.u32 2147483647, %v1817_v8 }
0x3760   :  { %v1830_v28 = vor.u32 1.1754944e-38, %v1829_v25  ;;  %vm1828_vm3 = vcmp.eq.f32.partialorder %v1827_v26, 8.507059e+37 }
0x3764   :  { %v2789_v22 = vpop.eup %2788 }
0x3765   :  { %v1819_v13 = vmul.f32 %v2789_v22, %v1817_v8  ;;  %vm1824_vm15 = vweird.f32 %v2789_v22 }
0x3766   :  { %vm1825_vm2 = vmor %vm1823_vm1, %vm1824_vm15 }
0x3767   :  { %v1820_v23 = vsub.f32 1.0, %v1819_v13 }
0x3769   :  { %v1821_v4 = vmul.f32 %v2789_v22, %v1820_v23 }
0x376b   :  { %v1822_v24 = vadd.f32 %v2789_v22, %v1821_v4 }
0x376d   :  { %v1826_v27 = vsel %vm1825_vm2, %v2789_v22, %v1822_v24 }
0x376e   :  { %v1831_v30 = vsel %vm1828_vm3, %v1830_v28, %v1826_v27 }
0x376f   :  { %v1834_v32 = vmul.f32 0.0, %v1831_v30 }
0x37cc   :  { %v1837_v29 = vpop.permute.xlu0 %1836 }
0x37cd   :  { %v1839_v31 = vmul.f32 %v1837_v29, %v1831_v30 }
0x37cf   :  { %1841 = vrot.lane.b32.xlu1 %v1839_v31, %s2910_s29 }
0x3841   :  { %v1842_v33 = vpop.permute.xlu1 %1841 }
0x3842   :  { %v1844_v36 = vadd.f32 %v1842_v33, %v1834_v32 }
0x3844   :  { %2790 = vtanh.f32 %v1844_v36  ;;  %v1896_v11 = vrot.slane %v1844_v36, 6 }
0x384a   :  { %v2791_v39 = vpop.eup %2790 }
0x384b   :  { %1847 = vrot.lane.b32.xlu2 %v2791_v39, %s2907_s23 }
0x38a5   :  { %v1848_v42 = vpop.permute.xlu2 %1847 }
0x38a6   :  { %v3215_v43 = vmul.f32 %v1848_v42, %v1831_v30 }
0x38a8   :  { %v1851_v44 = vpack.c.bf16 %v3215_v43, %v3215_v43 }
0x38aa   :  { %1853 = vrot.lane.b32.xlu0 %v1851_v44, %s2910_s29 }
0x391c   :  { %v1854_v34 = vpop.permute.xlu0 %1853 }
0x391d   :  { %2549 = vmatmul.msk.bf16.vlgmr.msrb.gmra.mxu1 %vm66_vm0, %v1854_v34  ;;  %v1785_v34 = vpop.f32.mrf.mxu3 }
0x399a   :  { %v1867_v45 = vpop.f32.mrf.mxu1 }
0x399b   :  { %v1872_v35 = vrot.slane %v1867_v45, 6 }
0x399d   :  { %v1874_v37 = vadd.f32 %v1872_v35, %v3209_v18 }
0x399f   :  { %2792 = vtanh.f32 %v1874_v37  ;;  %v2550_v40 = vmul.f32 -1.442695, %v1874_v37 }
0x39a1   :  { %2794 = vpow2.f32 %v2550_v40 }
0x39a2   :  { %v1869_v46 = vpop.f32.mrf.mxu1 }
0x39a5   :  { %v2793_v38 = vpop.eup %2792 }
0x39a6   :  { %1900 = vrot.lane.b32.xlu1 %v2793_v38, %s2907_s23 }
0x39a7   :  { %v2795_v47 = vpop.eup %2794 }
0x39a8   :  { %v1878_v41 = vadd.f32 1.0, %v2795_v47 }
0x39aa   :  { %2796 = vrcp.f32 %v1878_v41  ;;  %v1890_v7 = vand.u32 2147483648, %v1878_v41  ;;  %vm1884_vm6 = vweird.f32 %v1878_v41  ;;  %v1888_v9 = vand.u32 2147483647, %v1878_v41 }
0x39ac   :  { %v1891_v53 = vor.u32 1.1754944e-38, %v1890_v7  ;;  %vm1889_vm8 = vcmp.eq.f32.partialorder %v1888_v9, 8.507059e+37 }
0x39b0   :  { %v2797_v48 = vpop.eup %2796 }
0x39b1   :  { %v1880_v49 = vmul.f32 %v2797_v48, %v1878_v41  ;;  %vm1885_vm5 = vweird.f32 %v2797_v48 }
0x39b2   :  { %vm1886_vm7 = vmor %vm1884_vm6, %vm1885_vm5 }
0x39b3   :  { %v1881_v50 = vsub.f32 1.0, %v1880_v49 }
0x39b5   :  { %v1882_v51 = vmul.f32 %v2797_v48, %v1881_v50 }
0x39b7   :  { %v1883_v52 = vadd.f32 %v2797_v48, %v1882_v51 }
0x39b9   :  { %v1887_v10 = vsel %vm1886_vm7, %v2797_v48, %v1883_v52 }
0x39ba   :  { %v1892_v17 = vsel %vm1889_vm8, %v1891_v53, %v1887_v10 }
0x39bb   :  { %v1898_v55 = vmul.f32 %v1896_v11, %v1892_v17 }
0x3a18   :  { %v1901_v54 = vpop.permute.xlu1 %1900 }
0x3a19   :  { %v1903_v15 = vmul.f32 %v1901_v54, %v1892_v17 }
0x3a1b   :  { %1905 = vrot.lane.b32.xlu2 %v1903_v15, %s2910_s29 }
0x3a75   :  { %v1906_v56 = vpop.permute.xlu2 %1905 }
0x3a76   :  { %v1908_v57 = vadd.f32 %v1906_v56, %v1898_v55 }
0x3a78   :  { %2798 = vtanh.f32 %v1908_v57  ;;  %v1961_v28 = vrot.slane %v1908_v57, 6 }
0x3a7e   :  { %v2799_v58 = vpop.eup %2798 }
0x3a7f   :  { %1911 = vrot.lane.b32.xlu0 %v2799_v58, %s2907_s23 }
0x3af1   :  { %v1912_v59 = vpop.permute.xlu0 %1911 }
0x3af2   :  { %v3225_v60 = vmul.f32 %v1912_v59, %v1892_v17 }
0x3af4   :  { %v1915_v61 = vpack.c.bf16 %v3225_v60, %v3225_v60 }
0x3af6   :  { %v1917_v62 = vrot.slane %v1915_v61, 1 }
0x3af8   :  { %1918 = vrot.lane.b32.xlu1 %v1917_v62, %s2910_s29 }
0x3b6a   :  { %v1919_v63 = vpop.permute.xlu1 %1918 }
0x3b6b   :  { %2551 = vmatmul.msk.bf16.vlgmr.msrb.gmra.mxu2 %vm66_vm0, %v1919_v63 }
0x3bee   :  { %v1932_v1 = vpop.f32.mrf.mxu2 }
0x3bef   :  { %v1937_v5 = vrot.slane %v1932_v1, 4  ;;  %v3252_v1 = vadd.f32 %v3206_v16, %v1785_v34 }
0x3bf1   :  { %v1939_v6 = vadd.f32 %v1937_v5, %v3209_v18 }
0x3bf3   :  { %2800 = vtanh.f32 %v1939_v6  ;;  %v2552_v14 = vmul.f32 -1.442695, %v1939_v6 }
0x3bf5   :  { %2802 = vpow2.f32 %v2552_v14 }
0x3bf6   :  { %v1934_v12 = vpop.f32.mrf.mxu2 }
0x3bf9   :  { %v2801_v0 = vpop.eup %2800 }
0x3bfa   :  { %1965 = vrot.lane.b32.xlu2 %v2801_v0, %s2907_s23 }
0x3bfb   :  { %v2803_v3 = vpop.eup %2802 }
0x3bfc   :  { %v1943_v2 = vadd.f32 1.0, %v2803_v3 }
0x3bfe   :  { %2804 = vrcp.f32 %v1943_v2  ;;  %v1955_v13 = vand.u32 2147483648, %v1943_v2  ;;  %vm1949_vm10 = vweird.f32 %v1943_v2  ;;  %v1953_v23 = vand.u32 2147483647, %v1943_v2 }
0x3c00   :  { %v1956_v24 = vor.u32 1.1754944e-38, %v1955_v13  ;;  %vm1954_vm12 = vcmp.eq.f32.partialorder %v1953_v23, 8.507059e+37 }
0x3c04   :  { %v2805_v19 = vpop.eup %2804 }
0x3c05   :  { %v1945_v20 = vmul.f32 %v2805_v19, %v1943_v2  ;;  %vm1950_vm9 = vweird.f32 %v2805_v19 }
0x3c06   :  { %vm1951_vm11 = vmor %vm1949_vm10, %vm1950_vm9 }
0x3c07   :  { %v1946_v21 = vsub.f32 1.0, %v1945_v20 }
0x3c09   :  { %v1947_v8 = vmul.f32 %v2805_v19, %v1946_v21 }
0x3c0b   :  { %v1948_v22 = vadd.f32 %v2805_v19, %v1947_v8 }
0x3c0d   :  { %v1952_v4 = vsel %vm1951_vm11, %v2805_v19, %v1948_v22 }
0x3c0e   :  { %v1957_v26 = vsel %vm1954_vm12, %v1956_v24, %v1952_v4 }
0x3c0f   :  { %v1963_v29 = vmul.f32 %v1961_v28, %v1957_v26 }
0x3c54   :  { %v1966_v25 = vpop.permute.xlu2 %1965 }
0x3c55   :  { %v1968_v27 = vmul.f32 %v1966_v25, %v1957_v26 }
0x3c57   :  { %1970 = vrot.lane.b32.xlu0 %v1968_v27, %s2910_s29 }
0x3cc9   :  { %v1971_v30 = vpop.permute.xlu0 %1970 }
0x3cca   :  { %v1973_v31 = vadd.f32 %v1971_v30, %v1963_v29 }
0x3ccc   :  { %2806 = vtanh.f32 %v1973_v31  ;;  %v2026_v15 = vrot.slane %v1973_v31, 6 }
0x3cd2   :  { %v2807_v32 = vpop.eup %2806 }
0x3cd3   :  { %1976 = vrot.lane.b32.xlu1 %v2807_v32, %s2907_s23 }
0x3d45   :  { %v1977_v33 = vpop.permute.xlu1 %1976 }
0x3d46   :  { %v3235_v36 = vmul.f32 %v1977_v33, %v1957_v26 }
0x3d48   :  { %v1980_v39 = vpack.c.bf16 %v3235_v36, %v3235_v36 }
0x3d4a   :  { %v1982_v42 = vrot.slane %v1980_v39, 2 }
0x3d4c   :  { %1983 = vrot.lane.b32.xlu2 %v1982_v42, %s2910_s29 }
0x3da6   :  { %v1984_v44 = vpop.permute.xlu2 %1983 }
0x3da7   :  { %2553 = vmatmul.msk.bf16.vlgmr.msrb.gmra.mxu3 %vm66_vm0, %v1984_v44 }
0x3e2a   :  { %v1997_v45 = vpop.f32.mrf.mxu3 }
0x3e2b   :  { %v2002_v35 = vrot.slane %v1997_v45, 2 }
0x3e2d   :  { %v2004_v37 = vadd.f32 %v2002_v35, %v3209_v18 }
0x3e2f   :  { %2808 = vtanh.f32 %v2004_v37  ;;  %v2554_v40 = vmul.f32 -1.442695, %v2004_v37 }
0x3e31   :  { %2810 = vpow2.f32 %v2554_v40 }
0x3e32   :  { %v1999_v46 = vpop.f32.mrf.mxu3 }
0x3e35   :  { %v2809_v38 = vpop.eup %2808 }
0x3e36   :  { %2030 = vrot.lane.b32.xlu0 %v2809_v38, %s2907_s23 }
0x3e37   :  { %v2811_v47 = vpop.eup %2810 }
0x3e38   :  { %v2008_v41 = vadd.f32 1.0, %v2811_v47 }
0x3e3a   :  { %2812 = vrcp.f32 %v2008_v41  ;;  %v2020_v7 = vand.u32 2147483648, %v2008_v41  ;;  %vm2014_vm1 = vweird.f32 %v2008_v41  ;;  %v2018_v9 = vand.u32 2147483647, %v2008_v41 }
0x3e3c   :  { %v2021_v10 = vor.u32 1.1754944e-38, %v2020_v7  ;;  %vm2019_vm3 = vcmp.eq.f32.partialorder %v2018_v9, 8.507059e+37 }
0x3e40   :  { %v2813_v48 = vpop.eup %2812 }
0x3e41   :  { %v2010_v49 = vmul.f32 %v2813_v48, %v2008_v41  ;;  %vm2015_vm15 = vweird.f32 %v2813_v48 }
0x3e42   :  { %vm2016_vm2 = vmor %vm2014_vm1, %vm2015_vm15 }
0x3e43   :  { %v2011_v50 = vsub.f32 1.0, %v2010_v49 }
0x3e45   :  { %v2012_v51 = vmul.f32 %v2813_v48, %v2011_v50 }
0x3e47   :  { %v2013_v52 = vadd.f32 %v2813_v48, %v2012_v51 }
0x3e49   :  { %v2017_v18 = vsel %vm2016_vm2, %v2813_v48, %v2013_v52 }
0x3e4a   :  { %v2022_v54 = vsel %vm2019_vm3, %v2021_v10, %v2017_v18 }
0x3e4b   :  { %v2028_v11 = vmul.f32 %v2026_v15, %v2022_v54 }
0x3ea8   :  { %v2031_v53 = vpop.permute.xlu0 %2030 }
0x3ea9   :  { %v2033_v17 = vmul.f32 %v2031_v53, %v2022_v54 }
0x3eab   :  { %2035 = vrot.lane.b32.xlu1 %v2033_v17, %s2910_s29 }
0x3f1d   :  { %v2036_v55 = vpop.permute.xlu1 %2035 }
0x3f1e   :  { %v2038_v56 = vadd.f32 %v2036_v55, %v2028_v11 }
0x3f20   :  { %2814 = vtanh.f32 %v2038_v56  ;;  %v2088_v27 = vrot.slane %v2038_v56, 6 }
0x3f26   :  { %v2815_v57 = vpop.eup %2814 }
0x3f27   :  { %2041 = vrot.lane.b32.xlu2 %v2815_v57, %s2907_s23 }
0x3f81   :  { %v2042_v58 = vpop.permute.xlu2 %2041 }
0x3f82   :  { %v3245_v59 = vmul.f32 %v2042_v58, %v2022_v54 }
0x3f84   :  { %v2045_v61 = vpack.c.bf16 %v3245_v59, %v3245_v59 }
0x3f86   :  { %v2047_v62 = vrot.slane %v2045_v61, 3 }
0x3f88   :  { %2048 = vrot.lane.b32.xlu0 %v2047_v62, %s2910_s29 }
0x3ffa   :  { %v2049_v63 = vpop.permute.xlu0 %2048 }
0x3ffb   :  { %2555 = vmatmul.msk.bf16.vlgmr.msra.gmra.mxu0 %vm66_vm0, %v2049_v63 }
0x4078   :  { %v2062_v5 = vpop.f32.mrf.mxu0 }
0x4079   :  { %v2066_v6 = vadd.f32 %v2062_v5, %v3252_v1 }
0x407b   :  { %2816 = vtanh.f32 %v2066_v6  ;;  %v2556_v14 = vmul.f32 -1.442695, %v2066_v6 }
0x407d   :  { %2818 = vpow2.f32 %v2556_v14 }
0x4080   :  { %v2064_v12 = vpop.f32.mrf.mxu0 }
0x4081   :  { %v2817_v0 = vpop.eup %2816 }
0x4082   :  { %2092 = vrot.lane.b32.xlu1 %v2817_v0, %s2907_s23 }
0x4083   :  { %v2819_v3 = vpop.eup %2818 }
0x4084   :  { %v2070_v2 = vadd.f32 1.0, %v2819_v3 }
0x4086   :  { %2820 = vrcp.f32 %v2070_v2  ;;  %v2082_v16 = vand.u32 2147483648, %v2070_v2  ;;  %vm2076_vm6 = vweird.f32 %v2070_v2  ;;  %v2080_v13 = vand.u32 2147483647, %v2070_v2 }
0x4088   :  { %v2083_v4 = vor.u32 1.1754944e-38, %v2082_v16  ;;  %vm2081_vm8 = vcmp.eq.f32.partialorder %v2080_v13, 8.507059e+37 }
0x408c   :  { %v2821_v19 = vpop.eup %2820 }
0x408d   :  { %v2072_v20 = vmul.f32 %v2821_v19, %v2070_v2  ;;  %vm2077_vm5 = vweird.f32 %v2821_v19 }
0x408e   :  { %vm2078_vm7 = vmor %vm2076_vm6, %vm2077_vm5 }
0x408f   :  { %v2073_v21 = vsub.f32 1.0, %v2072_v20 }
0x4091   :  { %v2074_v8 = vmul.f32 %v2821_v19, %v2073_v21 }
0x4093   :  { %v2075_v22 = vadd.f32 %v2821_v19, %v2074_v8 }
0x4095   :  { %v2079_v23 = vsel %vm2078_vm7, %v2821_v19, %v2075_v22 }
0x4096   :  { %v2084_v25 = vsel %vm2081_vm8, %v2083_v4, %v2079_v23 }
0x4097   :  { %v2090_v28 = vmul.f32 %v2088_v27, %v2084_v25 }
0x40f4   :  { %v2093_v24 = vpop.permute.xlu1 %2092 }
0x40f5   :  { %v2095_v26 = vmul.f32 %v2093_v24, %v2084_v25 }
0x40f7   :  { %2097 = vrot.lane.b32.xlu2 %v2095_v26, %s2910_s29 }
0x4151   :  { %v2098_v29 = vpop.permute.xlu2 %2097 }
0x4152   :  { %v2100_v30 = vadd.f32 %v2098_v29, %v2090_v28 }
0x4154   :  { %2822 = vtanh.f32 %v2100_v30  ;;  %v2152_v54 = vrot.slane %v2100_v30, 6 }
0x415a   :  { %v2823_v31 = vpop.eup %2822 }
0x415b   :  { %2103 = vrot.lane.b32.xlu0 %v2823_v31, %s2907_s23 }
0x41cd   :  { %v2104_v32 = vpop.permute.xlu0 %2103 }
0x41ce   :  { %v3258_v33 = vmul.f32 %v2104_v32, %v2084_v25 }
0x41d0   :  { %v2107_v39 = vpack.c.bf16 %v3258_v33, %v3258_v33 }
0x41d2   :  { %2109 = vrot.lane.b32.xlu1 %v2107_v39, %s2910_s29 }
0x4244   :  { %v2110_v42 = vpop.permute.xlu1 %2109 }
0x4245   :  { %2557 = vmatmul.msk.bf16.vlgmr.msra.gmra.mxu1 %vm66_vm0, %v2110_v42 }
0x42c2   :  { %v2123_v44 = vpop.f32.mrf.mxu1 }
0x42c3   :  { %v2128_v34 = vrot.slane %v2123_v44, 6 }
0x42c5   :  { %v2130_v45 = vadd.f32 %v2128_v34, %v3252_v1 }
0x42c7   :  { %2824 = vtanh.f32 %v2130_v45  ;;  %v2558_v46 = vmul.f32 -1.442695, %v2130_v45 }
0x42c9   :  { %2826 = vpow2.f32 %v2558_v46 }
0x42ca   :  { %v2125_v35 = vpop.f32.mrf.mxu1 }
0x42cd   :  { %v2825_v37 = vpop.eup %2824 }
0x42ce   :  { %2156 = vrot.lane.b32.xlu2 %v2825_v37, %s2907_s23 }
0x42cf   :  { %v2827_v38 = vpop.eup %2826 }
0x42d0   :  { %v2134_v40 = vadd.f32 1.0, %v2827_v38 }
0x42d2   :  { %2828 = vrcp.f32 %v2134_v40  ;;  %v2146_v51 = vand.u32 2147483648, %v2134_v40  ;;  %vm2140_vm10 = vweird.f32 %v2134_v40  ;;  %v2144_v52 = vand.u32 2147483647, %v2134_v40 }
0x42d4   :  { %v2147_v9 = vor.u32 1.1754944e-38, %v2146_v51  ;;  %vm2145_vm12 = vcmp.eq.f32.partialorder %v2144_v52, 8.507059e+37 }
0x42d8   :  { %v2829_v47 = vpop.eup %2828 }
0x42d9   :  { %v2136_v41 = vmul.f32 %v2829_v47, %v2134_v40  ;;  %vm2141_vm9 = vweird.f32 %v2829_v47  ;;  %v2591_v40 = vld [vmem:[%s3325_s3] ss:$0 sm:$0xff] }
0x42da   :  { %vm2142_vm11 = vmor %vm2140_vm10, %vm2141_vm9 }
0x42db   :  { %v2137_v48 = vsub.f32 1.0, %v2136_v41 }
0x42dd   :  { %v2138_v49 = vmul.f32 %v2829_v47, %v2137_v48 }
0x42df   :  { %v2139_v50 = vadd.f32 %v2829_v47, %v2138_v49 }
0x42e1   :  { %v2143_v7 = vsel %vm2142_vm11, %v2829_v47, %v2139_v50 }
0x42e2   :  { %v2148_v10 = vsel %vm2145_vm12, %v2147_v9, %v2143_v7 }
0x42e3   :  { %v2154_v17 = vmul.f32 %v2152_v54, %v2148_v10 }
0x4328   :  { %v2157_v18 = vpop.permute.xlu2 %2156 }
0x4329   :  { %v2159_v53 = vmul.f32 %v2157_v18, %v2148_v10 }
0x432b   :  { %2161 = vrot.lane.b32.xlu0 %v2159_v53, %s2910_s29 }
0x439d   :  { %v2162_v15 = vpop.permute.xlu0 %2161 }
0x439e   :  { %v2164_v11 = vadd.f32 %v2162_v15, %v2154_v17  ;;  %v2301_v15 = vsel %vm600_vm13, %v3215_v43, %v3225_v60 }
0x43a0   :  { %2830 = vtanh.f32 %v2164_v11  ;;  %v2217_v27 = vrot.slane %v2164_v11, 6  ;;  %v2302_v11 = vsel %vm602_vm14, %v2301_v15, %v3235_v36 }
0x43a6   :  { %v2831_v55 = vpop.eup %2830 }
0x43a7   :  { %2167 = vrot.lane.b32.xlu1 %v2831_v55, %s2907_s23  ;;  %v2303_v55 = vsel %vm604_vm4, %v2302_v11, %v3245_v59 }
0x4419   :  { %v2168_v56 = vpop.permute.xlu1 %2167 }
0x441a   :  { %v3268_v57 = vmul.f32 %v2168_v56, %v2148_v10 }
0x441c   :  { %v2171_v58 = vpack.c.bf16 %v3268_v57, %v3268_v57 }
0x441e   :  { %v2173_v61 = vrot.slane %v2171_v58, 1 }
0x4420   :  { %2174 = vrot.lane.b32.xlu2 %v2173_v61, %s2910_s29 }
0x447a   :  { %v2175_v62 = vpop.permute.xlu2 %2174 }
0x447b   :  { %2559 = vmatmul.msk.bf16.vlgmr.msra.gmra.mxu2 %vm66_vm0, %v2175_v62 }
0x44fe   :  { %v2188_v63 = vpop.f32.mrf.mxu2 }
0x44ff   :  { %v2193_v5 = vrot.slane %v2188_v63, 4 }
0x4501   :  { %v2195_v6 = vadd.f32 %v2193_v5, %v3252_v1 }
0x4503   :  { %2832 = vtanh.f32 %v2195_v6  ;;  %v2560_v14 = vmul.f32 -1.442695, %v2195_v6 }
0x4505   :  { %2834 = vpow2.f32 %v2560_v14 }
0x4506   :  { %v2190_v12 = vpop.f32.mrf.mxu2 }
0x4509   :  { %v2833_v0 = vpop.eup %2832 }
0x450a   :  { %2221 = vrot.lane.b32.xlu0 %v2833_v0, %s2907_s23 }
0x450b   :  { %v2835_v3 = vpop.eup %2834 }
0x450c   :  { %v2199_v2 = vadd.f32 1.0, %v2835_v3  ;;  %v2304_v3 = vsel %vm600_vm13, %v3258_v33, %v3268_v57 }
0x450e   :  { %2836 = vrcp.f32 %v2199_v2  ;;  %v2211_v16 = vand.u32 2147483648, %v2199_v2  ;;  %vm2205_vm1 = vweird.f32 %v2199_v2  ;;  %v2209_v13 = vand.u32 2147483647, %v2199_v2 }
0x4510   :  { %v2212_v4 = vor.u32 1.1754944e-38, %v2211_v16  ;;  %vm2210_vm3 = vcmp.eq.f32.partialorder %v2209_v13, 8.507059e+37  ;;  %v2330_v16 = vstv %s3326_s4  ;;  %s2912_s4 = smov [#allocation6]  }
0x4511   :  { %s2420_s14 = sshll.u32 %s2912_s4, 4  ;;  %s2421_s14 = int_to_ptr.vmem [resolvable:$true] %s2420_s14 }
0x4514   :  { %v2837_v19 = vpop.eup %2836 }
0x4515   :  { %v2201_v20 = vmul.f32 %v2837_v19, %v2199_v2  ;;  %vm2206_vm15 = vweird.f32 %v2837_v19 }
0x4516   :  { %vm2207_vm2 = vmor %vm2205_vm1, %vm2206_vm15 }
0x4517   :  { %v2202_v21 = vsub.f32 1.0, %v2201_v20 }
0x4519   :  { %v2203_v8 = vmul.f32 %v2837_v19, %v2202_v21 }
0x451b   :  { %v2204_v22 = vadd.f32 %v2837_v19, %v2203_v8 }
0x451d   :  { %v2208_v23 = vsel %vm2207_vm2, %v2837_v19, %v2204_v22 }
0x451e   :  { %v2213_v25 = vsel %vm2210_vm3, %v2212_v4, %v2208_v23 }
0x451f   :  { %v2219_v28 = vmul.f32 %v2217_v27, %v2213_v25 }
0x457c   :  { %v2222_v24 = vpop.permute.xlu0 %2221 }
0x457d   :  { %v2224_v26 = vmul.f32 %v2222_v24, %v2213_v25 }
0x457f   :  { %2226 = vrot.lane.b32.xlu1 %v2224_v26, %s2910_s29 }
0x45f1   :  { %v2227_v29 = vpop.permute.xlu1 %2226 }
0x45f2   :  { %v2229_v30 = vadd.f32 %v2227_v29, %v2219_v28 }
0x45f4   :  { %2838 = vtanh.f32 %v2229_v30  ;;  %v2282_v61 = vrot.slane %v2229_v30, 6 }
0x45fa   :  { %v2839_v31 = vpop.eup %2838 }
0x45fb   :  { %2232 = vrot.lane.b32.xlu2 %v2839_v31, %s2907_s23 }
0x4655   :  { %v2233_v32 = vpop.permute.xlu2 %2232 }
0x4656   :  { %v3278_v39 = vmul.f32 %v2233_v32, %v2213_v25 }
0x4658   :  { %v2236_v42 = vpack.c.bf16 %v3278_v39, %v3278_v39  ;;  %v2305_v19 = vsel %vm602_vm14, %v2304_v3, %v3278_v39 }
0x465a   :  { %v2238_v44 = vrot.slane %v2236_v42, 2 }
0x465c   :  { %2239 = vrot.lane.b32.xlu0 %v2238_v44, %s2910_s29 }
0x46ce   :  { %v2240_v34 = vpop.permute.xlu0 %2239 }
0x46cf   :  { %2561 = vmatmul.msk.bf16.vlgmr.msra.gmra.mxu3 %vm66_vm0, %v2240_v34 }
0x4752   :  { %v2253_v45 = vpop.f32.mrf.mxu3 }
0x4753   :  { %v2258_v35 = vrot.slane %v2253_v45, 2 }
0x4755   :  { %v2260_v37 = vadd.f32 %v2258_v35, %v3252_v1 }
0x4757   :  { %2840 = vtanh.f32 %v2260_v37  ;;  %v2562_v47 = vmul.f32 -1.442695, %v2260_v37 }
0x4759   :  { %2842 = vpow2.f32 %v2562_v47 }
0x475a   :  { %v2255_v46 = vpop.f32.mrf.mxu3 }
0x475d   :  { %v2841_v38 = vpop.eup %2840 }
0x475e   :  { %2286 = vrot.lane.b32.xlu1 %v2841_v38, %s2907_s23 }
0x475f   :  { %v2843_v41 = vpop.eup %2842 }
0x4760   :  { %v2264_v48 = vadd.f32 1.0, %v2843_v41 }
0x4762   :  { %2844 = vrcp.f32 %v2264_v48  ;;  %v2276_v7 = vand.u32 2147483648, %v2264_v48  ;;  %vm2270_vm6 = vweird.f32 %v2264_v48  ;;  %v2274_v9 = vand.u32 2147483647, %v2264_v48 }
0x4764   :  { %v2277_v10 = vor.u32 1.1754944e-38, %v2276_v7  ;;  %vm2275_vm8 = vcmp.eq.f32.partialorder %v2274_v9, 8.507059e+37 }
0x4766   :  { %2311 = vrot.lane.b32.xlu1 %v2591_v40, %s2911_s12 }
0x4768   :  { %v2845_v49 = vpop.eup %2844 }
0x4769   :  { %v2266_v50 = vmul.f32 %v2845_v49, %v2264_v48  ;;  %vm2271_vm5 = vweird.f32 %v2845_v49 }
0x476a   :  { %vm2272_vm7 = vmor %vm2270_vm6, %vm2271_vm5 }
0x476b   :  { %v2267_v51 = vsub.f32 1.0, %v2266_v50 }
0x476d   :  { %v2268_v1 = vmul.f32 %v2845_v49, %v2267_v51 }
0x476f   :  { %v2269_v52 = vadd.f32 %v2845_v49, %v2268_v1 }
0x4771   :  { %v2273_v18 = vsel %vm2272_vm7, %v2845_v49, %v2269_v52 }
0x4772   :  { %v2278_v54 = vsel %vm2275_vm8, %v2277_v10, %v2273_v18 }
0x4773   :  { %v2284_v62 = vmul.f32 %v2282_v61, %v2278_v54 }
0x47d0   :  { %v2287_v53 = vpop.permute.xlu1 %2286 }
0x47d1   :  { %v2289_v17 = vmul.f32 %v2287_v53, %v2278_v54 }
0x47d3   :  { %2291 = vrot.lane.b32.xlu2 %v2289_v17, %s2910_s29 }
0x47d8   :  { %v2312_v56 = vpop.permute.xlu1 %2311 }
0x47d9   :  { %v2314_v58 = vmul.f32 %v2312_v56, %v2303_v55 }
0x47db   :  { %2318 = vrot.lane.b32.xlu2 %v2314_v58, %s2910_s29 }
0x482d   :  { %v2292_v63 = vpop.permute.xlu2 %2291 }
0x482e   :  { %v2294_v5 = vadd.f32 %v2292_v63, %v2284_v62 }
0x4830   :  { %2846 = vtanh.f32 %v2294_v5 }
0x4835   :  { %v2319_v6 = vpop.permute.xlu2 %2318 }
0x4836   :  { %v2847_v12 = vpop.eup %2846  ;;  %v2324_v0 = vsel %vm66_vm0, %v2319_v6, 0.0 }
0x4837   :  { %2325 = vadd.xlane.f32.xlu1 %v2324_v0  ;;  %2297 = vrot.lane.b32.xlu0 %v2847_v12, %s2907_s23 }
0x48a9   :  { %v2298_v14 = vpop.permute.xlu0 %2297 }
0x48aa   :  { %v2300_v2 = vmul.f32 %v2298_v14, %v2278_v54  ;;  %v2326_v13 = vpop.xlane.xlu1 %2325 }
0x48ab   :  { %v2331_v4 = vadd.f32 %v2330_v16, %v2326_v13 }
0x48ac   :  { %v2306_v20 = vsel %vm604_vm4, %v2305_v19, %v2300_v2 }
0x48ad   :  { %v2315_v21 = vmul.f32 %v2312_v56, %v2306_v20 }
0x48af   :  { %2320 = vrot.lane.b32.xlu0 %v2315_v21, %s2910_s29 }
0x4921   :  { %v2321_v8 = vpop.permute.xlu0 %2320 }
0x4922   :  { %v2327_v22 = vsel %vm66_vm0, %v2321_v8, 0.0  ;;  %vm2413_vm0 = vcmask 254976  }
0x4923   :  { %2328 = vadd.xlane.f32.xlu2 %v2327_v22 }
0x4996   :  { %v2329_v23 = vpop.xlane.xlu2 %2328 }
0x4997   :  { %v2332_v24 = vadd.f32 %v2330_v16, %v2329_v23 }
0x4999   :  { %v2333_v25 = vmax.f32 %v2331_v4, %v2332_v24 }
0x499b   :  { %v2334_v26 = vrot.slane %v2333_v25, 4 }
0x499d   :  { %v2335_v27 = vmax.f32 %v2333_v25, %v2334_v26 }
0x499f   :  { %v2336_v28 = vrot.slane %v2335_v27, 2 }
0x49a1   :  { %v2337_v29 = vmax.f32 %v2335_v27, %v2336_v28 }
0x49a3   :  { %v2338_v30 = vrot.slane %v2337_v29, 1 }
0x49a5   :  { %v2339_v31 = vmax.f32 %v2337_v29, %v2338_v30 }
0x49a7   :  { %v2340_v32 = vsub.f32 %v2331_v4, %v2339_v31  ;;  %v2341_v42 = vsub.f32 %v2332_v24, %v2339_v31 }
0x49a9   :  { %v2342_v44 = vmul.f32 1.442695, %v2340_v32  ;;  %v2344_v34 = vmul.f32 1.442695, %v2341_v42 }
0x49ab   :  { %2848 = vpow2.f32 %v2342_v44 }
0x49ac   :  { %2850 = vpow2.f32 %v2344_v34 }
0x49b1   :  { %v2849_v45 = vpop.eup %2848 }
0x49b2   :  { %v2350_v35 = vrot.slane %v2849_v45, 2  ;;  %v2353_v37 = vmul.f32 %v2849_v45, %v3225_v60  ;;  %v2358_v38 = vrot.slane %v2849_v45, 4  ;;  %v2361_v47 = vmul.f32 %v2849_v45, %v3235_v36  ;;  %v2851_v41 = vpop.eup %2850 }
0x49b3   :  { %v2366_v49 = vrot.slane %v2849_v45, 6  ;;  %v2369_v50 = vmul.f32 %v2849_v45, %v3245_v59  ;;  %v2347_v51 = vmul.f32 %v2849_v45, %v3215_v43  ;;  %v2378_v9 = vrot.slane %v2851_v41, 2 }
0x49b4   :  { %v2352_v46 = vadd.f32 %v2849_v45, %v2350_v35  ;;  %v2355_v40 = vrot.slane %v2353_v37, 2  ;;  %v2363_v52 = vrot.slane %v2361_v47, 4  ;;  %v2381_v60 = vmul.f32 %v2851_v41, %v3268_v57 }
0x49b5   :  { %v2371_v10 = vrot.slane %v2369_v50, 6  ;;  %v2386_v54 = vrot.slane %v2851_v41, 4  ;;  %v2375_v36 = vmul.f32 %v2851_v41, %v3258_v33  ;;  %v2389_v15 = vmul.f32 %v2851_v41, %v3278_v39 }
0x49b6   :  { %v2360_v48 = vadd.f32 %v2358_v38, %v2352_v46  ;;  %v2357_v7 = vadd.f32 %v2355_v40, %v2347_v51  ;;  %v2394_v55 = vrot.slane %v2851_v41, 6  ;;  %v2383_v56 = vrot.slane %v2381_v60, 2 }
0x49b7   :  { %v2397_v43 = vmul.f32 %v2851_v41, %v2300_v2  ;;  %v2391_v62 = vrot.slane %v2389_v15, 4 }
0x49b8   :  { %v2368_v1 = vadd.f32 %v2366_v49, %v2360_v48  ;;  %v2365_v53 = vadd.f32 %v2363_v52, %v2357_v7 }
0x49b9   :  { %v2399_v5 = vrot.slane %v2397_v43, 6 }
0x49ba   :  { %v2374_v18 = vadd.f32 %v2851_v41, %v2368_v1  ;;  %v2373_v11 = vadd.f32 %v2371_v10, %v2365_v53 }
0x49bc   :  { %v2380_v17 = vadd.f32 %v2378_v9, %v2374_v18  ;;  %v2376_v58 = vadd.f32 %v2375_v36, %v2373_v11 }
0x49be   :  { %v2388_v59 = vadd.f32 %v2386_v54, %v2380_v17  ;;  %v2385_v63 = vadd.f32 %v2383_v56, %v2376_v58 }
0x49c0   :  { %v2396_v61 = vadd.f32 %v2394_v55, %v2388_v59  ;;  %v2393_v6 = vadd.f32 %v2391_v62, %v2385_v63 }
0x49c2   :  { %2852 = vrcp.f32 %v2396_v61  ;;  %v2401_v57 = vadd.f32 %v2399_v5, %v2393_v6 }
0x49c8   :  { %v2853_v12 = vpop.eup %2852 }
0x49c9   :  { %2405 = vperm.xlu0 %2586, %v2853_v12  }
0x4a3b   :  { %v2406_v0 = vpop.permute.xlu0 %2405 }
0x4a3c   :  { %v2408_v14 = vmul.f32 %v2406_v0, %v2401_v57 }
0x4a3e   :  { %2410 = vrot.lane.b32.xlu0 %v2408_v14, %s2910_s29 }
0x4ab0   :  { %v2411_v33 = vpop.permute.xlu0 %2410 }
0x4ab1   :  { %2414 = vst.msk [vmem:[#allocation6] sm:$0x3] %vm2413_vm0, %v2411_v33 }
0x4ab2   :  { %2425 = dma.vmem_to_hbm [thread:$0]  %s2421_s14, 32, %s2423_s17, [#allocation5]  }
0x4ab3   :  { %2904 = dma.done.wait [#allocation5], 32  }
0x4ab4   :  { %2905 = vsyncadd [#allocation5], 4294967264 }
0x4ab5   :  { %2430 = vsyncpa [#allocation4], 1 }
0x4ab6   :  { %2431 = vsyncpa [#allocation5], 1 }

</bundles_post_ra>
